<compile_context>
chip_gen: v7x
topology: tpu7x:2x2x1
jax: 0.10.0
libtpu: 0.0.40
codegen_flags: <defaults>
</compile_context>

<pallas_src>
import functools

import jax
import jax.numpy as jnp
from jax.experimental import pallas as pl
from jax.experimental.pallas import tpu as pltpu


# ----------------------------------------------------------------------------
# Kernel 1: per-(batch, row-parity) deconv matmuls + bias, fused BN statistics,
#           output written directly in phase-interleaved layout.
# ----------------------------------------------------------------------------
def _deconv_phase_kernel(xp_ref, w_ref, bias_ref, y_ref, st_ref, acc_ref, *,
                         H, W, cin):
    py = pl.program_id(1)
    m = H * W

    def tap(dy, dx):
        # Shifted (H, W, Cin) window of the zero-padded input, as (H*W, Cin).
        return xp_ref[0, dy:dy + H, dx:dx + W, :].reshape(m, cin)

    # Taps with dy == 0 contribute to both row parities.
    acc_ref[...] = (
        jnp.dot(tap(0, 0), w_ref[0, 0], preferred_element_type=jnp.float32)
        + jnp.dot(tap(0, 1), w_ref[0, 1], preferred_element_type=jnp.float32))

    # Taps with dy == 1 only contribute to odd output rows (py == 1); skipping
    # them for py == 0 removes the all-zero weight blocks from the MXU work.
    @pl.when(py == 1)
    def _():
        acc_ref[...] += (
            jnp.dot(tap(1, 0), w_ref[0, 2], preferred_element_type=jnp.float32)
            + jnp.dot(tap(1, 1), w_ref[0, 3], preferred_element_type=jnp.float32))

    z = acc_ref[...]                                    # pre-bias, f32, (m, 2*Cout)

    # Fused BatchNorm statistics on the (better conditioned) pre-bias values;
    # only the two useful rows are stored.
    s1 = jnp.sum(z, axis=0, keepdims=True)              # (1, 2*Cout)
    s2 = jnp.sum(z * z, axis=0, keepdims=True)          # (1, 2*Cout)
    st_ref[...] = jnp.concatenate([s1, s2], axis=0)[None, None]   # (1,1,2,2*Cout)

    y = z + bias_ref[...]
    y_ref[...] = y.reshape(y_ref.shape).astype(y_ref.dtype)


def deconv_fused(xp, wphase, bias_col):
    """xp: (N, H+1, W+1, Cin) bf16 zero-padded input.
    wphase: (2, 4, Cin, 2*Cout) bf16 phase-blocked weights.
    bias_col: (1, 2*Cout) f32.
    Returns:
      y     (N, H, 2, W, 2*Cout) bf16 pre-BN activation, phase-interleaved,
      stats (N, 2, 2, 2*Cout) f32 per-(batch, py) [sum, sumsq] of pre-bias z.
    """
    n, hp1, wp1, cin = xp.shape
    H, W = hp1 - 1, wp1 - 1
    cwide = wphase.shape[-1]
    m = H * W

    kernel = functools.partial(_deconv_phase_kernel, H=H, W=W, cin=cin)
    cost = pl.CostEstimate(
        flops=2 * n * 6 * m * cin * cwide,               # 6 live tap-matmuls / item
        transcendentals=0,
        bytes_accessed=(2 * n * hp1 * wp1 * cin * 2      # xp read once per parity
                        + 2 * n * 4 * cin * cwide * 2    # weights per step
                        + 2 * n * m * cwide * 2          # bf16 y write
                        + 2 * n * 2 * cwide * 4),        # stats write
    )

    y, stats = pl.pallas_call(
        kernel,
        out_shape=(
            jax.ShapeDtypeStruct((n, H, 2, W, cwide), jnp.bfloat16),
            jax.ShapeDtypeStruct((n, 2, 2, cwide), jnp.float32),
        ),
        grid=(n, 2),
        in_specs=[
            pl.BlockSpec((1, hp1, wp1, cin), lambda b, p: (b, 0, 0, 0)),
            pl.BlockSpec((1, 4, cin, cwide), lambda b, p: (p, 0, 0, 0)),
            pl.BlockSpec((1, cwide), lambda b, p: (0, 0)),
        ],
        out_specs=(
            pl.BlockSpec((1, H, 1, W, cwide), lambda b, p: (b, 0, p, 0, 0)),
            pl.BlockSpec((1, 1, 2, cwide), lambda b, p: (b, p, 0, 0)),
        ),
        scratch_shapes=[pltpu.VMEM((m, cwide), jnp.float32)],
        compiler_params=pltpu.CompilerParams(
            dimension_semantics=("parallel", "parallel"),
            vmem_limit_bytes=32 * 1024 * 1024,
        ),
        cost_estimate=cost,
    )(xp, wphase, bias_col)
    return y, stats


# ----------------------------------------------------------------------------
# Kernel 2: tiled per-column affine (BatchNorm) + ReLU on the flat view.
# ----------------------------------------------------------------------------
def _bn_relu_kernel(y_ref, scale_ref, shift_ref, o_ref):
    y = y_ref[...].astype(jnp.float32)
    o_ref[...] = jnp.maximum(y * scale_ref[...] + shift_ref[...],
                             0.0).astype(o_ref.dtype)


def _row_tile(rows, row_bytes, target_bytes=4 * 1024 * 1024, min_tiles=2):
    """Largest multiple-of-8 row tile dividing `rows`, ~target_bytes per step,
    keeping >= min_tiles grid steps (v7x has two TensorCores)."""
    if rows % 8:
        return rows                       # full-array block is always legal
    tr = min(rows, max(8, target_bytes // max(row_bytes, 1)))
    if rows >= 8 * min_tiles:
        tr = min(tr, rows // min_tiles)
    tr = max(8, (tr // 8) * 8)
    while rows % tr:
        tr -= 8
    return tr


def bn_relu(y, scale_col, shift_col, out_dtype):
    """y: (rows, C') pre-BN activation; scale/shift: (1, C') f32."""
    rows, cw = y.shape
    out_itemsize = jnp.dtype(out_dtype).itemsize
    tr = _row_tile(rows, cw * (y.dtype.itemsize + out_itemsize))
    cost = pl.CostEstimate(
        flops=3 * rows * cw, transcendentals=0,
        bytes_accessed=rows * cw * (y.dtype.itemsize + out_itemsize) + 2 * cw * 4)
    return pl.pallas_call(
        _bn_relu_kernel,
        out_shape=jax.ShapeDtypeStruct((rows, cw), out_dtype),
        grid=(rows // tr,),
        in_specs=[
            pl.BlockSpec((tr, cw), lambda i: (i, 0)),
            pl.BlockSpec((1, cw), lambda i: (0, 0)),
            pl.BlockSpec((1, cw), lambda i: (0, 0)),
        ],
        out_specs=pl.BlockSpec((tr, cw), lambda i: (i, 0)),
        compiler_params=pltpu.CompilerParams(
            dimension_semantics=("parallel",),
            vmem_limit_bytes=32 * 1024 * 1024,
        ),
        cost_estimate=cost,
    )(y, scale_col, shift_col)


# ----------------------------------------------------------------------------
# Phase-blocked weights for ConvTranspose2d(k=3, s=2, p=1, op=1).
#   output (2y+py, 2x+px) uses input (y+dy, x+dx) with weight tap (ky, kx),
#   ky = 1 if py == 0 (and then only dy == 0) else (2 - 2*dy); same along x.
# ----------------------------------------------------------------------------
def _phase_blocked_weights(wt):
    """wt: (Cin, Cout, 3, 3) -> (2, 4, Cin, 2*Cout) bf16, indexed [py, 2*dy+dx],
    columns ordered (px, cout)."""
    cin, cout = wt.shape[:2]
    zero = jnp.zeros((cin, cout), wt.dtype)

    def kidx(parity, shift):
        if parity == 0:
            return 1 if shift == 0 else None
        return 2 if shift == 0 else 0

    blocks = []
    for py in range(2):
        taps = []
        for dy in range(2):
            for dx in range(2):
                cols = []
                for px in range(2):
                    ky, kx = kidx(py, dy), kidx(px, dx)
                    cols.append(zero if (ky is None or kx is None)
                                else wt[:, :, ky, kx])
                taps.append(jnp.concatenate(cols, axis=1))
        blocks.append(jnp.stack(taps))
    return jnp.stack(blocks).astype(jnp.bfloat16)


# ----------------------------------------------------------------------------
# One block: ConvTranspose2d(3, s=2, p=1, op=1) + BatchNorm2d(train) + ReLU
# ----------------------------------------------------------------------------
def deconv_bn_relu_block(x_nhwc, wt, b, gamma, beta, *, eps=1e-5,
                         out_dtype=jnp.bfloat16):
    n, h, w, cin = x_nhwc.shape
    cout = wt.shape[1]
    cwide = 2 * cout

    # Single cheap zero-pad of the input; the four shifted taps are assembled
    # inside the kernel (no 4x "A matrix" in HBM).
    xp = jnp.pad(x_nhwc.astype(jnp.bfloat16), ((0, 0), (0, 1), (0, 1), (0, 0)))

    wphase = _phase_blocked_weights(wt)                       # (2, 4, Cin, 2*Cout)
    bias_col = jnp.tile(b.astype(jnp.float32), 2).reshape(1, cwide)

    # Kernel 1: deconv matmuls + bias + fused BN statistics.
    y, stats = deconv_fused(xp, wphase, bias_col)
    # y (N, H, 2, W, 2*Cout) == interleaved (N, 2H, 2W, Cout) up to free reshapes.

    # Fold per-column stats to per-channel BN scale/shift (tiny, plain JAX).
    cnt = 4.0 * n * h * w                                     # N * 2H * 2W
    s1 = stats[:, :, 0, :].sum(axis=(0, 1)).reshape(2, cout).sum(axis=0)
    s2 = stats[:, :, 1, :].sum(axis=(0, 1)).reshape(2, cout).sum(axis=0)
    mean_z = s1 / cnt                                         # stats are pre-bias
    var = jnp.maximum(s2 / cnt - mean_z * mean_z, 0.0)        # biased (train BN)
    scale_c = gamma * jax.lax.rsqrt(var + eps)
    shift_c = beta - (mean_z + b) * scale_c
    scale_col = jnp.tile(scale_c, 2).reshape(1, cwide).astype(jnp.float32)
    shift_col = jnp.tile(shift_c, 2).reshape(1, cwide).astype(jnp.float32)

    # Kernel 2: normalize + ReLU on the flat lane-dense view (free reshapes).
    out2 = bn_relu(y.reshape(-1, cwide), scale_col, shift_col, out_dtype)
    return out2.reshape(n, 2 * h, 2 * w, cout)


def soft_share(x_nchw, params, eps=1e-5):
    x = jnp.transpose(x_nchw, (0, 2, 3, 1)).astype(jnp.bfloat16)   # NCHW -> NHWC
    for i, p in enumerate(params):
        last = i == len(params) - 1
        x = deconv_bn_relu_block(x, p["wt"], p["b"], p["g"], p["be"], eps=eps,
                                 out_dtype=jnp.float32 if last else jnp.bfloat16)
    return jnp.transpose(x, (0, 3, 1, 2))                          # NHWC -> NCHW


# ----------------------------------------------------------------------------
# Deterministic synthetic parameters (mirrors weights_init: ConvTranspose
# weight ~ N(0, 0.02); BN weight ~ N(1, 0.02), BN bias = 0).
# ----------------------------------------------------------------------------
def init_params(key, in_channels):
    params = []
    keys = iter(jax.random.split(key, 16))
    cin = in_channels
    for _ in range(2):
        cout = cin // 2
        params.append(dict(
            wt=0.02 * jax.random.normal(next(keys), (cin, cout, 3, 3), jnp.float32),
            b=0.01 * jax.random.normal(next(keys), (cout,), jnp.float32),
            g=1.0 + 0.02 * jax.random.normal(next(keys), (cout,), jnp.float32),
            be=jnp.zeros((cout,), jnp.float32),
        ))
        cin = cout
    return params


def soft_share_reference(x_nchw, params, eps=1e-5):
    """Plain-XLA reference (lhs-dilated conv == ConvTranspose2d) for validation."""
    x = jnp.transpose(x_nchw.astype(jnp.float32), (0, 2, 3, 1))
    for p in params:
        wt = p["wt"]                                             # (Cin, Cout, 3, 3)
        w_conv = jnp.transpose(jnp.flip(wt, (2, 3)), (2, 3, 0, 1))   # HWIO
        y = jax.lax.conv_general_dilated(
            x, w_conv, window_strides=(1, 1), padding=((1, 2), (1, 2)),
            lhs_dilation=(2, 2), dimension_numbers=("NHWC", "HWIO", "NHWC"))
        y = y + p["b"]
        mean = jnp.mean(y, axis=(0, 1, 2))
        var = jnp.var(y, axis=(0, 1, 2))
        y = (y - mean) * p["g"] * jax.lax.rsqrt(var + eps) + p["be"]
        x = jnp.maximum(y, 0.0)
    return jnp.transpose(x, (0, 3, 1, 2))


# ----------------------------------------------------------------------------
if __name__ == "__main__":
    # SoftShare default is in_channels=256; small spatial size keeps it quick.
    N, C, H, W = 2, 256, 8, 8

    x = jax.random.normal(jax.random.PRNGKey(0), (N, C, H, W), jnp.float32)
    params = init_params(jax.random.PRNGKey(1), in_channels=C)

    fwd = jax.jit(soft_share)
    out = jax.block_until_ready(fwd(x, params))

    # Two stride-2 upsamples halving channels each time: C -> C/4, H,W -> 4H,4W.
    assert out.shape == (N, C // 4, 4 * H, 4 * W), out.shape
    assert out.dtype == jnp.float32
    assert bool(jnp.all(jnp.isfinite(out)))
    assert bool(jnp.all(out >= 0.0))          # ReLU output

    # Validate against a plain-XLA f32 reference (bf16 MXU path -> loose tol).
    ref = jax.block_until_ready(jax.jit(soft_share_reference)(x, params))
    max_err = float(jnp.max(jnp.abs(out - ref)))
    assert max_err < 0.1, f"max abs error vs reference: {max_err}"

    print("KERNEL_OK")
</pallas_src>

<mosaic_0001>
module attributes {stable_mosaic.version = 11 : i64} {
  func.func @_deconv_phase_kernel(%arg0: i32, %arg1: i32, %arg2: memref<1x9x9x256xbf16, #tpu.memory_space<vmem>>, %arg3: memref<1x4x256x256xbf16, #tpu.memory_space<vmem>>, %arg4: memref<1x256xf32, #tpu.memory_space<vmem>>, %arg5: memref<1x8x1x8x256xbf16, #tpu.memory_space<vmem>>, %arg6: memref<1x1x2x256xf32, #tpu.memory_space<vmem>>, %arg7: memref<64x256xf32, #tpu.memory_space<vmem>>) attributes {dimension_semantics = [#tpu.dimension_semantics<parallel>, #tpu.dimension_semantics<parallel>], iteration_bounds = array<i64: 2, 2>, scalar_prefetch = 0 : i64, scratch_operands = 1 : i64, tpu.core_type = #tpu.core_type<tc>, window_params = [{transform_indices = @transform_0, window_bounds = array<i64: 1, 9, 9, 256>}, {transform_indices = @transform_1, window_bounds = array<i64: 1, 4, 256, 256>}, {pipeline_mode = #tpu.pipeline_mode<synchronous>, transform_indices = @transform_2, window_bounds = array<i64: 1, 256>}, {transform_indices = @transform_3, window_bounds = array<i64: 1, 8, 1, 8, 256>}, {transform_indices = @transform_4, window_bounds = array<i64: 1, 1, 2, 256>}]} {
    %c0 = arith.constant 0 : index
    %c0_0 = arith.constant 0 : index
    %c0_1 = arith.constant 0 : index
    %c0_2 = arith.constant 0 : index
    %0 = vector.load %arg2[%c0, %c0_0, %c0_1, %c0_2] : memref<1x9x9x256xbf16, #tpu.memory_space<vmem>>, vector<1x8x8x256xbf16>
    %1 = vector.shape_cast %0 : vector<1x8x8x256xbf16> to vector<8x8x256xbf16>
    %2 = vector.shape_cast %1 : vector<8x8x256xbf16> to vector<64x256xbf16>
    %c0_3 = arith.constant 0 : index
    %c0_4 = arith.constant 0 : index
    %c0_5 = arith.constant 0 : index
    %c0_6 = arith.constant 0 : index
    %3 = vector.load %arg3[%c0_3, %c0_4, %c0_5, %c0_6] : memref<1x4x256x256xbf16, #tpu.memory_space<vmem>>, vector<1x1x256x256xbf16>
    %4 = vector.shape_cast %3 : vector<1x1x256x256xbf16> to vector<256x256xbf16>
    %cst = arith.constant dense<0.000000e+00> : vector<64x256xf32>
    %5 = tpu.matmul %2, %4, %cst {dimension_numbers = #tpu.dot_dimension_numbers<[1], [0], [0], [1], [0, 0, 1, 1], [], []>} : vector<64x256xbf16>, vector<256x256xbf16>, vector<64x256xf32> -> vector<64x256xf32>
    %c0_7 = arith.constant 0 : index
    %c0_8 = arith.constant 0 : index
    %c1 = arith.constant 1 : index
    %c0_9 = arith.constant 0 : index
    %6 = vector.load %arg2[%c0_7, %c0_8, %c1, %c0_9] : memref<1x9x9x256xbf16, #tpu.memory_space<vmem>>, vector<1x8x8x256xbf16>
    %7 = vector.shape_cast %6 : vector<1x8x8x256xbf16> to vector<8x8x256xbf16>
    %8 = vector.shape_cast %7 : vector<8x8x256xbf16> to vector<64x256xbf16>
    %c0_10 = arith.constant 0 : index
    %c1_11 = arith.constant 1 : index
    %c0_12 = arith.constant 0 : index
    %c0_13 = arith.constant 0 : index
    %9 = vector.load %arg3[%c0_10, %c1_11, %c0_12, %c0_13] : memref<1x4x256x256xbf16, #tpu.memory_space<vmem>>, vector<1x1x256x256xbf16>
    %10 = vector.shape_cast %9 : vector<1x1x256x256xbf16> to vector<256x256xbf16>
    %cst_14 = arith.constant dense<0.000000e+00> : vector<64x256xf32>
    %11 = tpu.matmul %8, %10, %cst_14 {dimension_numbers = #tpu.dot_dimension_numbers<[1], [0], [0], [1], [0, 0, 1, 1], [], []>} : vector<64x256xbf16>, vector<256x256xbf16>, vector<64x256xf32> -> vector<64x256xf32>
    %12 = arith.addf %5, %11 : vector<64x256xf32>
    %c0_15 = arith.constant 0 : index
    %c0_16 = arith.constant 0 : index
    %13 = vector.load %arg7[%c0_15, %c0_16] : memref<64x256xf32, #tpu.memory_space<vmem>>, vector<64x256xf32>
    tpu.vector_store %arg7[%c0_15, %c0_16], %12 {strides = array<i32>} : memref<64x256xf32, #tpu.memory_space<vmem>>, vector<64x256xf32>,
    %c1_i32 = arith.constant 1 : i32
    %14 = arith.cmpi eq, %arg1, %c1_i32 : i32
    %15 = arith.extui %14 : i1 to i32
    %c0_i32 = arith.constant 0 : i32
    %16 = arith.cmpi ne, %15, %c0_i32 : i32
    scf.if %16 {
      %c0_32 = arith.constant 0 : index
      %c0_33 = arith.constant 0 : index
      %32 = vector.load %arg7[%c0_32, %c0_33] : memref<64x256xf32, #tpu.memory_space<vmem>>, vector<64x256xf32>
      %c0_34 = arith.constant 0 : index
      %c1_35 = arith.constant 1 : index
      %c0_36 = arith.constant 0 : index
      %c0_37 = arith.constant 0 : index
      %33 = vector.load %arg2[%c0_34, %c1_35, %c0_36, %c0_37] : memref<1x9x9x256xbf16, #tpu.memory_space<vmem>>, vector<1x8x8x256xbf16>
      %34 = vector.shape_cast %33 : vector<1x8x8x256xbf16> to vector<8x8x256xbf16>
      %35 = vector.shape_cast %34 : vector<8x8x256xbf16> to vector<64x256xbf16>
      %c0_38 = arith.constant 0 : index
      %c2 = arith.constant 2 : index
      %c0_39 = arith.constant 0 : index
      %c0_40 = arith.constant 0 : index
      %36 = vector.load %arg3[%c0_38, %c2, %c0_39, %c0_40] : memref<1x4x256x256xbf16, #tpu.memory_space<vmem>>, vector<1x1x256x256xbf16>
      %37 = vector.shape_cast %36 : vector<1x1x256x256xbf16> to vector<256x256xbf16>
      %cst_41 = arith.constant dense<0.000000e+00> : vector<64x256xf32>
      %38 = tpu.matmul %35, %37, %cst_41 {dimension_numbers = #tpu.dot_dimension_numbers<[1], [0], [0], [1], [0, 0, 1, 1], [], []>} : vector<64x256xbf16>, vector<256x256xbf16>, vector<64x256xf32> -> vector<64x256xf32>
      %c0_42 = arith.constant 0 : index
      %c1_43 = arith.constant 1 : index
      %c1_44 = arith.constant 1 : index
      %c0_45 = arith.constant 0 : index
      %39 = vector.load %arg2[%c0_42, %c1_43, %c1_44, %c0_45] : memref<1x9x9x256xbf16, #tpu.memory_space<vmem>>, vector<1x8x8x256xbf16>
      %40 = vector.shape_cast %39 : vector<1x8x8x256xbf16> to vector<8x8x256xbf16>
      %41 = vector.shape_cast %40 : vector<8x8x256xbf16> to vector<64x256xbf16>
      %c0_46 = arith.constant 0 : index
      %c3 = arith.constant 3 : index
      %c0_47 = arith.constant 0 : index
      %c0_48 = arith.constant 0 : index
      %42 = vector.load %arg3[%c0_46, %c3, %c0_47, %c0_48] : memref<1x4x256x256xbf16, #tpu.memory_space<vmem>>, vector<1x1x256x256xbf16>
      %43 = vector.shape_cast %42 : vector<1x1x256x256xbf16> to vector<256x256xbf16>
      %cst_49 = arith.constant dense<0.000000e+00> : vector<64x256xf32>
      %44 = tpu.matmul %41, %43, %cst_49 {dimension_numbers = #tpu.dot_dimension_numbers<[1], [0], [0], [1], [0, 0, 1, 1], [], []>} : vector<64x256xbf16>, vector<256x256xbf16>, vector<64x256xf32> -> vector<64x256xf32>
      %45 = arith.addf %38, %44 : vector<64x256xf32>
      %46 = arith.addf %32, %45 : vector<64x256xf32>
      %c0_50 = arith.constant 0 : index
      %c0_51 = arith.constant 0 : index
      %47 = vector.load %arg7[%c0_50, %c0_51] : memref<64x256xf32, #tpu.memory_space<vmem>>, vector<64x256xf32>
      tpu.vector_store %arg7[%c0_50, %c0_51], %46 {strides = array<i32>} : memref<64x256xf32, #tpu.memory_space<vmem>>, vector<64x256xf32>,
    } else {
    }
    %c0_17 = arith.constant 0 : index
    %c0_18 = arith.constant 0 : index
    %17 = vector.load %arg7[%c0_17, %c0_18] : memref<64x256xf32, #tpu.memory_space<vmem>>, vector<64x256xf32>
    %cst_19 = arith.constant dense<0.000000e+00> : vector<256xf32>
    %18 = vector.multi_reduction <add>, %17, %cst_19 [0] : vector<64x256xf32> to vector<256xf32>
    %19 = vector.shape_cast %18 : vector<256xf32> to vector<1x256xf32>
    %20 = arith.mulf %17, %17 : vector<64x256xf32>
    %cst_20 = arith.constant dense<0.000000e+00> : vector<256xf32>
    %21 = vector.multi_reduction <add>, %20, %cst_20 [0] : vector<64x256xf32> to vector<256xf32>
    %22 = vector.shape_cast %21 : vector<256xf32> to vector<1x256xf32>
    %23 = tpu.concatenate %19, %22 in 0 : vector<1x256xf32>, vector<1x256xf32> -> vector<2x256xf32>
    %24 = vector.shape_cast %23 : vector<2x256xf32> to vector<1x1x2x256xf32>
    %c0_21 = arith.constant 0 : index
    %c0_22 = arith.constant 0 : index
    %c0_23 = arith.constant 0 : index
    %c0_24 = arith.constant 0 : index
    %25 = vector.load %arg6[%c0_21, %c0_22, %c0_23, %c0_24] : memref<1x1x2x256xf32, #tpu.memory_space<vmem>>, vector<1x1x2x256xf32>
    tpu.vector_store %arg6[%c0_21, %c0_22, %c0_23, %c0_24], %24 {strides = array<i32>} : memref<1x1x2x256xf32, #tpu.memory_space<vmem>>, vector<1x1x2x256xf32>,
    %c0_25 = arith.constant 0 : index
    %c0_26 = arith.constant 0 : index
    %26 = vector.load %arg4[%c0_25, %c0_26] : memref<1x256xf32, #tpu.memory_space<vmem>>, vector<1x256xf32>
    %27 = vector.broadcast %26 : vector<1x256xf32> to vector<64x256xf32>
    %28 = arith.addf %17, %27 : vector<64x256xf32>
    %29 = vector.shape_cast %28 : vector<64x256xf32> to vector<1x8x1x8x256xf32>
    %30 = arith.truncf %29 : vector<1x8x1x8x256xf32> to vector<1x8x1x8x256xbf16>
    %c0_27 = arith.constant 0 : index
    %c0_28 = arith.constant 0 : index
    %c0_29 = arith.constant 0 : index
    %c0_30 = arith.constant 0 : index
    %c0_31 = arith.constant 0 : index
    %31 = vector.load %arg5[%c0_27, %c0_28, %c0_29, %c0_30, %c0_31] : memref<1x8x1x8x256xbf16, #tpu.memory_space<vmem>>, vector<1x8x1x8x256xbf16>
    tpu.vector_store %arg5[%c0_27, %c0_28, %c0_29, %c0_30, %c0_31], %30 {strides = array<i32>} : memref<1x8x1x8x256xbf16, #tpu.memory_space<vmem>>, vector<1x8x1x8x256xbf16>,
    return
  }
  func.func @transform_0(%arg0: i32, %arg1: i32) -> (i32, i32, i32, i32) {
    %c0_i32 = arith.constant 0 : i32
    %c0_i32_0 = arith.constant 0 : i32
    %c0_i32_1 = arith.constant 0 : i32
    %c0_i32_2 = arith.constant 0 : i32
    return %arg0, %c0_i32, %c0_i32_0, %c0_i32_1 : i32, i32, i32, i32
  }
  func.func @transform_1(%arg0: i32, %arg1: i32) -> (i32, i32, i32, i32) {
    %c0_i32 = arith.constant 0 : i32
    %c0_i32_0 = arith.constant 0 : i32
    %c0_i32_1 = arith.constant 0 : i32
    %c0_i32_2 = arith.constant 0 : i32
    return %arg1, %c0_i32, %c0_i32_0, %c0_i32_1 : i32, i32, i32, i32
  }
  func.func @transform_2(%arg0: i32, %arg1: i32) -> (i32, i32) {
    %c0_i32 = arith.constant 0 : i32
    %c0_i32_0 = arith.constant 0 : i32
    %c0_i32_1 = arith.constant 0 : i32
    return %c0_i32, %c0_i32_0 : i32, i32
  }
  func.func @transform_3(%arg0: i32, %arg1: i32) -> (i32, i32, i32, i32, i32) {
    %c0_i32 = arith.constant 0 : i32
    %c0_i32_0 = arith.constant 0 : i32
    %c0_i32_1 = arith.constant 0 : i32
    %c0_i32_2 = arith.constant 0 : i32
    return %arg0, %c0_i32, %arg1, %c0_i32_0, %c0_i32_1 : i32, i32, i32, i32, i32
  }
  func.func @transform_4(%arg0: i32, %arg1: i32) -> (i32, i32, i32, i32) {
    %c0_i32 = arith.constant 0 : i32
    %c0_i32_0 = arith.constant 0 : i32
    %c0_i32_1 = arith.constant 0 : i32
    return %arg0, %arg1, %c0_i32, %c0_i32_0 : i32, i32, i32, i32
  }
}

module attributes {stable_mosaic.version = 11 : i64} {
  func.func @_bn_relu_kernel(%arg0: i32, %arg1: memref<128x256xbf16, #tpu.memory_space<vmem>>, %arg2: memref<1x256xf32, #tpu.memory_space<vmem>>, %arg3: memref<1x256xf32, #tpu.memory_space<vmem>>, %arg4: memref<128x256xbf16, #tpu.memory_space<vmem>>) attributes {dimension_semantics = [#tpu.dimension_semantics<parallel>], iteration_bounds = array<i64: 2>, scalar_prefetch = 0 : i64, scratch_operands = 0 : i64, tpu.core_type = #tpu.core_type<tc>, window_params = [{transform_indices = @transform_0, window_bounds = array<i64: 128, 256>}, {pipeline_mode = #tpu.pipeline_mode<synchronous>, transform_indices = @transform_1, window_bounds = array<i64: 1, 256>}, {pipeline_mode = #tpu.pipeline_mode<synchronous>, transform_indices = @transform_2, window_bounds = array<i64: 1, 256>}, {transform_indices = @transform_3, window_bounds = array<i64: 128, 256>}]} {
    %c0 = arith.constant 0 : index
    %c0_0 = arith.constant 0 : index
    %0 = vector.load %arg1[%c0, %c0_0] : memref<128x256xbf16, #tpu.memory_space<vmem>>, vector<128x256xbf16>
    %1 = arith.extf %0 : vector<128x256xbf16> to vector<128x256xf32>
    %c0_1 = arith.constant 0 : index
    %c0_2 = arith.constant 0 : index
    %2 = vector.load %arg2[%c0_1, %c0_2] : memref<1x256xf32, #tpu.memory_space<vmem>>, vector<1x256xf32>
    %3 = vector.broadcast %2 : vector<1x256xf32> to vector<128x256xf32>
    %4 = arith.mulf %1, %3 : vector<128x256xf32>
    %c0_3 = arith.constant 0 : index
    %c0_4 = arith.constant 0 : index
    %5 = vector.load %arg3[%c0_3, %c0_4] : memref<1x256xf32, #tpu.memory_space<vmem>>, vector<1x256xf32>
    %6 = vector.broadcast %5 : vector<1x256xf32> to vector<128x256xf32>
    %7 = arith.addf %4, %6 : vector<128x256xf32>
    %cst = arith.constant 0.000000e+00 : f32
    %8 = vector.broadcast %cst : f32 to vector<128x256xf32>
    %9 = arith.maximumf %7, %8 : vector<128x256xf32>
    %10 = arith.truncf %9 : vector<128x256xf32> to vector<128x256xbf16>
    %c0_5 = arith.constant 0 : index
    %c0_6 = arith.constant 0 : index
    %11 = vector.load %arg4[%c0_5, %c0_6] : memref<128x256xbf16, #tpu.memory_space<vmem>>, vector<128x256xbf16>
    tpu.vector_store %arg4[%c0_5, %c0_6], %10 {strides = array<i32>} : memref<128x256xbf16, #tpu.memory_space<vmem>>, vector<128x256xbf16>,
    return
  }
  func.func @transform_0(%arg0: i32) -> (i32, i32) {
    %c0_i32 = arith.constant 0 : i32
    %c0_i32_0 = arith.constant 0 : i32
    return %arg0, %c0_i32 : i32, i32
  }
  func.func @transform_1(%arg0: i32) -> (i32, i32) {
    %c0_i32 = arith.constant 0 : i32
    %c0_i32_0 = arith.constant 0 : i32
    %c0_i32_1 = arith.constant 0 : i32
    return %c0_i32, %c0_i32_0 : i32, i32
  }
  func.func @transform_2(%arg0: i32) -> (i32, i32) {
    %c0_i32 = arith.constant 0 : i32
    %c0_i32_0 = arith.constant 0 : i32
    %c0_i32_1 = arith.constant 0 : i32
    return %c0_i32, %c0_i32_0 : i32, i32
  }
  func.func @transform_3(%arg0: i32) -> (i32, i32) {
    %c0_i32 = arith.constant 0 : i32
    %c0_i32_0 = arith.constant 0 : i32
    return %arg0, %c0_i32 : i32, i32
  }
}

module attributes {stable_mosaic.version = 11 : i64} {
  func.func @_deconv_phase_kernel(%arg0: i32, %arg1: i32, %arg2: memref<1x17x17x128xbf16, #tpu.memory_space<vmem>>, %arg3: memref<1x4x128x128xbf16, #tpu.memory_space<vmem>>, %arg4: memref<1x128xf32, #tpu.memory_space<vmem>>, %arg5: memref<1x16x1x16x128xbf16, #tpu.memory_space<vmem>>, %arg6: memref<1x1x2x128xf32, #tpu.memory_space<vmem>>, %arg7: memref<256x128xf32, #tpu.memory_space<vmem>>) attributes {dimension_semantics = [#tpu.dimension_semantics<parallel>, #tpu.dimension_semantics<parallel>], iteration_bounds = array<i64: 2, 2>, scalar_prefetch = 0 : i64, scratch_operands = 1 : i64, tpu.core_type = #tpu.core_type<tc>, window_params = [{transform_indices = @transform_0, window_bounds = array<i64: 1, 17, 17, 128>}, {transform_indices = @transform_1, window_bounds = array<i64: 1, 4, 128, 128>}, {pipeline_mode = #tpu.pipeline_mode<synchronous>, transform_indices = @transform_2, window_bounds = array<i64: 1, 128>}, {transform_indices = @transform_3, window_bounds = array<i64: 1, 16, 1, 16, 128>}, {transform_indices = @transform_4, window_bounds = array<i64: 1, 1, 2, 128>}]} {
    %c0 = arith.constant 0 : index
    %c0_0 = arith.constant 0 : index
    %c0_1 = arith.constant 0 : index
    %c0_2 = arith.constant 0 : index
    %0 = vector.load %arg2[%c0, %c0_0, %c0_1, %c0_2] : memref<1x17x17x128xbf16, #tpu.memory_space<vmem>>, vector<1x16x16x128xbf16>
    %1 = vector.shape_cast %0 : vector<1x16x16x128xbf16> to vector<16x16x128xbf16>
    %2 = vector.shape_cast %1 : vector<16x16x128xbf16> to vector<256x128xbf16>
    %c0_3 = arith.constant 0 : index
    %c0_4 = arith.constant 0 : index
    %c0_5 = arith.constant 0 : index
    %c0_6 = arith.constant 0 : index
    %3 = vector.load %arg3[%c0_3, %c0_4, %c0_5, %c0_6] : memref<1x4x128x128xbf16, #tpu.memory_space<vmem>>, vector<1x1x128x128xbf16>
    %4 = vector.shape_cast %3 : vector<1x1x128x128xbf16> to vector<128x128xbf16>
    %cst = arith.constant dense<0.000000e+00> : vector<256x128xf32>
    %5 = tpu.matmul %2, %4, %cst {dimension_numbers = #tpu.dot_dimension_numbers<[1], [0], [0], [1], [0, 0, 1, 1], [], []>} : vector<256x128xbf16>, vector<128x128xbf16>, vector<256x128xf32> -> vector<256x128xf32>
    %c0_7 = arith.constant 0 : index
    %c0_8 = arith.constant 0 : index
    %c1 = arith.constant 1 : index
    %c0_9 = arith.constant 0 : index
    %6 = vector.load %arg2[%c0_7, %c0_8, %c1, %c0_9] : memref<1x17x17x128xbf16, #tpu.memory_space<vmem>>, vector<1x16x16x128xbf16>
    %7 = vector.shape_cast %6 : vector<1x16x16x128xbf16> to vector<16x16x128xbf16>
    %8 = vector.shape_cast %7 : vector<16x16x128xbf16> to vector<256x128xbf16>
    %c0_10 = arith.constant 0 : index
    %c1_11 = arith.constant 1 : index
    %c0_12 = arith.constant 0 : index
    %c0_13 = arith.constant 0 : index
    %9 = vector.load %arg3[%c0_10, %c1_11, %c0_12, %c0_13] : memref<1x4x128x128xbf16, #tpu.memory_space<vmem>>, vector<1x1x128x128xbf16>
    %10 = vector.shape_cast %9 : vector<1x1x128x128xbf16> to vector<128x128xbf16>
    %cst_14 = arith.constant dense<0.000000e+00> : vector<256x128xf32>
    %11 = tpu.matmul %8, %10, %cst_14 {dimension_numbers = #tpu.dot_dimension_numbers<[1], [0], [0], [1], [0, 0, 1, 1], [], []>} : vector<256x128xbf16>, vector<128x128xbf16>, vector<256x128xf32> -> vector<256x128xf32>
    %12 = arith.addf %5, %11 : vector<256x128xf32>
    %c0_15 = arith.constant 0 : index
    %c0_16 = arith.constant 0 : index
    %13 = vector.load %arg7[%c0_15, %c0_16] : memref<256x128xf32, #tpu.memory_space<vmem>>, vector<256x128xf32>
    tpu.vector_store %arg7[%c0_15, %c0_16], %12 {strides = array<i32>} : memref<256x128xf32, #tpu.memory_space<vmem>>, vector<256x128xf32>,
    %c1_i32 = arith.constant 1 : i32
    %14 = arith.cmpi eq, %arg1, %c1_i32 : i32
    %15 = arith.extui %14 : i1 to i32
    %c0_i32 = arith.constant 0 : i32
    %16 = arith.cmpi ne, %15, %c0_i32 : i32
    scf.if %16 {
      %c0_32 = arith.constant 0 : index
      %c0_33 = arith.constant 0 : index
      %32 = vector.load %arg7[%c0_32, %c0_33] : memref<256x128xf32, #tpu.memory_space<vmem>>, vector<256x128xf32>
      %c0_34 = arith.constant 0 : index
      %c1_35 = arith.constant 1 : index
      %c0_36 = arith.constant 0 : index
      %c0_37 = arith.constant 0 : index
      %33 = vector.load %arg2[%c0_34, %c1_35, %c0_36, %c0_37] : memref<1x17x17x128xbf16, #tpu.memory_space<vmem>>, vector<1x16x16x128xbf16>
      %34 = vector.shape_cast %33 : vector<1x16x16x128xbf16> to vector<16x16x128xbf16>
      %35 = vector.shape_cast %34 : vector<16x16x128xbf16> to vector<256x128xbf16>
      %c0_38 = arith.constant 0 : index
      %c2 = arith.constant 2 : index
      %c0_39 = arith.constant 0 : index
      %c0_40 = arith.constant 0 : index
      %36 = vector.load %arg3[%c0_38, %c2, %c0_39, %c0_40] : memref<1x4x128x128xbf16, #tpu.memory_space<vmem>>, vector<1x1x128x128xbf16>
      %37 = vector.shape_cast %36 : vector<1x1x128x128xbf16> to vector<128x128xbf16>
      %cst_41 = arith.constant dense<0.000000e+00> : vector<256x128xf32>
      %38 = tpu.matmul %35, %37, %cst_41 {dimension_numbers = #tpu.dot_dimension_numbers<[1], [0], [0], [1], [0, 0, 1, 1], [], []>} : vector<256x128xbf16>, vector<128x128xbf16>, vector<256x128xf32> -> vector<256x128xf32>
      %c0_42 = arith.constant 0 : index
      %c1_43 = arith.constant 1 : index
      %c1_44 = arith.constant 1 : index
      %c0_45 = arith.constant 0 : index
      %39 = vector.load %arg2[%c0_42, %c1_43, %c1_44, %c0_45] : memref<1x17x17x128xbf16, #tpu.memory_space<vmem>>, vector<1x16x16x128xbf16>
      %40 = vector.shape_cast %39 : vector<1x16x16x128xbf16> to vector<16x16x128xbf16>
      %41 = vector.shape_cast %40 : vector<16x16x128xbf16> to vector<256x128xbf16>
      %c0_46 = arith.constant 0 : index
      %c3 = arith.constant 3 : index
      %c0_47 = arith.constant 0 : index
      %c0_48 = arith.constant 0 : index
      %42 = vector.load %arg3[%c0_46, %c3, %c0_47, %c0_48] : memref<1x4x128x128xbf16, #tpu.memory_space<vmem>>, vector<1x1x128x128xbf16>
      %43 = vector.shape_cast %42 : vector<1x1x128x128xbf16> to vector<128x128xbf16>
      %cst_49 = arith.constant dense<0.000000e+00> : vector<256x128xf32>
      %44 = tpu.matmul %41, %43, %cst_49 {dimension_numbers = #tpu.dot_dimension_numbers<[1], [0], [0], [1], [0, 0, 1, 1], [], []>} : vector<256x128xbf16>, vector<128x128xbf16>, vector<256x128xf32> -> vector<256x128xf32>
      %45 = arith.addf %38, %44 : vector<256x128xf32>
      %46 = arith.addf %32, %45 : vector<256x128xf32>
      %c0_50 = arith.constant 0 : index
      %c0_51 = arith.constant 0 : index
      %47 = vector.load %arg7[%c0_50, %c0_51] : memref<256x128xf32, #tpu.memory_space<vmem>>, vector<256x128xf32>
      tpu.vector_store %arg7[%c0_50, %c0_51], %46 {strides = array<i32>} : memref<256x128xf32, #tpu.memory_space<vmem>>, vector<256x128xf32>,
    } else {
    }
    %c0_17 = arith.constant 0 : index
    %c0_18 = arith.constant 0 : index
    %17 = vector.load %arg7[%c0_17, %c0_18] : memref<256x128xf32, #tpu.memory_space<vmem>>, vector<256x128xf32>
    %cst_19 = arith.constant dense<0.000000e+00> : vector<128xf32>
    %18 = vector.multi_reduction <add>, %17, %cst_19 [0] : vector<256x128xf32> to vector<128xf32>
    %19 = vector.shape_cast %18 : vector<128xf32> to vector<1x128xf32>
    %20 = arith.mulf %17, %17 : vector<256x128xf32>
    %cst_20 = arith.constant dense<0.000000e+00> : vector<128xf32>
    %21 = vector.multi_reduction <add>, %20, %cst_20 [0] : vector<256x128xf32> to vector<128xf32>
    %22 = vector.shape_cast %21 : vector<128xf32> to vector<1x128xf32>
    %23 = tpu.concatenate %19, %22 in 0 : vector<1x128xf32>, vector<1x128xf32> -> vector<2x128xf32>
    %24 = vector.shape_cast %23 : vector<2x128xf32> to vector<1x1x2x128xf32>
    %c0_21 = arith.constant 0 : index
    %c0_22 = arith.constant 0 : index
    %c0_23 = arith.constant 0 : index
    %c0_24 = arith.constant 0 : index
    %25 = vector.load %arg6[%c0_21, %c0_22, %c0_23, %c0_24] : memref<1x1x2x128xf32, #tpu.memory_space<vmem>>, vector<1x1x2x128xf32>
    tpu.vector_store %arg6[%c0_21, %c0_22, %c0_23, %c0_24], %24 {strides = array<i32>} : memref<1x1x2x128xf32, #tpu.memory_space<vmem>>, vector<1x1x2x128xf32>,
    %c0_25 = arith.constant 0 : index
    %c0_26 = arith.constant 0 : index
    %26 = vector.load %arg4[%c0_25, %c0_26] : memref<1x128xf32, #tpu.memory_space<vmem>>, vector<1x128xf32>
    %27 = vector.broadcast %26 : vector<1x128xf32> to vector<256x128xf32>
    %28 = arith.addf %17, %27 : vector<256x128xf32>
    %29 = vector.shape_cast %28 : vector<256x128xf32> to vector<1x16x1x16x128xf32>
    %30 = arith.truncf %29 : vector<1x16x1x16x128xf32> to vector<1x16x1x16x128xbf16>
    %c0_27 = arith.constant 0 : index
    %c0_28 = arith.constant 0 : index
    %c0_29 = arith.constant 0 : index
    %c0_30 = arith.constant 0 : index
    %c0_31 = arith.constant 0 : index
    %31 = vector.load %arg5[%c0_27, %c0_28, %c0_29, %c0_30, %c0_31] : memref<1x16x1x16x128xbf16, #tpu.memory_space<vmem>>, vector<1x16x1x16x128xbf16>
    tpu.vector_store %arg5[%c0_27, %c0_28, %c0_29, %c0_30, %c0_31], %30 {strides = array<i32>} : memref<1x16x1x16x128xbf16, #tpu.memory_space<vmem>>, vector<1x16x1x16x128xbf16>,
    return
  }
  func.func @transform_0(%arg0: i32, %arg1: i32) -> (i32, i32, i32, i32) {
    %c0_i32 = arith.constant 0 : i32
    %c0_i32_0 = arith.constant 0 : i32
    %c0_i32_1 = arith.constant 0 : i32
    %c0_i32_2 = arith.constant 0 : i32
    return %arg0, %c0_i32, %c0_i32_0, %c0_i32_1 : i32, i32, i32, i32
  }
  func.func @transform_1(%arg0: i32, %arg1: i32) -> (i32, i32, i32, i32) {
    %c0_i32 = arith.constant 0 : i32
    %c0_i32_0 = arith.constant 0 : i32
    %c0_i32_1 = arith.constant 0 : i32
    %c0_i32_2 = arith.constant 0 : i32
    return %arg1, %c0_i32, %c0_i32_0, %c0_i32_1 : i32, i32, i32, i32
  }
  func.func @transform_2(%arg0: i32, %arg1: i32) -> (i32, i32) {
    %c0_i32 = arith.constant 0 : i32
    %c0_i32_0 = arith.constant 0 : i32
    %c0_i32_1 = arith.constant 0 : i32
    return %c0_i32, %c0_i32_0 : i32, i32
  }
  func.func @transform_3(%arg0: i32, %arg1: i32) -> (i32, i32, i32, i32, i32) {
    %c0_i32 = arith.constant 0 : i32
    %c0_i32_0 = arith.constant 0 : i32
    %c0_i32_1 = arith.constant 0 : i32
    %c0_i32_2 = arith.constant 0 : i32
    return %arg0, %c0_i32, %arg1, %c0_i32_0, %c0_i32_1 : i32, i32, i32, i32, i32
  }
  func.func @transform_4(%arg0: i32, %arg1: i32) -> (i32, i32, i32, i32) {
    %c0_i32 = arith.constant 0 : i32
    %c0_i32_0 = arith.constant 0 : i32
    %c0_i32_1 = arith.constant 0 : i32
    return %arg0, %arg1, %c0_i32, %c0_i32_0 : i32, i32, i32, i32
  }
}

module attributes {stable_mosaic.version = 11 : i64} {
  func.func @_bn_relu_kernel(%arg0: i32, %arg1: memref<512x128xbf16, #tpu.memory_space<vmem>>, %arg2: memref<1x128xf32, #tpu.memory_space<vmem>>, %arg3: memref<1x128xf32, #tpu.memory_space<vmem>>, %arg4: memref<512x128xf32, #tpu.memory_space<vmem>>) attributes {dimension_semantics = [#tpu.dimension_semantics<parallel>], iteration_bounds = array<i64: 2>, scalar_prefetch = 0 : i64, scratch_operands = 0 : i64, tpu.core_type = #tpu.core_type<tc>, window_params = [{transform_indices = @transform_0, window_bounds = array<i64: 512, 128>}, {pipeline_mode = #tpu.pipeline_mode<synchronous>, transform_indices = @transform_1, window_bounds = array<i64: 1, 128>}, {pipeline_mode = #tpu.pipeline_mode<synchronous>, transform_indices = @transform_2, window_bounds = array<i64: 1, 128>}, {transform_indices = @transform_3, window_bounds = array<i64: 512, 128>}]} {
    %c0 = arith.constant 0 : index
    %c0_0 = arith.constant 0 : index
    %0 = vector.load %arg1[%c0, %c0_0] : memref<512x128xbf16, #tpu.memory_space<vmem>>, vector<512x128xbf16>
    %1 = arith.extf %0 : vector<512x128xbf16> to vector<512x128xf32>
    %c0_1 = arith.constant 0 : index
    %c0_2 = arith.constant 0 : index
    %2 = vector.load %arg2[%c0_1, %c0_2] : memref<1x128xf32, #tpu.memory_space<vmem>>, vector<1x128xf32>
    %3 = vector.broadcast %2 : vector<1x128xf32> to vector<512x128xf32>
    %4 = arith.mulf %1, %3 : vector<512x128xf32>
    %c0_3 = arith.constant 0 : index
    %c0_4 = arith.constant 0 : index
    %5 = vector.load %arg3[%c0_3, %c0_4] : memref<1x128xf32, #tpu.memory_space<vmem>>, vector<1x128xf32>
    %6 = vector.broadcast %5 : vector<1x128xf32> to vector<512x128xf32>
    %7 = arith.addf %4, %6 : vector<512x128xf32>
    %cst = arith.constant 0.000000e+00 : f32
    %8 = vector.broadcast %cst : f32 to vector<512x128xf32>
    %9 = arith.maximumf %7, %8 : vector<512x128xf32>
    %c0_5 = arith.constant 0 : index
    %c0_6 = arith.constant 0 : index
    %10 = vector.load %arg4[%c0_5, %c0_6] : memref<512x128xf32, #tpu.memory_space<vmem>>, vector<512x128xf32>
    tpu.vector_store %arg4[%c0_5, %c0_6], %9 {strides = array<i32>} : memref<512x128xf32, #tpu.memory_space<vmem>>, vector<512x128xf32>,
    return
  }
  func.func @transform_0(%arg0: i32) -> (i32, i32) {
    %c0_i32 = arith.constant 0 : i32
    %c0_i32_0 = arith.constant 0 : i32
    return %arg0, %c0_i32 : i32, i32
  }
  func.func @transform_1(%arg0: i32) -> (i32, i32) {
    %c0_i32 = arith.constant 0 : i32
    %c0_i32_0 = arith.constant 0 : i32
    %c0_i32_1 = arith.constant 0 : i32
    return %c0_i32, %c0_i32_0 : i32, i32
  }
  func.func @transform_2(%arg0: i32) -> (i32, i32) {
    %c0_i32 = arith.constant 0 : i32
    %c0_i32_0 = arith.constant 0 : i32
    %c0_i32_1 = arith.constant 0 : i32
    return %c0_i32, %c0_i32_0 : i32, i32
  }
  func.func @transform_3(%arg0: i32) -> (i32, i32) {
    %c0_i32 = arith.constant 0 : i32
    %c0_i32_0 = arith.constant 0 : i32
    return %arg0, %c0_i32 : i32, i32
  }
}

</mosaic_0001>

<bundles_post_ra>
// kernel: tile.33
= control target key start
LH: loop header
LB: loop body
LE: loop exit
PB: predicated region body
PF: predicated region fallthrough
CT: control target
= control target key end

     0   :  { %s22_s0 = inlined_call_operand.vmem [shape: f32[128], index: 0, kind: input, shape index: {}]   ;;  %s23_s1 = inlined_call_operand.vmem [shape: f32[2,128], index: 1, kind: output, shape index: {}]  }
   0x1   :  { %v4_v0 = vld [vmem:[%s22_s0] ss:$0 sm:$0xff] }
   0x2   :  { %5 = vst [vmem:[%s23_s1] sm:$0x3] %v4_v0 }

// kernel: soft_share.5
= control target key start
LH: loop header
LB: loop body
LE: loop exit
PB: predicated region body
PF: predicated region fallthrough
CT: control target
= control target key end

     0   :  { %s600_s12 = smov 0   ;;  %s738_s0 = inlined_call_operand.vmem [shape: bf16[256,256], index: 0, kind: input, shape index: {}]   ;;  %s739_s1 = inlined_call_operand.vmem [shape: f32[1,256], index: 1, kind: input, shape index: {}]   ;;  %s740_s2 = inlined_call_operand.vmem [shape: f32[1,256], index: 2, kind: input, shape index: {}]   ;;  %s741_s3 = inlined_call_operand.vmem [shape: bf16[256,256], index: 3, kind: output, shape index: {}]  }
   0x1 LB: > { %s517_s13 = sadd.s32 4294967295, %s578_s12   ;;  %p521_p0 = scmp.ge.s32.totalorder %s578_s12, 1  ;;  %s578_s12 = sphi %s600_s12, %s13_s12  }
   0x2   : > { %p139_p1 = scmp.lt.s32.totalorder %s578_s12, 3 }
   0x4   : > { %p140_p2 = pnand %p521_p0, %p139_p1 }
   0x5   : > { %s522_s14 = sshll.u32 (!%p140_p2), %s517_s13, 4  ;;  %v229_v0 = vlaneseq (!%p140_p2)  ;;  %v227_v2 = vld [vmem:[%s739_s1] sm:$0x3] (!%p140_p2) }
   0x6   : > { %143 = sbr.rel (%p140_p2) target bundleno = 59 (0x3b), region = 32  ;;  %p166_p3 = scmp.lt.s32.totalorder (!%p140_p2), %s522_s14, 31  ;;  %v271_v5 = vld [vmem:[%s740_s2] sm:$0x3] (!%p140_p2) }
   0x7   : > { %v230_v1 = vshrl.u32 (!%p140_p2), %v229_v0, 7 }
   0x9   : > { %v231_v3 = vsub.s32 (!%p140_p2), 0, %v230_v1  ;;  %v235_v4 = vsub.s32 (!%p140_p2), 1, %v230_v1 }
   0xb   : > { %v624_v6 = vrot.slane (!%p140_p2), %v227_v2, %v231_v3  ;;  %v626_v7 = vrot.slane (!%p140_p2), %v227_v2, %v235_v4  ;;  %v629_v9 = vrot.slane (!%p140_p2), %v271_v5, %v231_v3  ;;  %v631_v10 = vrot.slane (!%p140_p2), %v271_v5, %v235_v4 }
   0xd   : > { %s743_s14 = smov (!%p166_p3, %s522_s14), 31 }
   0xe   : > { %s546_s19 = sshll.u32 %s743_s14, 3 }
   0xf   : > { %s622_s22 = scalar_lea.vmem %s738_s0, %s546_s19  ;;  %s659_s25 = scalar_lea.vmem %s741_s3, %s546_s19 }
  0x10   : > { %v179_v8 = vld [vmem:[%s622_s22] sm:$0xff]  ;;  %v180_v11 = vld [vmem:[%s622_s22 + $0x8] sm:$0xff]  ;;  %v181_v12 = vld [vmem:[%s622_s22 + $0x10] sm:$0xff] }
  0x11   : > { %v195_v13 = vunpack.c.l.bf16 %v179_v8  ;;  %v196_v14 = vunpack.c.h.bf16 %v179_v8  ;;  %v197_v15 = vunpack.c.l.bf16 %v180_v11  ;;  %v198_v16 = vunpack.c.h.bf16 %v180_v11  ;;  %v182_v17 = vld [vmem:[%s622_s22 + $0x18] sm:$0xff]  ;;  %v183_v38 = vld [vmem:[%s622_s22 + $0x20] sm:$0xff]  ;;  %v184_v43 = vld [vmem:[%s622_s22 + $0x28] sm:$0xff] }
  0x12   : > { %v199_v18 = vunpack.c.l.bf16 %v181_v12  ;;  %v200_v19 = vunpack.c.h.bf16 %v181_v12  ;;  %v201_v20 = vunpack.c.l.bf16 %v182_v17  ;;  %v202_v21 = vunpack.c.h.bf16 %v182_v17  ;;  %v185_v48 = vld [vmem:[%s622_s22 + $0x30] sm:$0xff]  ;;  %v186_v53 = vld [vmem:[%s622_s22 + $0x38] sm:$0xff] }
  0x13   : > { %v239_v22 = vmul.f32 %v624_v6, %v195_v13  ;;  %v240_v23 = vmul.f32 %v626_v7, %v196_v14  ;;  %v241_v24 = vmul.f32 %v624_v6, %v197_v15  ;;  %v242_v25 = vmul.f32 %v626_v7, %v198_v16  ;;  %v187_v14 = vld [vmem:[%s622_s22 + $0x40] sm:$0xff] }
  0x14   : > { %v243_v26 = vmul.f32 %v624_v6, %v199_v18  ;;  %v244_v27 = vmul.f32 %v626_v7, %v200_v19  ;;  %v245_v28 = vmul.f32 %v624_v6, %v201_v20  ;;  %v246_v29 = vmul.f32 %v626_v7, %v202_v21 }
  0x15   : > { %v283_v30 = vadd.f32 %v629_v9, %v239_v22  ;;  %v284_v31 = vadd.f32 %v631_v10, %v240_v23  ;;  %v285_v32 = vadd.f32 %v629_v9, %v241_v24  ;;  %v286_v33 = vadd.f32 %v631_v10, %v242_v25  ;;  %v188_v23 = vld [vmem:[%s622_s22 + $0x48] sm:$0xff] }
  0x16   : > { %v287_v34 = vadd.f32 %v629_v9, %v243_v26  ;;  %v288_v35 = vadd.f32 %v631_v10, %v244_v27  ;;  %v289_v36 = vadd.f32 %v629_v9, %v245_v28  ;;  %v290_v37 = vadd.f32 %v631_v10, %v246_v29  ;;  %v189_v28 = vld [vmem:[%s622_s22 + $0x50] sm:$0xff] }
  0x17   : > { %v315_v39 = vmax.f32 %v283_v30, 0.0  ;;  %v316_v40 = vmax.f32 %v284_v31, 0.0  ;;  %v317_v41 = vmax.f32 %v285_v32, 0.0  ;;  %v318_v42 = vmax.f32 %v286_v33, 0.0  ;;  %v190_v33 = vld [vmem:[%s622_s22 + $0x58] sm:$0xff] }
  0x18   : > { %v319_v44 = vmax.f32 %v287_v34, 0.0  ;;  %v320_v45 = vmax.f32 %v288_v35, 0.0  ;;  %v321_v46 = vmax.f32 %v289_v36, 0.0  ;;  %v322_v47 = vmax.f32 %v290_v37, 0.0 }
  0x19   : > { %v548_v49 = vpack.c.bf16 %v316_v40, %v315_v39  ;;  %v549_v50 = vpack.c.bf16 %v318_v42, %v317_v41  ;;  %v203_v51 = vunpack.c.l.bf16 %v183_v38  ;;  %v204_v52 = vunpack.c.h.bf16 %v183_v38 }
  0x1a   : > { %v550_v54 = vpack.c.bf16 %v320_v45, %v319_v44  ;;  %v551_v55 = vpack.c.bf16 %v322_v47, %v321_v46  ;;  %v205_v56 = vunpack.c.l.bf16 %v184_v43  ;;  %v206_v57 = vunpack.c.h.bf16 %v184_v43 }
  0x1b   : > { %443 = vst [vmem:[%s659_s25] sm:$0xff] %v548_v49  ;;  %444 = vst [vmem:[%s659_s25 + $0x8] sm:$0xff] %v549_v50  ;;  %v247_v58 = vmul.f32 %v624_v6, %v203_v51  ;;  %v248_v59 = vmul.f32 %v626_v7, %v204_v52  ;;  %v207_v60 = vunpack.c.l.bf16 %v185_v48  ;;  %v208_v61 = vunpack.c.h.bf16 %v185_v48  ;;  %v191_v50 = vld [vmem:[%s622_s22 + $0x60] sm:$0xff] }
  0x1c   : > { %445 = vst [vmem:[%s659_s25 + $0x10] sm:$0xff] %v550_v54  ;;  %446 = vst [vmem:[%s659_s25 + $0x18] sm:$0xff] %v551_v55  ;;  %v249_v62 = vmul.f32 %v624_v6, %v205_v56  ;;  %v250_v63 = vmul.f32 %v626_v7, %v206_v57  ;;  %v209_v0 = vunpack.c.l.bf16 %v186_v53  ;;  %v210_v1 = vunpack.c.h.bf16 %v186_v53 }
  0x1d   : > { %v291_v2 = vadd.f32 %v629_v9, %v247_v58  ;;  %v292_v3 = vadd.f32 %v631_v10, %v248_v59  ;;  %v251_v4 = vmul.f32 %v624_v6, %v207_v60  ;;  %v252_v5 = vmul.f32 %v626_v7, %v208_v61 }
  0x1e   : > { %v293_v8 = vadd.f32 %v629_v9, %v249_v62  ;;  %v294_v11 = vadd.f32 %v631_v10, %v250_v63  ;;  %v253_v12 = vmul.f32 %v624_v6, %v209_v0  ;;  %v254_v13 = vmul.f32 %v626_v7, %v210_v1  ;;  %v192_v63 = vld [vmem:[%s622_s22 + $0x68] sm:$0xff] }
  0x1f   : > { %v323_v15 = vmax.f32 %v291_v2, 0.0  ;;  %v324_v16 = vmax.f32 %v292_v3, 0.0  ;;  %v295_v17 = vadd.f32 %v629_v9, %v251_v4  ;;  %v296_v18 = vadd.f32 %v631_v10, %v252_v5  ;;  %v193_v4 = vld [vmem:[%s622_s22 + $0x70] sm:$0xff] }
  0x20   : > { %v325_v19 = vmax.f32 %v293_v8, 0.0  ;;  %v326_v20 = vmax.f32 %v294_v11, 0.0  ;;  %v297_v21 = vadd.f32 %v629_v9, %v253_v12  ;;  %v298_v22 = vadd.f32 %v631_v10, %v254_v13  ;;  %v194_v13 = vld [vmem:[%s622_s22 + $0x78] sm:$0xff] }
  0x21   : > { %v552_v24 = vpack.c.bf16 %v324_v16, %v323_v15  ;;  %v327_v25 = vmax.f32 %v295_v17, 0.0  ;;  %v328_v26 = vmax.f32 %v296_v18, 0.0  ;;  %v211_v27 = vunpack.c.l.bf16 %v187_v14 }
  0x22   : > { %v553_v29 = vpack.c.bf16 %v326_v20, %v325_v19  ;;  %v329_v30 = vmax.f32 %v297_v21, 0.0  ;;  %v330_v31 = vmax.f32 %v298_v22, 0.0  ;;  %v212_v32 = vunpack.c.h.bf16 %v187_v14 }
  0x23   : > { %447 = vst [vmem:[%s659_s25 + $0x20] sm:$0xff] %v552_v24  ;;  %v554_v34 = vpack.c.bf16 %v328_v26, %v327_v25  ;;  %v255_v35 = vmul.f32 %v624_v6, %v211_v27  ;;  %v213_v36 = vunpack.c.l.bf16 %v188_v23  ;;  %v214_v37 = vunpack.c.h.bf16 %v188_v23 }
  0x24   : > { %448 = vst [vmem:[%s659_s25 + $0x28] sm:$0xff] %v553_v29  ;;  %v555_v38 = vpack.c.bf16 %v330_v31, %v329_v30  ;;  %v256_v39 = vmul.f32 %v626_v7, %v212_v32  ;;  %v215_v40 = vunpack.c.l.bf16 %v189_v28  ;;  %v216_v41 = vunpack.c.h.bf16 %v189_v28 }
  0x25   : > { %449 = vst [vmem:[%s659_s25 + $0x30] sm:$0xff] %v554_v34  ;;  %v299_v42 = vadd.f32 %v629_v9, %v255_v35  ;;  %v257_v43 = vmul.f32 %v624_v6, %v213_v36  ;;  %v258_v44 = vmul.f32 %v626_v7, %v214_v37  ;;  %v217_v45 = vunpack.c.l.bf16 %v190_v33 }
  0x26   : > { %450 = vst [vmem:[%s659_s25 + $0x38] sm:$0xff] %v555_v38  ;;  %v300_v46 = vadd.f32 %v631_v10, %v256_v39  ;;  %v259_v47 = vmul.f32 %v624_v6, %v215_v40  ;;  %v260_v48 = vmul.f32 %v626_v7, %v216_v41  ;;  %v218_v49 = vunpack.c.h.bf16 %v190_v33 }
  0x27   : > { %v331_v51 = vmax.f32 %v299_v42, 0.0  ;;  %v301_v52 = vadd.f32 %v629_v9, %v257_v43  ;;  %v302_v53 = vadd.f32 %v631_v10, %v258_v44  ;;  %v261_v54 = vmul.f32 %v624_v6, %v217_v45 }
  0x28   : > { %v332_v55 = vmax.f32 %v300_v46, 0.0  ;;  %v303_v56 = vadd.f32 %v629_v9, %v259_v47  ;;  %v304_v57 = vadd.f32 %v631_v10, %v260_v48  ;;  %v262_v58 = vmul.f32 %v626_v7, %v218_v49 }
  0x29   : > { %v333_v59 = vmax.f32 %v301_v52, 0.0  ;;  %v334_v60 = vmax.f32 %v302_v53, 0.0  ;;  %v305_v61 = vadd.f32 %v629_v9, %v261_v54  ;;  %v219_v62 = vunpack.c.l.bf16 %v191_v50 }
  0x2a   : > { %v556_v0 = vpack.c.bf16 %v332_v55, %v331_v51  ;;  %v335_v1 = vmax.f32 %v303_v56, 0.0  ;;  %v336_v2 = vmax.f32 %v304_v57, 0.0  ;;  %v306_v3 = vadd.f32 %v631_v10, %v262_v58 }
  0x2b   : > { %v557_v5 = vpack.c.bf16 %v334_v60, %v333_v59  ;;  %v337_v8 = vmax.f32 %v305_v61, 0.0  ;;  %v220_v11 = vunpack.c.h.bf16 %v191_v50  ;;  %v263_v12 = vmul.f32 %v624_v6, %v219_v62 }
  0x2c   : > { %451 = vst [vmem:[%s659_s25 + $0x40] sm:$0xff] %v556_v0  ;;  %v558_v14 = vpack.c.bf16 %v336_v2, %v335_v1  ;;  %v338_v15 = vmax.f32 %v306_v3, 0.0  ;;  %v221_v16 = vunpack.c.l.bf16 %v192_v63  ;;  %v222_v17 = vunpack.c.h.bf16 %v192_v63 }
  0x2d   : > { %452 = vst [vmem:[%s659_s25 + $0x48] sm:$0xff] %v557_v5  ;;  %v264_v18 = vmul.f32 %v626_v7, %v220_v11  ;;  %v307_v19 = vadd.f32 %v629_v9, %v263_v12  ;;  %v223_v20 = vunpack.c.l.bf16 %v193_v4  ;;  %v224_v21 = vunpack.c.h.bf16 %v193_v4 }
  0x2e   : > { %453 = vst [vmem:[%s659_s25 + $0x50] sm:$0xff] %v558_v14  ;;  %v559_v22 = vpack.c.bf16 %v338_v15, %v337_v8  ;;  %v265_v23 = vmul.f32 %v624_v6, %v221_v16  ;;  %v266_v24 = vmul.f32 %v626_v7, %v222_v17  ;;  %v225_v25 = vunpack.c.l.bf16 %v194_v13 }
  0x2f   : > { %v308_v26 = vadd.f32 %v631_v10, %v264_v18  ;;  %v339_v27 = vmax.f32 %v307_v19, 0.0  ;;  %v267_v28 = vmul.f32 %v624_v6, %v223_v20  ;;  %v268_v29 = vmul.f32 %v626_v7, %v224_v21 }
  0x30   : > { %454 = vst [vmem:[%s659_s25 + $0x58] sm:$0xff] %v559_v22  ;;  %v309_v30 = vadd.f32 %v629_v9, %v265_v23  ;;  %v310_v31 = vadd.f32 %v631_v10, %v266_v24  ;;  %v226_v32 = vunpack.c.h.bf16 %v194_v13  ;;  %v269_v33 = vmul.f32 %v624_v6, %v225_v25 }
  0x31   : > { %v340_v34 = vmax.f32 %v308_v26, 0.0  ;;  %v311_v35 = vadd.f32 %v629_v9, %v267_v28  ;;  %v312_v36 = vadd.f32 %v631_v10, %v268_v29 }
  0x32   : > { %v341_v37 = vmax.f32 %v309_v30, 0.0  ;;  %v342_v38 = vmax.f32 %v310_v31, 0.0  ;;  %v270_v39 = vmul.f32 %v626_v7, %v226_v32  ;;  %v313_v40 = vadd.f32 %v629_v9, %v269_v33 }
  0x33   : > { %v560_v41 = vpack.c.bf16 %v340_v34, %v339_v27  ;;  %v343_v42 = vmax.f32 %v311_v35, 0.0  ;;  %v344_v43 = vmax.f32 %v312_v36, 0.0 }
  0x34   : > { %v561_v44 = vpack.c.bf16 %v342_v38, %v341_v37  ;;  %v314_v6 = vadd.f32 %v631_v10, %v270_v39  ;;  %v345_v45 = vmax.f32 %v313_v40, 0.0 }
  0x35   : > { %455 = vst [vmem:[%s659_s25 + $0x60] sm:$0xff] %v560_v41  ;;  %v562_v46 = vpack.c.bf16 %v344_v43, %v343_v42 }
  0x36   : > { %456 = vst [vmem:[%s659_s25 + $0x68] sm:$0xff] %v561_v44  ;;  %v346_v47 = vmax.f32 %v314_v6, 0.0 }
  0x37   : > { %457 = vst [vmem:[%s659_s25 + $0x70] sm:$0xff] %v562_v46 }
  0x38   : > { %v563_v48 = vpack.c.bf16 %v346_v47, %v345_v45 }
  0x3a   : > { %458 = vst [vmem:[%s659_s25 + $0x78] sm:$0xff] %v563_v48 }
  0x3b PF: > { %s13_s12 = sadd.s32 1, %s578_s12  }
  0x3c   : > { %p10_p4 = scmp.ge.s32.totalorder %s13_s12, 4  }
  0x3e   :  { %12 = sbr.rel (!%p10_p4) target bundleno = 1 (0x1), region = 62 }

// kernel: soft_share.4
= control target key start
LH: loop header
LB: loop body
LE: loop exit
PB: predicated region body
PF: predicated region fallthrough
CT: control target
= control target key end

     0   :  { %s2872_s15 = smov 0   ;;  %s2874_s16 = smov 0   ;;  %s3397_s0 = inlined_call_operand.vmem [shape: bf16[2,9,9,256], index: 0, kind: input, shape index: {}]   ;;  %s3398_s1 = inlined_call_operand.vmem [shape: bf16[2,4,256,256], index: 1, kind: input, shape index: {}]   ;;  %s3399_s2 = inlined_call_operand.vmem [shape: f32[1,256], index: 2, kind: input, shape index: {}]   ;;  %s3400_s3 = inlined_call_operand.vmem [shape: bf16[2,8,2,8,256], index: 3, kind: output, shape index: {0}]   ;;  %s3401_s4 = inlined_call_operand.vmem [shape: f32[2,2,2,256], index: 4, kind: output, shape index: {1}]  }
   0x1   :  { %s2876_s17 = smov 0   ;;  %s2878_s18 = smov 0  }
   0x2   :  { %s2880_s19 = smov 0   ;;  %s2882_s20 = smov 0  }
   0x3   :  { %s2884_s21 = smov 0  }
   0x4 LB: > { %s24_s22 = sadd.s32 1, %s2837_s19  ;;  %s27_s23 = sadd.s32 1, %s2841_s20  ;;  %s2845_s21 = sphi %s2884_s21, %s15_s21   ;;  %s2841_s20 = sphi %s2882_s20, %s3410_s20   ;;  %s2837_s19 = sphi %s2880_s19, %s3409_s19   ;;  %s2833_s18 = sphi %s2878_s18, %s3408_s18   ;;  %s2829_s17 = sphi %s2876_s17, %s3407_s17   ;;  %s2825_s16 = sphi %s2874_s16, %s3406_s16   ;;  %s2821_s15 = sphi %s2872_s15, %s3405_s15  }
   0x5   : > { %p25_p0 = scmp.ge.s32.totalorder %s24_s22, 2  ;;  %s2185_s24 = sadd.s32 4294967295, %s2845_s21  }
   0x6   : > { %p119_p1 = scmp.ne.s32.totalorder %s2825_s16, %s2821_s15  ;;  %p120_p2 = scmp.eq.s32.totalorder %s2185_s24, 3 }
   0x7   : > { %s3412_s22 = smov (%p25_p0, %s24_s22), 0  ;;  %s3414_s23 = smov (!%p25_p0, %s27_s23), %s2841_s20 }
   0x8   : > { %s105_s25 = ssub.s32 %s2837_s19, %s3412_s22  ;;  %p29_p3 = scmp.ge.s32.totalorder %s3414_s23, 2 }
   0x9   : > { %p2189_p4 = scmp.ge.s32.totalorder %s2845_s21, 1  ;;  %p2918_p5 = por %p120_p2, %p119_p1 }
   0xa   : > { %p191_p6 = scmp.lt.s32.totalorder %s2845_s21, 5  ;;  %s3416_s23 = smov (%p29_p3, %s3414_s23), 0 }
   0xb   : > { %s104_s27 = ssub.s32 %s2841_s20, %s3416_s23  ;;  %s109_s29 = sadd.s32 1, %s2825_s16 }
   0xc   : > { %p192_p7 = pnand %p2189_p4, %p191_p6  ;;  %s106_s28 = sor.u32 %s105_s25, %s104_s27 }
   0xd   : > { %p107_p8 = scmp.eq.s32.totalorder %s106_s28, 0  ;;  %s216_s5 = sand.u32 (!%p192_p7), 1, %s2821_s15   ;;  %vm297_vm0 = vsmask.f32 (!%p192_p7), 3328  ;;  %vm298_vm1 = vsmask.f32 (!%p192_p7), 7440 }
   0xe   : > { %195 = sbr.rel (%p192_p7) target bundleno = 633 (0x279), region = 32  ;;  %p235_p9 = scmp.lt.s32.totalorder (!%p192_p7), %s2829_s17, 1  ;;  %vm3039_vm2 = vmor (!%p192_p7), %vm297_vm0, %vm298_vm1 }
   0xf   : > { %s2929_s30 = scalar_select %p107_p8, %s2825_s16, %s109_s29  }
  0x10   : > { %s2933_s6 = sshll.u32 (!%p192_p7), %s216_s5, 6  ;;  %p230_p10 = scmp.lt.s32.totalorder (!%p192_p7), %s2833_s18, 1 }
  0x11   : > { %p2309_p11 = scmp.ne.s32.totalorder (!%p192_p7), %s2829_s17, 1 }
  0x15   : > { %s236_s7 = scalar_select %p235_p9, %s2829_s17, 1 }
  0x16   : > { %s2938_s8 = scalar_select %p230_p10, %s2833_s18, 1 }
  0x17   : > { %s2485_s9 = sshll.u32 %s236_s7, 10  ;;  %s2194_s10 = sshll.u32 %s236_s7, 1 }
  0x18   : > { %s2943_s13 = scalar_lea.vmem %s3398_s1, %s2485_s9  ;;  %s2195_s14 = sshll.u32 %s2938_s8, 2 }
  0x19   : > { %v2583_v0 = vld [vmem:[%s2943_s13 + $0x104] ss:$8 sps:$4 sm:$0xff]   ;;  %s246_s15 = sadd.s32 %s2195_s14, %s2194_s10  ;;  %v2587_v2 = vld [vmem:[%s2943_s13 + $0x100] ss:$8 sps:$4 sm:$0xff]   ;;  %v2589_v4 = vld [vmem:[%s2943_s13 + $0x114] ss:$8 sps:$4 sm:$0xff]  }
  0x1a   : > { %v2585_v1 = vld [vmem:[%s2943_s13 + $0x4] ss:$8 sps:$4 sm:$0xff]   ;;  %637 = vmatprep.subr.bf16.mxu1 %v2583_v0  ;;  %v2588_v3 = vld [vmem:[%s2943_s13] ss:$8 sps:$4 sm:$0xff]   ;;  %s2196_s24 = sshll.u32 %s246_s15, 1  ;;  %s2526_s29 = smul.u32 144, %s2938_s8 }
  0x1b   : > { %910 = vmatprep.subr.bf16.mxu0 %v2585_v1  ;;  %s2954_s28 = scalar_lea.vmem %s3401_s4, %s2196_s24  ;;  %638 = vmatpush1.bf16.msra.mxu1 %v2587_v2  ;;  %v2591_v5 = vld [vmem:[%s2943_s13 + $0x14] ss:$8 sps:$4 sm:$0xff]   ;;  %v2593_v6 = vld [vmem:[%s2943_s13 + $0x110] ss:$8 sps:$4 sm:$0xff]   ;;  %v2595_v8 = vld [vmem:[%s2943_s13 + $0x124] ss:$8 sps:$4 sm:$0xff]  }
  0x1c   : > { %911 = vmatpush1.bf16.msra.mxu0 %v2588_v3  ;;  %639 = vmatprep.subr.bf16.mxu1 %v2589_v4  ;;  %v2594_v7 = vld [vmem:[%s2943_s13 + $0x10] ss:$8 sps:$4 sm:$0xff]   ;;  %v2597_v9 = vld [vmem:[%s2943_s13 + $0x24] ss:$8 sps:$4 sm:$0xff]   ;;  %v2599_v10 = vld [vmem:[%s2943_s13 + $0x120] ss:$8 sps:$4 sm:$0xff]   ;;  %s2999_s9 = scalar_lea.vmem %s3397_s0, %s2526_s29 }
  0x1d   : > { %912 = vmatprep.subr.bf16.mxu0 %v2591_v5  ;;  %v2600_v11 = vld [vmem:[%s2943_s13 + $0x20] ss:$8 sps:$4 sm:$0xff]   ;;  %v2601_v12 = vld [vmem:[%s2943_s13 + $0x134] ss:$8 sps:$4 sm:$0xff]   ;;  %v2605_v14 = vld [vmem:[%s2943_s13 + $0x130] ss:$8 sps:$4 sm:$0xff]  }
  0x1e   : > { %v2603_v13 = vld [vmem:[%s2943_s13 + $0x34] ss:$8 sps:$4 sm:$0xff]   ;;  %v2606_v15 = vld [vmem:[%s2943_s13 + $0x30] ss:$8 sps:$4 sm:$0xff]   ;;  %v2607_v16 = vld [vmem:[%s2943_s13 + $0x144] ss:$8 sps:$4 sm:$0xff]  }
  0x1f   : > { %640 = vmatpush1.bf16.msra.mxu1 %v2593_v6  ;;  %v2609_v17 = vld [vmem:[%s2943_s13 + $0x44] ss:$8 sps:$4 sm:$0xff]   ;;  %v2611_v18 = vld [vmem:[%s2943_s13 + $0x140] ss:$8 sps:$4 sm:$0xff]   ;;  %v2613_v20 = vld [vmem:[%s2943_s13 + $0x154] ss:$8 sps:$4 sm:$0xff]  }
  0x20   : > { %913 = vmatpush1.bf16.msra.mxu0 %v2594_v7  ;;  %641 = vmatprep.subr.bf16.mxu1 %v2595_v8  ;;  %v2612_v19 = vld [vmem:[%s2943_s13 + $0x40] ss:$8 sps:$4 sm:$0xff]   ;;  %v2615_v21 = vld [vmem:[%s2943_s13 + $0x54] ss:$8 sps:$4 sm:$0xff]   ;;  %v2617_v22 = vld [vmem:[%s2943_s13 + $0x150] ss:$8 sps:$4 sm:$0xff]  }
  0x21   : > { %914 = vmatprep.subr.bf16.mxu0 %v2597_v9  ;;  %v2618_v23 = vld [vmem:[%s2943_s13 + $0x50] ss:$8 sps:$4 sm:$0xff]   ;;  %v2619_v24 = vld [vmem:[%s2943_s13 + $0x164] ss:$8 sps:$4 sm:$0xff]   ;;  %v2623_v26 = vld [vmem:[%s2943_s13 + $0x160] ss:$8 sps:$4 sm:$0xff]  }
  0x22   : > { %v2621_v25 = vld [vmem:[%s2943_s13 + $0x64] ss:$8 sps:$4 sm:$0xff]   ;;  %v2624_v27 = vld [vmem:[%s2943_s13 + $0x60] ss:$8 sps:$4 sm:$0xff]   ;;  %v2625_v28 = vld [vmem:[%s2943_s13 + $0x174] ss:$8 sps:$4 sm:$0xff]  }
  0x23   : > { %642 = vmatpush1.bf16.msra.mxu1 %v2599_v10  ;;  %v2627_v29 = vld [vmem:[%s2943_s13 + $0x74] ss:$8 sps:$4 sm:$0xff]   ;;  %v2629_v30 = vld [vmem:[%s2943_s13 + $0x170] ss:$8 sps:$4 sm:$0xff]   ;;  %v2631_v32 = vld [vmem:[%s2943_s13 + $0x184] ss:$8 sps:$4 sm:$0xff]  }
  0x24   : > { %915 = vmatpush1.bf16.msra.mxu0 %v2600_v11  ;;  %643 = vmatprep.subr.bf16.mxu1 %v2601_v12  ;;  %v2630_v31 = vld [vmem:[%s2943_s13 + $0x70] ss:$8 sps:$4 sm:$0xff]   ;;  %v2633_v33 = vld [vmem:[%s2943_s13 + $0x84] ss:$8 sps:$4 sm:$0xff]   ;;  %v2635_v34 = vld [vmem:[%s2943_s13 + $0x180] ss:$8 sps:$4 sm:$0xff]  }
  0x25   : > { %916 = vmatprep.subr.bf16.mxu0 %v2603_v13  ;;  %v2636_v35 = vld [vmem:[%s2943_s13 + $0x80] ss:$8 sps:$4 sm:$0xff]   ;;  %v2637_v36 = vld [vmem:[%s2943_s13 + $0x194] ss:$8 sps:$4 sm:$0xff]   ;;  %v2641_v38 = vld [vmem:[%s2943_s13 + $0x190] ss:$8 sps:$4 sm:$0xff]  }
  0x26   : > { %v2639_v37 = vld [vmem:[%s2943_s13 + $0x94] ss:$8 sps:$4 sm:$0xff]   ;;  %v2642_v39 = vld [vmem:[%s2943_s13 + $0x90] ss:$8 sps:$4 sm:$0xff]   ;;  %v2643_v40 = vld [vmem:[%s2943_s13 + $0x1a4] ss:$8 sps:$4 sm:$0xff]  }
  0x27   : > { %644 = vmatpush1.bf16.msra.mxu1 %v2605_v14  ;;  %v2645_v41 = vld [vmem:[%s2943_s13 + $0xa4] ss:$8 sps:$4 sm:$0xff]   ;;  %v2647_v42 = vld [vmem:[%s2943_s13 + $0x1a0] ss:$8 sps:$4 sm:$0xff]   ;;  %v2649_v44 = vld [vmem:[%s2943_s13 + $0x1b4] ss:$8 sps:$4 sm:$0xff]  }
  0x28   : > { %917 = vmatpush1.bf16.msra.mxu0 %v2606_v15  ;;  %645 = vmatprep.subr.bf16.mxu1 %v2607_v16  ;;  %v2648_v43 = vld [vmem:[%s2943_s13 + $0xa0] ss:$8 sps:$4 sm:$0xff]   ;;  %v2651_v45 = vld [vmem:[%s2943_s13 + $0xb4] ss:$8 sps:$4 sm:$0xff]   ;;  %v2653_v46 = vld [vmem:[%s2943_s13 + $0x1b0] ss:$8 sps:$4 sm:$0xff]  }
  0x29   : > { %918 = vmatprep.subr.bf16.mxu0 %v2609_v17  ;;  %v2654_v47 = vld [vmem:[%s2943_s13 + $0xb0] ss:$8 sps:$4 sm:$0xff]   ;;  %v3006_v48 = vld [vmem:[%s2999_s9] sm:$0xff]  ;;  %v289_v51 = vld [vmem:[%s2999_s9 + $0x8] sm:$0x11]  ;;  %s3116_s8 = scalar_lea.vmem [#allocation3], %s2933_s6 }
  0x2a   : > { %v2655_v49 = vld [vmem:[%s2943_s13 + $0x1c4] ss:$8 sps:$4 sm:$0xff]   ;;  %v3010_v50 = vld [vmem:[%s2999_s9 + $0x10] sm:$0xff]  ;;  %v290_v52 = vld [vmem:[%s2999_s9 + $0x18] sm:$0x11]  ;;  %v301_v53 = vshrl.u32 %v3006_v48, 16 }
  0x2b   : > { %646 = vmatpush1.bf16.msra.mxu1 %v2611_v18  ;;  %v304_v54 = vshll.u32 %v3006_v48, 16  ;;  %v310_v55 = vshll.u32 %v289_v51, 16  ;;  %v315_v56 = vshrl.u32 %v3010_v50, 16  ;;  %v318_v57 = vshll.u32 %v3010_v50, 16  ;;  %v3019_v58 = vld [vmem:[%s2999_s9 + $0x20] sm:$0xff]  ;;  %v3025_v63 = vld [vmem:[%s2999_s9 + $0x30] sm:$0xff] }
  0x2c   : > { %919 = vmatpush1.bf16.msra.mxu0 %v2612_v19  ;;  %647 = vmatprep.subr.bf16.mxu1 %v2613_v20  ;;  %v2657_v59 = vld [vmem:[%s2943_s13 + $0xc4] ss:$8 sps:$4 sm:$0xff]   ;;  %v303_v60 = vrot.slane %v301_v53, 4  ;;  %v324_v61 = vshll.u32 %v290_v52, 16  ;;  %v2270_v62 = vcombine.high %v3006_v48, %v3010_v50  ;;  %v2659_v0 = vld [vmem:[%s2943_s13 + $0x1c0] ss:$8 sps:$4 sm:$0xff]  }
  0x2d   : > { %920 = vmatprep.subr.bf16.mxu0 %v2615_v21  ;;  %v2660_v1 = vld [vmem:[%s2943_s13 + $0xc0] ss:$8 sps:$4 sm:$0xff]   ;;  %v306_v2 = vrot.slane %v304_v54, 5  ;;  %v317_v3 = vrot.slane %v315_v56, 4  ;;  %v320_v4 = vrot.slane %v318_v57, 5  ;;  %v312_v6 = vrot.slane %v310_v55, 5 }
  0x2e   : > { %v2661_v5 = vld [vmem:[%s2943_s13 + $0x1d4] ss:$8 sps:$4 sm:$0xff]   ;;  %v326_v7 = vrot.slane %v324_v61, 5  ;;  %942 = vmatprep.mubr.bf16.mxu0 %v2270_v62  ;;  %v329_v8 = vshrl.u32 %v3019_v58, 16  ;;  %v332_v9 = vshll.u32 %v3019_v58, 16  ;;  %v343_v14 = vshrl.u32 %v3025_v63, 16 }
  0x2f   : > { %648 = vmatpush1.bf16.msra.mxu1 %v2617_v22  ;;  %v307_v10 = vor.u32 %v306_v2, %v303_v60  ;;  %v321_v11 = vor.u32 %v320_v4, %v317_v3  ;;  %v291_v12 = vld [vmem:[%s2999_s9 + $0x28] sm:$0x11]  ;;  %v292_v13 = vld [vmem:[%s2999_s9 + $0x38] sm:$0x11]  ;;  %v346_v15 = vshll.u32 %v3025_v63, 16  ;;  %v3044_v20 = vld [vmem:[%s2999_s9 + $0x40] sm:$0xff] }
  0x30   : > { %921 = vmatpush1.bf16.msra.mxu0 %v2618_v23  ;;  %649 = vmatprep.subr.bf16.mxu1 %v2619_v24  ;;  %v2663_v16 = vld [vmem:[%s2943_s13 + $0xd4] ss:$8 sps:$4 sm:$0xff]   ;;  %v331_v18 = vrot.slane %v329_v8, 4  ;;  %v334_v19 = vrot.slane %v332_v9, 5  ;;  %v345_v23 = vrot.slane %v343_v14, 4  ;;  %v3074_v57 = vld [vmem:[%s2999_s9 + $0x60] sm:$0xff] }
  0x31   : > { %922 = vmatprep.subr.bf16.mxu0 %v2621_v25  ;;  %v308_v21 = vrot.slane %v307_v10, 4  ;;  %v322_v22 = vrot.slane %v321_v11, 4  ;;  %v348_v24 = vrot.slane %v346_v15, 5  ;;  %v293_v51 = vld [vmem:[%s2999_s9 + $0x48] sm:$0x11]  ;;  %v385_v4 = vshrl.u32 %v3074_v57, 16 }
  0x32   : > { %v335_v25 = vor.u32 %v334_v19, %v331_v18  ;;  %v294_v54 = vld [vmem:[%s2999_s9 + $0x58] sm:$0x11]  ;;  %v366_v61 = vshll.u32 %v293_v51, 16  ;;  %v2269_v10 = vcombine.low %v3006_v48, %v3010_v50  ;;  %v2272_v11 = vcombine.high %v3019_v58, %v3025_v63 }
  0x33   : > { %650 = vmatpush1.bf16.msra.mxu1 %v2623_v26  ;;  %v338_v26 = vshll.u32 %v291_v12, 16  ;;  %v2677_v62 = vld [vmem:[%s2943_s13 + $0x1f0] ss:$8 sps:$4 sm:$0xff]   ;;  %v380_v3 = vshll.u32 %v294_v54, 16  ;;  %v387_v18 = vrot.slane %v385_v4, 4 }
  0x34   : > { %923 = vmatpush1.bf16.msra.mxu0 %v2624_v27  ;;  %651 = vmatprep.subr.bf16.mxu1 %v2625_v28  ;;  %v352_v27 = vshll.u32 %v292_v13, 16  ;;  %v3047_v28 = vld [vmem:[%s2999_s9 + $0x50] sm:$0xff]  ;;  %v368_v12 = vrot.slane %v366_v61, 5 }
  0x35   : > { %924 = vmatprep.subr.bf16.mxu0 %v2627_v29  ;;  %v2665_v29 = vld [vmem:[%s2943_s13 + $0x1d0] ss:$8 sps:$4 sm:$0xff]   ;;  %v382_v15 = vrot.slane %v380_v3, 5 }
  0x37   : > { %652 = vmatpush1.bf16.msra.mxu1 %v2629_v30  ;;  %v2666_v30 = vld [vmem:[%s2943_s13 + $0xd0] ss:$8 sps:$4 sm:$0xff]  }
  0x38   : > { %925 = vmatpush1.bf16.msra.mxu0 %v2630_v31  ;;  %653 = vmatprep.subr.bf16.mxu1 %v2631_v32  ;;  %v3053_v31 = vsel %vm3039_vm2, %v308_v21, %v312_v6  ;;  %v3057_v32 = vsel %vm3039_vm2, %v322_v22, %v326_v7  ;;  %v388_v6 = vshll.u32 %v3074_v57, 16  ;;  %v296_v21 = vld [vmem:[%s2999_s9 + $0x78] sm:$0x11] }
  0x39   : > { %926 = vmatprep.subr.bf16.mxu0 %v2633_v33  ;;  %v349_v33 = vor.u32 %v348_v24, %v345_v23  ;;  %v2229_v9 = vcombine.low %v3053_v31, %v3057_v32  ;;  %v408_v50 = vshll.u32 %v296_v21, 16 }
  0x3a   : > { %v390_v22 = vrot.slane %v388_v6, 5 }
  0x3b   : > { %654 = vmatpush1.bf16.msra.mxu1 %v2635_v34  ;;  %v357_v34 = vshrl.u32 %v3044_v20, 16 }
  0x3c   : > { %927 = vmatpush1.bf16.msra.mxu0 %v2636_v35  ;;  %655 = vmatprep.subr.bf16.mxu1 %v2637_v36  ;;  %v2667_v35 = vld [vmem:[%s2943_s13 + $0x1e4] ss:$8 sps:$4 sm:$0xff]  }
  0x3d   : > { %928 = vmatprep.subr.bf16.mxu0 %v2639_v37  ;;  %v2669_v36 = vld [vmem:[%s2943_s13 + $0xe4] ss:$8 sps:$4 sm:$0xff]   ;;  %v2230_v37 = vcombine.high %v3053_v31, %v3057_v32  ;;  %v359_v52 = vrot.slane %v357_v34, 4  ;;  %v2271_v31 = vcombine.low %v3019_v58, %v3025_v63  ;;  %v2273_v58 = vcombine.low %v3044_v20, %v3047_v28 }
  0x3f   : > { %656 = vmatpush1.bf16.msra.mxu1 %v2641_v38  ;;  %v360_v38 = vshll.u32 %v3044_v20, 16  ;;  %669 = vmatprep.mubr.bf16.mxu1 %v2230_v37  ;;  %v410_v37 = vrot.slane %v408_v50, 5 }
  0x40   : > { %929 = vmatpush1.bf16.msra.mxu0 %v2642_v39  ;;  %657 = vmatprep.subr.bf16.mxu1 %v2643_v40  ;;  %v2671_v39 = vld [vmem:[%s2943_s13 + $0x1e0] ss:$8 sps:$4 sm:$0xff]  }
  0x41   : > { %930 = vmatprep.subr.bf16.mxu0 %v2645_v41  ;;  %v2672_v40 = vld [vmem:[%s2943_s13 + $0xe0] ss:$8 sps:$4 sm:$0xff]   ;;  %v371_v41 = vshrl.u32 %v3047_v28, 16  ;;  %v362_v53 = vrot.slane %v360_v38, 5 }
  0x43   : > { %658 = vmatpush1.bf16.msra.mxu1 %v2647_v42  ;;  %v2673_v42 = vld [vmem:[%s2943_s13 + $0x1f4] ss:$8 sps:$4 sm:$0xff]   ;;  %v373_v55 = vrot.slane %v371_v41, 4  ;;  %v363_v2 = vor.u32 %v362_v53, %v359_v52 }
  0x44   : > { %931 = vmatpush1.bf16.msra.mxu0 %v2648_v43  ;;  %659 = vmatprep.subr.bf16.mxu1 %v2649_v44  ;;  %v2675_v43 = vld [vmem:[%s2943_s13 + $0xf4] ss:$8 sps:$4 sm:$0xff]   ;;  %v336_v44 = vrot.slane %v335_v25, 4 }
  0x45   : > { %932 = vmatprep.subr.bf16.mxu0 %v2651_v45  ;;  %v340_v45 = vrot.slane %v338_v26, 5  ;;  %v364_v14 = vrot.slane %v363_v2, 4 }
  0x47   : > { %660 = vmatpush1.bf16.msra.mxu1 %v2653_v46  ;;  %v374_v46 = vshll.u32 %v3047_v28, 16  ;;  %v341_v60 = vsel %vm3039_vm2, %v336_v44, %v340_v45  ;;  %v369_v25 = vsel %vm3039_vm2, %v364_v14, %v368_v12 }
  0x48   : > { %933 = vmatpush1.bf16.msra.mxu0 %v2654_v47  ;;  %661 = vmatprep.subr.bf16.mxu1 %v2655_v49  ;;  %v350_v47 = vrot.slane %v349_v33, 4  ;;  %v354_v49 = vrot.slane %v352_v27, 5  ;;  %v391_v27 = vor.u32 %v390_v22, %v387_v18  ;;  %v2274_v33 = vcombine.high %v3044_v20, %v3047_v28 }
  0x49   : > { %934 = vmatprep.subr.bf16.mxu0 %v2657_v59  ;;  %v376_v56 = vrot.slane %v374_v46, 5  ;;  %v3077_v59 = vld [vmem:[%s2999_s9 + $0x70] sm:$0xff] }
  0x4a   : > { %v399_v7 = vshrl.u32 %v3077_v59, 16  ;;  %v402_v8 = vshll.u32 %v3077_v59, 16  ;;  %v392_v34 = vrot.slane %v391_v27, 4  ;;  %v2276_v41 = vcombine.high %v3074_v57, %v3077_v59 }
  0x4b   : > { %662 = vmatpush1.bf16.msra.mxu1 %v2659_v0  ;;  %v2678_v0 = vld [vmem:[%s2943_s13 + $0xf0] ss:$8 sps:$4 sm:$0xff]  }
  0x4c   : > { %935 = vmatpush1.bf16.msra.mxu0 %v2660_v1  ;;  %663 = vmatprep.subr.bf16.mxu1 %v2661_v5  ;;  %v355_v1 = vsel %vm3039_vm2, %v350_v47, %v354_v49  ;;  %v377_v5 = vor.u32 %v376_v56, %v373_v55  ;;  %v401_v23 = vrot.slane %v399_v7, 4  ;;  %v404_v24 = vrot.slane %v402_v8, 5 }
  0x4d   : > { %936 = vmatprep.subr.bf16.mxu0 %v2663_v16  ;;  %v2232_v13 = vcombine.high %v341_v60, %v355_v1  ;;  %v295_v16 = vld [vmem:[%s2999_s9 + $0x68] sm:$0x11] }
  0x4e   : > { %v378_v19 = vrot.slane %v377_v5, 4  ;;  %v394_v48 = vshll.u32 %v295_v16, 16 }
  0x4f   : > { %664 = vmatpush1.bf16.msra.mxu1 %v2665_v29  ;;  %v405_v29 = vor.u32 %v404_v24, %v401_v23 }
  0x50   : > { %937 = vmatpush1.bf16.msra.mxu0 %v2666_v30  ;;  %665 = vmatprep.subr.bf16.mxu1 %v2667_v35  ;;  %v383_v26 = vsel %vm3039_vm2, %v378_v19, %v382_v15  ;;  %v2231_v30 = vcombine.low %v341_v60, %v355_v1  ;;  %v396_v35 = vrot.slane %v394_v48, 5 }
  0x51   : > { %938 = vmatprep.subr.bf16.mxu0 %v2669_v36  ;;  %v2234_v32 = vcombine.high %v369_v25, %v383_v26  ;;  %v406_v36 = vrot.slane %v405_v29, 4 }
  0x52   : > { %v397_v38 = vsel %vm3039_vm2, %v392_v34, %v396_v35  ;;  %v2692_v34 = vld [vmem:[%s2943_s13 + $0x200] ss:$8 sps:$4 sm:$0xff] (!%p2309_p11)   ;;  %v2693_v35 = vld [vmem:[%s2943_s13 + $0x314] ss:$8 sps:$4 sm:$0xff] (!%p2309_p11)  }
  0x53   : > { %666 = vmatpush1.bf16.msra.mxu1 %v2671_v39  ;;  %v411_v39 = vsel %vm3039_vm2, %v406_v36, %v410_v37  ;;  %v2695_v36 = vld [vmem:[%s2943_s13 + $0x214] ss:$8 sps:$4 sm:$0xff] (!%p2309_p11)   ;;  %v2697_v37 = vld [vmem:[%s2943_s13 + $0x310] ss:$8 sps:$4 sm:$0xff] (!%p2309_p11)  }
  0x54   : > { %939 = vmatpush1.bf16.msra.mxu0 %v2672_v40  ;;  %667 = vmatprep.subr.bf16.mxu1 %v2673_v42  ;;  %v2233_v40 = vcombine.low %v369_v25, %v383_v26  ;;  %v2236_v63 = vcombine.high %v397_v38, %v411_v39  ;;  %v2235_v42 = vcombine.low %v397_v38, %v411_v39  ;;  %v2698_v38 = vld [vmem:[%s2943_s13 + $0x210] ss:$8 sps:$4 sm:$0xff] (!%p2309_p11)   ;;  %v2699_v39 = vld [vmem:[%s2943_s13 + $0x324] ss:$8 sps:$4 sm:$0xff] (!%p2309_p11)  }
  0x55   : > { %940 = vmatprep.subr.bf16.mxu0 %v2675_v43  ;;  %v2275_v43 = vcombine.low %v3074_v57, %v3077_v59 }
  0x57   : > { %668 = vmatpush1.bf16.msra.mxu1 %v2677_v62 }
  0x58   : > { %941 = vmatpush1.bf16.msra.mxu0 %v2678_v0 }
  0x5a   : > { %670 = vmatmul.mubr.bf16.vlgmr.msra.gmra.mrb[0].mxu1 %v2229_v9 }
  0x5b   : > { %943 = vmatmul.mubr.bf16.vlgmr.msra.gmra.mrb[0].mxu0 %v2269_v10  ;;  %679 = vmatprep.mubr.bf16.mxu1 %v2232_v13 }
  0x5c   : > { %952 = vmatprep.mubr.bf16.mxu0 %v2272_v11 }
  0x62   : > { %680 = vmatmul.mubr.bf16.gmra.mrb[4].mxu1 %v2231_v30 }
  0x63   : > { %953 = vmatmul.mubr.bf16.gmra.mrb[4].mxu0 %v2271_v31  ;;  %689 = vmatprep.mubr.bf16.mxu1 %v2234_v32  ;;  %v2687_v31 = vld [vmem:[%s2943_s13 + $0x304] ss:$8 sps:$4 sm:$0xff] (!%p2309_p11)  }
  0x64   : > { %962 = vmatprep.mubr.bf16.mxu0 %v2274_v33  ;;  %v2689_v32 = vld [vmem:[%s2943_s13 + $0x204] ss:$8 sps:$4 sm:$0xff] (!%p2309_p11)   ;;  %1406 = vmatprep.subr.bf16.mxu1 (!%p2309_p11), %v2687_v31  ;;  %v2691_v33 = vld [vmem:[%s2943_s13 + $0x300] ss:$8 sps:$4 sm:$0xff] (!%p2309_p11)  }
  0x65   : > { %1679 = vmatprep.subr.bf16.mxu0 (!%p2309_p11), %v2689_v32  ;;  %1407 = vmatpush1.bf16.msra.mxu1 (!%p2309_p11), %v2691_v33  ;;  %v3187_v31 = vld [vmem:[%s2999_s9 + $0x40] sm:$0xff] (!%p2309_p11) }
  0x66   : > { %1680 = vmatpush1.bf16.msra.mxu0 (!%p2309_p11), %v2692_v34  ;;  %1408 = vmatprep.subr.bf16.mxu1 (!%p2309_p11), %v2693_v35  ;;  %v2763_v32 = vld [vmem:[%s2943_s13 + $0x3c0] ss:$8 sps:$4 sm:$0xff] (!%p2309_p11)  }
  0x67   : > { %1681 = vmatprep.subr.bf16.mxu0 (!%p2309_p11), %v2695_v36  ;;  %v2764_v33 = vld [vmem:[%s2943_s13 + $0x2c0] ss:$8 sps:$4 sm:$0xff] (!%p2309_p11)  }
  0x69   : > { %1409 = vmatpush1.bf16.msra.mxu1 (!%p2309_p11), %v2697_v37  ;;  %v2765_v37 = vld [vmem:[%s2943_s13 + $0x3d4] ss:$8 sps:$4 sm:$0xff] (!%p2309_p11)  }
  0x6a   : > { %690 = vmatmul.mubr.bf16.gmra.mrb[8].mxu1 %v2233_v40  ;;  %v2701_v40 = vld [vmem:[%s2943_s13 + $0x224] ss:$8 sps:$4 sm:$0xff] (!%p2309_p11)   ;;  %1682 = vmatpush1.bf16.msra.mxu0 (!%p2309_p11), %v2698_v38 }
  0x6b   : > { %963 = vmatmul.mubr.bf16.gmra.mrb[8].mxu0 %v2273_v58  ;;  %699 = vmatprep.mubr.bf16.mxu1 %v2236_v63  ;;  %v2703_v58 = vld [vmem:[%s2943_s13 + $0x320] ss:$8 sps:$4 sm:$0xff] (!%p2309_p11)  }
  0x6c   : > { %972 = vmatprep.mubr.bf16.mxu0 %v2276_v41  ;;  %v2704_v63 = vld [vmem:[%s2943_s13 + $0x220] ss:$8 sps:$4 sm:$0xff] (!%p2309_p11)   ;;  %v2705_v41 = vld [vmem:[%s2943_s13 + $0x334] ss:$8 sps:$4 sm:$0xff] (!%p2309_p11)   ;;  %1410 = vmatprep.subr.bf16.mxu1 (!%p2309_p11), %v2699_v39 }
  0x6d   : > { %1683 = vmatprep.subr.bf16.mxu0 (!%p2309_p11), %v2701_v40  ;;  %1411 = vmatpush1.bf16.msra.mxu1 (!%p2309_p11), %v2703_v58 }
  0x6e   : > { %1684 = vmatpush1.bf16.msra.mxu0 (!%p2309_p11), %v2704_v63  ;;  %1412 = vmatprep.subr.bf16.mxu1 (!%p2309_p11), %v2705_v41 }
  0x72   : > { %700 = vmatmul.mubr.bf16.gmra.mrb[12].mxu1 %v2235_v42  ;;  %v2707_v42 = vld [vmem:[%s2943_s13 + $0x234] ss:$8 sps:$4 sm:$0xff] (!%p2309_p11)  }
  0x73   : > { %973 = vmatmul.mubr.bf16.gmra.mrb[12].mxu0 %v2275_v43  ;;  %v2709_v43 = vld [vmem:[%s2943_s13 + $0x330] ss:$8 sps:$4 sm:$0xff] (!%p2309_p11)   ;;  %1685 = vmatprep.subr.bf16.mxu0 (!%p2309_p11), %v2707_v42 }
  0x74   : > { %1413 = vmatpush1.bf16.msra.mxu1 (!%p2309_p11), %v2709_v43  ;;  %v2352_v42 = vld [vmem:[%s2999_s9 + $0x38] sm:$0x11] (!%p2309_p11)  ;;  %v2353_v43 = vld [vmem:[%s2999_s9 + $0x48] sm:$0x11] (!%p2309_p11) }
 0x12d   : > { %v671_v44 = vpop.f32.mrb[0].mxu1 }
 0x12e   : > { %v944_v45 = vpop.f32.mrb[0].mxu0  ;;  %v673_v47 = vpop.f32.mrb[1].mxu1 }
 0x12f   : > { %v945_v46 = vadd.f32 %v944_v45, %v671_v44  ;;  %v946_v49 = vpop.f32.mrb[1].mxu0  ;;  %v675_v28 = vpop.f32.mrb[2].mxu1  ;;  %v2710_v44 = vld [vmem:[%s2943_s13 + $0x230] ss:$8 sps:$4 sm:$0xff] (!%p2309_p11)   ;;  %v2711_v45 = vld [vmem:[%s2943_s13 + $0x344] ss:$8 sps:$4 sm:$0xff] (!%p2309_p11)  }
 0x130   : > { %v947_v20 = vadd.f32 %v946_v49, %v673_v47  ;;  %v948_v51 = vpop.f32.mrb[2].mxu0  ;;  %v677_v53 = vpop.f32.mrb[3].mxu1  ;;  %v2715_v47 = vld [vmem:[%s2943_s13 + $0x340] ss:$8 sps:$4 sm:$0xff] (!%p2309_p11)   ;;  %1686 = vmatpush1.bf16.msra.mxu0 (!%p2309_p11), %v2710_v44  ;;  %1414 = vmatprep.subr.bf16.mxu1 (!%p2309_p11), %v2711_v45  ;;  %v1112_v44 = vshrl.u32 (!%p2309_p11), %v3187_v31, 16  ;;  %v1115_v45 = vshll.u32 (!%p2309_p11), %v3187_v31, 16 }
 0x131   : > { %983 = vst [vmem:[#allocation2] sm:$0xff] %v945_v46  ;;  %v949_v52 = vadd.f32 %v948_v51, %v675_v28  ;;  %v950_v54 = vpop.f32.mrb[3].mxu0  ;;  %v2713_v46 = vld [vmem:[%s2943_s13 + $0x244] ss:$8 sps:$4 sm:$0xff] (!%p2309_p11)   ;;  %v2716_v49 = vld [vmem:[%s2943_s13 + $0x240] ss:$8 sps:$4 sm:$0xff] (!%p2309_p11)   ;;  %1415 = vmatpush1.bf16.msra.mxu1 (!%p2309_p11), %v2715_v47 }
 0x132   : > { %984 = vst [vmem:[#allocation2 + $0x8] sm:$0xff] %v947_v20  ;;  %v951_v55 = vadd.f32 %v950_v54, %v677_v53  ;;  %v2717_v20 = vld [vmem:[%s2943_s13 + $0x354] ss:$8 sps:$4 sm:$0xff] (!%p2309_p11)   ;;  %1687 = vmatprep.subr.bf16.mxu0 (!%p2309_p11), %v2713_v46  ;;  %v2721_v51 = vld [vmem:[%s2943_s13 + $0x350] ss:$8 sps:$4 sm:$0xff] (!%p2309_p11)  }
 0x133   : > { %985 = vst [vmem:[#allocation2 + $0x10] sm:$0xff] %v949_v52  ;;  %v2719_v28 = vld [vmem:[%s2943_s13 + $0x254] ss:$8 sps:$4 sm:$0xff] (!%p2309_p11)   ;;  %v2722_v52 = vld [vmem:[%s2943_s13 + $0x250] ss:$8 sps:$4 sm:$0xff] (!%p2309_p11)   ;;  %1416 = vmatprep.subr.bf16.mxu1 (!%p2309_p11), %v2717_v20 }
 0x134   : > { %986 = vst [vmem:[#allocation2 + $0x18] sm:$0xff] %v951_v55  ;;  %1688 = vmatpush1.bf16.msra.mxu0 (!%p2309_p11), %v2716_v49  ;;  %v2723_v53 = vld [vmem:[%s2943_s13 + $0x364] ss:$8 sps:$4 sm:$0xff] (!%p2309_p11)   ;;  %v2727_v55 = vld [vmem:[%s2943_s13 + $0x360] ss:$8 sps:$4 sm:$0xff] (!%p2309_p11)   ;;  %v3200_v20 = vld [vmem:[%s2999_s9 + $0x50] sm:$0xff] (!%p2309_p11) }
 0x135   : > { %v681_v56 = vpop.f32.mrb[4].mxu1  ;;  %1689 = vmatprep.subr.bf16.mxu0 (!%p2309_p11), %v2719_v28  ;;  %v2725_v54 = vld [vmem:[%s2943_s13 + $0x264] ss:$8 sps:$4 sm:$0xff] (!%p2309_p11)   ;;  %1417 = vmatpush1.bf16.msra.mxu1 (!%p2309_p11), %v2721_v51  ;;  %v2767_v46 = vld [vmem:[%s2943_s13 + $0x2d4] ss:$8 sps:$4 sm:$0xff] (!%p2309_p11)  }
 0x136   : > { %v954_v57 = vpop.f32.mrb[4].mxu0  ;;  %v683_v60 = vpop.f32.mrb[5].mxu1  ;;  %1418 = vmatprep.subr.bf16.mxu1 (!%p2309_p11), %v2723_v53  ;;  %v1117_v53 = vrot.slane (!%p2309_p11), %v1115_v45, 5 }
 0x137   : > { %v955_v59 = vadd.f32 %v954_v57, %v681_v56  ;;  %v956_v61 = vpop.f32.mrb[5].mxu0  ;;  %v685_v0 = vpop.f32.mrb[6].mxu1  ;;  %v2728_v56 = vld [vmem:[%s2943_s13 + $0x260] ss:$8 sps:$4 sm:$0xff] (!%p2309_p11)   ;;  %v2729_v57 = vld [vmem:[%s2943_s13 + $0x374] ss:$8 sps:$4 sm:$0xff] (!%p2309_p11)  }
 0x138   : > { %v957_v62 = vadd.f32 %v956_v61, %v683_v60  ;;  %v958_v1 = vpop.f32.mrb[6].mxu0  ;;  %v687_v3 = vpop.f32.mrb[7].mxu1  ;;  %1690 = vmatpush1.bf16.msra.mxu0 (!%p2309_p11), %v2722_v52  ;;  %v2733_v60 = vld [vmem:[%s2943_s13 + $0x370] ss:$8 sps:$4 sm:$0xff] (!%p2309_p11)   ;;  %v1114_v52 = vrot.slane (!%p2309_p11), %v1112_v44, 4 }
 0x139   : > { %987 = vst [vmem:[#allocation2 + $0x20] sm:$0xff] %v955_v59  ;;  %v959_v2 = vadd.f32 %v958_v1, %v685_v0  ;;  %v960_v4 = vpop.f32.mrb[7].mxu0  ;;  %1691 = vmatprep.subr.bf16.mxu0 (!%p2309_p11), %v2725_v54  ;;  %v2731_v59 = vld [vmem:[%s2943_s13 + $0x274] ss:$8 sps:$4 sm:$0xff] (!%p2309_p11)   ;;  %1419 = vmatpush1.bf16.msra.mxu1 (!%p2309_p11), %v2727_v55  ;;  %v2734_v61 = vld [vmem:[%s2943_s13 + $0x270] ss:$8 sps:$4 sm:$0xff] (!%p2309_p11)  }
 0x13a   : > { %988 = vst [vmem:[#allocation2 + $0x28] sm:$0xff] %v957_v62  ;;  %v961_v5 = vadd.f32 %v960_v4, %v687_v3  ;;  %v2735_v62 = vld [vmem:[%s2943_s13 + $0x384] ss:$8 sps:$4 sm:$0xff] (!%p2309_p11)   ;;  %1420 = vmatprep.subr.bf16.mxu1 (!%p2309_p11), %v2729_v57  ;;  %v2739_v1 = vld [vmem:[%s2943_s13 + $0x380] ss:$8 sps:$4 sm:$0xff] (!%p2309_p11)   ;;  %v1107_v55 = vshll.u32 (!%p2309_p11), %v2352_v42, 16 }
 0x13b   : > { %989 = vst [vmem:[#allocation2 + $0x30] sm:$0xff] %v959_v2  ;;  %v2737_v0 = vld [vmem:[%s2943_s13 + $0x284] ss:$8 sps:$4 sm:$0xff] (!%p2309_p11)   ;;  %v2740_v2 = vld [vmem:[%s2943_s13 + $0x280] ss:$8 sps:$4 sm:$0xff] (!%p2309_p11)  }
 0x13c   : > { %990 = vst [vmem:[#allocation2 + $0x38] sm:$0xff] %v961_v5  ;;  %1692 = vmatpush1.bf16.msra.mxu0 (!%p2309_p11), %v2728_v56  ;;  %v2741_v3 = vld [vmem:[%s2943_s13 + $0x394] ss:$8 sps:$4 sm:$0xff] (!%p2309_p11)   ;;  %v2745_v5 = vld [vmem:[%s2943_s13 + $0x390] ss:$8 sps:$4 sm:$0xff] (!%p2309_p11)   ;;  %v1121_v56 = vshll.u32 (!%p2309_p11), %v2353_v43, 16 }
 0x13d   : > { %v691_v6 = vpop.f32.mrb[8].mxu1  ;;  %1693 = vmatprep.subr.bf16.mxu0 (!%p2309_p11), %v2731_v59  ;;  %1421 = vmatpush1.bf16.msra.mxu1 (!%p2309_p11), %v2733_v60  ;;  %v2743_v4 = vld [vmem:[%s2943_s13 + $0x294] ss:$8 sps:$4 sm:$0xff] (!%p2309_p11)   ;;  %v3203_v57 = vld [vmem:[%s2999_s9 + $0x60] sm:$0xff] (!%p2309_p11)  ;;  %v2769_v59 = vld [vmem:[%s2943_s13 + $0x3d0] ss:$8 sps:$4 sm:$0xff] (!%p2309_p11)  }
 0x13e   : > { %v964_v7 = vpop.f32.mrb[8].mxu0  ;;  %v693_v9 = vpop.f32.mrb[9].mxu1  ;;  %1422 = vmatprep.subr.bf16.mxu1 (!%p2309_p11), %v2735_v62  ;;  %v2770_v60 = vld [vmem:[%s2943_s13 + $0x2d0] ss:$8 sps:$4 sm:$0xff] (!%p2309_p11)  }
 0x13f   : > { %v965_v8 = vadd.f32 %v964_v7, %v691_v6  ;;  %v966_v10 = vpop.f32.mrb[9].mxu0  ;;  %v695_v12 = vpop.f32.mrb[10].mxu1  ;;  %v2746_v6 = vld [vmem:[%s2943_s13 + $0x290] ss:$8 sps:$4 sm:$0xff] (!%p2309_p11)   ;;  %v2747_v7 = vld [vmem:[%s2943_s13 + $0x3a4] ss:$8 sps:$4 sm:$0xff] (!%p2309_p11)  }
 0x140   : > { %v967_v11 = vadd.f32 %v966_v10, %v693_v9  ;;  %v968_v13 = vpop.f32.mrb[10].mxu0  ;;  %v697_v15 = vpop.f32.mrb[11].mxu1  ;;  %1694 = vmatpush1.bf16.msra.mxu0 (!%p2309_p11), %v2734_v61  ;;  %v2751_v9 = vld [vmem:[%s2943_s13 + $0x3a0] ss:$8 sps:$4 sm:$0xff] (!%p2309_p11)  }
 0x141   : > { %991 = vst [vmem:[#allocation2 + $0x40] sm:$0xff] %v965_v8  ;;  %v969_v14 = vadd.f32 %v968_v13, %v695_v12  ;;  %v970_v16 = vpop.f32.mrb[11].mxu0  ;;  %1695 = vmatprep.subr.bf16.mxu0 (!%p2309_p11), %v2737_v0  ;;  %1423 = vmatpush1.bf16.msra.mxu1 (!%p2309_p11), %v2739_v1  ;;  %v2749_v8 = vld [vmem:[%s2943_s13 + $0x2a4] ss:$8 sps:$4 sm:$0xff] (!%p2309_p11)   ;;  %v2752_v10 = vld [vmem:[%s2943_s13 + $0x2a0] ss:$8 sps:$4 sm:$0xff] (!%p2309_p11)   ;;  %v1118_v0 = vor.u32 (!%p2309_p11), %v1117_v53, %v1114_v52 }
 0x142   : > { %992 = vst [vmem:[#allocation2 + $0x48] sm:$0xff] %v967_v11  ;;  %v971_v18 = vadd.f32 %v970_v16, %v697_v15  ;;  %1424 = vmatprep.subr.bf16.mxu1 (!%p2309_p11), %v2741_v3  ;;  %v2753_v11 = vld [vmem:[%s2943_s13 + $0x3b4] ss:$8 sps:$4 sm:$0xff] (!%p2309_p11)   ;;  %v2757_v13 = vld [vmem:[%s2943_s13 + $0x3b0] ss:$8 sps:$4 sm:$0xff] (!%p2309_p11)   ;;  %v1126_v1 = vshrl.u32 (!%p2309_p11), %v3200_v20, 16 }
 0x143   : > { %993 = vst [vmem:[#allocation2 + $0x50] sm:$0xff] %v969_v14  ;;  %v2755_v12 = vld [vmem:[%s2943_s13 + $0x2b4] ss:$8 sps:$4 sm:$0xff] (!%p2309_p11)   ;;  %v2758_v14 = vld [vmem:[%s2943_s13 + $0x2b0] ss:$8 sps:$4 sm:$0xff] (!%p2309_p11)  }
 0x144   : > { %994 = vst [vmem:[#allocation2 + $0x58] sm:$0xff] %v971_v18  ;;  %1696 = vmatpush1.bf16.msra.mxu0 (!%p2309_p11), %v2740_v2  ;;  %v3168_v15 = vld [vmem:[%s2999_s9 + $0x10] sm:$0xff] (!%p2309_p11)  ;;  %v2759_v16 = vld [vmem:[%s2943_s13 + $0x3c4] ss:$8 sps:$4 sm:$0xff] (!%p2309_p11)  }
 0x145   : > { %v701_v19 = vpop.f32.mrb[12].mxu1  ;;  %1697 = vmatprep.subr.bf16.mxu0 (!%p2309_p11), %v2743_v4  ;;  %1425 = vmatpush1.bf16.msra.mxu1 (!%p2309_p11), %v2745_v5  ;;  %v3172_v18 = vld [vmem:[%s2999_s9 + $0x20] sm:$0xff] (!%p2309_p11)  ;;  %v1129_v5 = vshll.u32 (!%p2309_p11), %v3200_v20, 16 }
 0x146   : > { %v974_v21 = vpop.f32.mrb[12].mxu0  ;;  %v703_v23 = vpop.f32.mrb[13].mxu1  ;;  %1002 = sbr.rel (%p2309_p11) target bundleno = 599 (0x257), region = 36  ;;  %1426 = vmatprep.subr.bf16.mxu1 (!%p2309_p11), %v2747_v7  ;;  %v2771_v2 = vld [vmem:[%s2943_s13 + $0x3e4] ss:$8 sps:$4 sm:$0xff] (!%p2309_p11)  }
 0x147   : > { %v975_v22 = vadd.f32 %v974_v21, %v701_v19  ;;  %v976_v24 = vpop.f32.mrb[13].mxu0  ;;  %v705_v50 = vpop.f32.mrb[14].mxu1  ;;  %v2350_v19 = vld [vmem:[%s2999_s9 + $0x18] sm:$0x11] (!%p2309_p11)  ;;  %v2351_v21 = vld [vmem:[%s2999_s9 + $0x28] sm:$0x11] (!%p2309_p11) }
 0x148   : > { %v977_v48 = vadd.f32 %v976_v24, %v703_v23  ;;  %v978_v25 = vpop.f32.mrb[14].mxu0  ;;  %v707_v27 = vpop.f32.mrb[15].mxu1  ;;  %1698 = vmatpush1.bf16.msra.mxu0 (!%p2309_p11), %v2746_v6  ;;  %v1073_v23 = vshll.u32 (!%p2309_p11), %v3168_v15, 16  ;;  %v1079_v24 = vshll.u32 (!%p2309_p11), %v2350_v19, 16  ;;  %v2773_v3 = vld [vmem:[%s2943_s13 + $0x2e4] ss:$8 sps:$4 sm:$0xff] (!%p2309_p11)  }
 0x149   : > { %995 = vst [vmem:[#allocation2 + $0x60] sm:$0xff] %v975_v22  ;;  %v979_v26 = vadd.f32 %v978_v25, %v705_v50  ;;  %v980_v29 = vpop.f32.mrb[15].mxu0  ;;  %1699 = vmatprep.subr.bf16.mxu0 (!%p2309_p11), %v2749_v8  ;;  %v1070_v22 = vshrl.u32 (!%p2309_p11), %v3168_v15, 16  ;;  %1427 = vmatpush1.bf16.msra.mxu1 (!%p2309_p11), %v2751_v9  ;;  %v1087_v50 = vshll.u32 (!%p2309_p11), %v3172_v18, 16  ;;  %v3181_v25 = vld [vmem:[%s2999_s9 + $0x30] sm:$0xff] (!%p2309_p11)  ;;  %v1140_v8 = vshrl.u32 (!%p2309_p11), %v3203_v57, 16 }
 0x14a   : > { %996 = vst [vmem:[#allocation2 + $0x68] sm:$0xff] %v977_v48  ;;  %v981_v30 = vadd.f32 %v980_v29, %v707_v27  ;;  %v1084_v48 = vshrl.u32 (!%p2309_p11), %v3172_v18, 16  ;;  %1428 = vmatprep.subr.bf16.mxu1 (!%p2309_p11), %v2753_v11  ;;  %v1093_v29 = vshll.u32 (!%p2309_p11), %v2351_v21, 16  ;;  %v1075_v34 = vrot.slane (!%p2309_p11), %v1073_v23, 5  ;;  %v2775_v6 = vld [vmem:[%s2943_s13 + $0x3e0] ss:$8 sps:$4 sm:$0xff] (!%p2309_p11)  }
 0x14b   : > { %997 = vst [vmem:[#allocation2 + $0x70] sm:$0xff] %v979_v26  ;;  %v2761_v26 = vld [vmem:[%s2943_s13 + $0x2c4] ss:$8 sps:$4 sm:$0xff] (!%p2309_p11)   ;;  %v1072_v27 = vrot.slane (!%p2309_p11), %v1070_v22, 4  ;;  %v1089_v36 = vrot.slane (!%p2309_p11), %v1087_v50, 5  ;;  %v1081_v38 = vrot.slane (!%p2309_p11), %v1079_v24, 5 }
 0x14c   : > { %998 = vst [vmem:[#allocation2 + $0x78] sm:$0xff] %v981_v30  ;;  %1700 = vmatpush1.bf16.msra.mxu0 (!%p2309_p11), %v2752_v10  ;;  %v2431_v30 = vcombine.high (!%p2309_p11), %v3168_v15, %v3172_v18  ;;  %v1086_v35 = vrot.slane (!%p2309_p11), %v1084_v48, 4  ;;  %v1095_v39 = vrot.slane (!%p2309_p11), %v1093_v29, 5  ;;  %v1098_v40 = vshrl.u32 (!%p2309_p11), %v3181_v25, 16  ;;  %v2776_v7 = vld [vmem:[%s2943_s13 + $0x2e0] ss:$8 sps:$4 sm:$0xff] (!%p2309_p11)  }
 0x14d   : > { %1701 = vmatprep.subr.bf16.mxu0 %v2755_v12  ;;  %v1101_v58 = vshll.u32 %v3181_v25, 16  ;;  %1429 = vmatpush1.bf16.msra.mxu1 %v2757_v13  ;;  %v1076_v63 = vor.u32 %v1075_v34, %v1072_v27  ;;  %v2777_v9 = vld [vmem:[%s2943_s13 + $0x3f4] ss:$8 sps:$4 sm:$0xff]   ;;  %v1109_v12 = vrot.slane %v1107_v55, 5  ;;  %v1143_v13 = vshll.u32 %v3203_v57, 16 }
 0x14e   : > { %1711 = vmatprep.mubr.bf16.mxu0 %v2431_v30  ;;  %v1090_v41 = vor.u32 %v1089_v36, %v1086_v35  ;;  %1430 = vmatprep.subr.bf16.mxu1 %v2759_v16  ;;  %v1100_v47 = vrot.slane %v1098_v40, 4  ;;  %v2779_v10 = vld [vmem:[%s2943_s13 + $0x2f4] ss:$8 sps:$4 sm:$0xff]   ;;  %v1123_v16 = vrot.slane %v1121_v56, 5  ;;  %v1128_v21 = vrot.slane %v1126_v1, 4 }
 0x14f   : > { %v1103_v49 = vrot.slane %v1101_v58, 5  ;;  %v1077_v28 = vrot.slane %v1076_v63, 4  ;;  %v2354_v19 = vld [vmem:[%s2999_s9 + $0x58] sm:$0x11]  ;;  %v1131_v22 = vrot.slane %v1129_v5, 5  ;;  %v1142_v24 = vrot.slane %v1140_v8, 4 }
 0x150   : > { %1702 = vmatpush1.bf16.msra.mxu0 %v2758_v14  ;;  %v1091_v51 = vrot.slane %v1090_v41, 4  ;;  %v1119_v14 = vrot.slane %v1118_v0, 4  ;;  %v2355_v23 = vld [vmem:[%s2999_s9 + $0x68] sm:$0x11]  ;;  %v1145_v48 = vrot.slane %v1143_v13, 5  ;;  %v3230_v50 = vld [vmem:[%s2999_s9 + $0x70] sm:$0xff]  ;;  %v2430_v63 = vcombine.low %v3168_v15, %v3172_v18 }
 0x151   : > { %1703 = vmatprep.subr.bf16.mxu0 %v2761_v26  ;;  %v1104_v54 = vor.u32 %v1103_v49, %v1100_v47  ;;  %1431 = vmatpush1.bf16.msra.mxu1 %v2763_v32  ;;  %v3209_v61 = vsel %vm3039_vm2, %v1077_v28, %v1081_v38  ;;  %v3233_v26 = vld [vmem:[%s2999_s9 + $0x80] sm:$0xff]  ;;  %v1135_v29 = vshll.u32 %v2354_v19, 16  ;;  %v2781_v30 = vld [vmem:[%s2943_s13 + $0x3f0] ss:$8 sps:$4 sm:$0xff]   ;;  %v1132_v34 = vor.u32 %v1131_v22, %v1128_v21  ;;  %v2357_v28 = vld [vmem:[%s2999_s9 + $0x88] sm:$0x11] }
 0x152   : > { %v3213_v62 = vsel %vm3039_vm2, %v1091_v51, %v1095_v39  ;;  %1432 = vmatprep.subr.bf16.mxu1 %v2765_v37  ;;  %v2782_v32 = vld [vmem:[%s2943_s13 + $0x2f0] ss:$8 sps:$4 sm:$0xff]   ;;  %v1149_v35 = vshll.u32 %v2355_v23, 16  ;;  %v1154_v36 = vshrl.u32 %v3230_v50, 16  ;;  %v1146_v37 = vor.u32 %v1145_v48, %v1142_v24 }
 0x153   : > { %v2391_v4 = vcombine.high %v3209_v61, %v3213_v62  ;;  %v1105_v11 = vrot.slane %v1104_v54, 4  ;;  %v1157_v38 = vshll.u32 %v3230_v50, 16  ;;  %v1168_v39 = vshrl.u32 %v3233_v26, 16  ;;  %v1005_v21 = vld [vmem:[#allocation2 + $0x10] sm:$0xff] }
 0x154   : > { %1704 = vmatpush1.bf16.msra.mxu0 %v2764_v33  ;;  %v1124_v33 = vsel %vm3039_vm2, %v1119_v14, %v1123_v16  ;;  %v1171_v40 = vshll.u32 %v3233_v26, 16  ;;  %v2390_v58 = vcombine.low %v3209_v61, %v3213_v62  ;;  %v2433_v41 = vcombine.high %v3181_v25, %v3187_v31 }
 0x155   : > { %1705 = vmatprep.subr.bf16.mxu0 %v2767_v46  ;;  %1438 = vmatprep.mubr.bf16.mxu1 %v2391_v4  ;;  %v1110_v27 = vsel %vm3039_vm2, %v1105_v11, %v1109_v12  ;;  %v1137_v42 = vrot.slane %v1135_v29, 5  ;;  %v1133_v44 = vrot.slane %v1132_v34, 4  ;;  %v1151_v45 = vrot.slane %v1149_v35, 5  ;;  %v2356_v46 = vld [vmem:[%s2999_s9 + $0x78] sm:$0x11]  ;;  %v1003_v11 = vld [vmem:[#allocation2] sm:$0xff] }
 0x156   : > { %1433 = vmatpush1.bf16.msra.mxu1 %v2769_v59  ;;  %v2393_v43 = vcombine.high %v1110_v27, %v1124_v33  ;;  %v1156_v47 = vrot.slane %v1154_v36, 4  ;;  %v1147_v49 = vrot.slane %v1146_v37, 4  ;;  %v1159_v51 = vrot.slane %v1157_v38, 5  ;;  %v1007_v34 = vld [vmem:[#allocation2 + $0x20] sm:$0xff]  ;;  %v1008_v38 = vld [vmem:[#allocation2 + $0x28] sm:$0xff] }
 0x157   : > { %1434 = vmatprep.subr.bf16.mxu1 %v2771_v2  ;;  %v1170_v52 = vrot.slane %v1168_v39, 4  ;;  %v1173_v53 = vrot.slane %v1171_v40, 5  ;;  %v1163_v15 = vshll.u32 %v2356_v46, 16  ;;  %v1177_v18 = vshll.u32 %v2357_v28, 16 }
 0x158   : > { %1706 = vmatpush1.bf16.msra.mxu0 %v2770_v60  ;;  %v1138_v54 = vsel %vm3039_vm2, %v1133_v44, %v1137_v42  ;;  %v1152_v55 = vsel %vm3039_vm2, %v1147_v49, %v1151_v45  ;;  %v1160_v56 = vor.u32 %v1159_v51, %v1156_v47  ;;  %v2392_v60 = vcombine.low %v1110_v27, %v1124_v33  ;;  %v1006_v27 = vld [vmem:[#allocation2 + $0x18] sm:$0xff] }
 0x159   : > { %1707 = vmatprep.subr.bf16.mxu0 %v2773_v3  ;;  %v1174_v59 = vor.u32 %v1173_v53, %v1170_v52  ;;  %v2432_v61 = vcombine.low %v3181_v25, %v3187_v31  ;;  %v2395_v62 = vcombine.high %v1138_v54, %v1152_v55  ;;  %v2435_v0 = vcombine.high %v3200_v20, %v3203_v57  ;;  %v1010_v45 = vld [vmem:[#allocation2 + $0x38] sm:$0xff]  ;;  %v1011_v53 = vld [vmem:[#allocation2 + $0x40] sm:$0xff] }
 0x15a   : > { %1435 = vmatpush1.bf16.msra.mxu1 %v2775_v6  ;;  %v1161_v1 = vrot.slane %v1160_v56, 4  ;;  %v1165_v2 = vrot.slane %v1163_v15, 5  ;;  %v1179_v4 = vrot.slane %v1177_v18, 5  ;;  %v2434_v25 = vcombine.low %v3200_v20, %v3203_v57  ;;  %v1004_v20 = vld [vmem:[#allocation2 + $0x8] sm:$0xff] }
 0x15b   : > { %1436 = vmatprep.subr.bf16.mxu1 %v2777_v9  ;;  %v1175_v3 = vrot.slane %v1174_v59, 4  ;;  %v2437_v8 = vcombine.high %v3230_v50, %v3233_v26 }
 0x15c   : > { %1708 = vmatpush1.bf16.msra.mxu0 %v2776_v7  ;;  %v1166_v5 = vsel %vm3039_vm2, %v1161_v1, %v1165_v2  ;;  %v2394_v7 = vcombine.low %v1138_v54, %v1152_v55  ;;  %v1012_v55 = vld [vmem:[#allocation2 + $0x48] sm:$0xff] }
 0x15d   : > { %1709 = vmatprep.subr.bf16.mxu0 %v2779_v10  ;;  %v1180_v6 = vsel %vm3039_vm2, %v1175_v3, %v1179_v4  ;;  %v2436_v10 = vcombine.low %v3230_v50, %v3233_v26  ;;  %v1014_v3 = vld [vmem:[#allocation2 + $0x58] sm:$0xff] }
 0x15e   : > { %1437 = vmatpush1.bf16.msra.mxu1 %v2781_v30  ;;  %v2397_v31 = vcombine.high %v1166_v5, %v1180_v6  ;;  %v2396_v9 = vcombine.low %v1166_v5, %v1180_v6 }
 0x160   : > { %1710 = vmatpush1.bf16.msra.mxu0 %v2782_v32 }
 0x161   : > { %1439 = vmatmul.mubr.bf16.vlgmr.msra.gmra.mrb[0].mxu1 %v2390_v58 }
 0x162   : > { %1448 = vmatprep.mubr.bf16.mxu1 %v2393_v43 }
 0x163   : > { %1712 = vmatmul.mubr.bf16.vlgmr.msra.gmra.mrb[0].mxu0 %v2430_v63  ;;  %v1009_v63 = vld [vmem:[#allocation2 + $0x30] sm:$0xff] }
 0x164   : > { %1721 = vmatprep.mubr.bf16.mxu0 %v2433_v41 }
 0x169   : > { %1449 = vmatmul.mubr.bf16.gmra.mrb[4].mxu1 %v2392_v60 }
 0x16a   : > { %1458 = vmatprep.mubr.bf16.mxu1 %v2395_v62 }
 0x16b   : > { %1722 = vmatmul.mubr.bf16.gmra.mrb[4].mxu0 %v2432_v61  ;;  %v1013_v61 = vld [vmem:[#allocation2 + $0x50] sm:$0xff] }
 0x16c   : > { %1731 = vmatprep.mubr.bf16.mxu0 %v2435_v0 }
 0x171   : > { %1459 = vmatmul.mubr.bf16.gmra.mrb[8].mxu1 %v2394_v7 }
 0x172   : > { %1468 = vmatprep.mubr.bf16.mxu1 %v2397_v31 }
 0x173   : > { %1732 = vmatmul.mubr.bf16.gmra.mrb[8].mxu0 %v2434_v25 }
 0x174   : > { %1741 = vmatprep.mubr.bf16.mxu0 %v2437_v8  ;;  %v1015_v8 = vld [vmem:[#allocation2 + $0x60] sm:$0xff] }
 0x179   : > { %1469 = vmatmul.mubr.bf16.gmra.mrb[12].mxu1 %v2396_v9 }
 0x17b   : > { %1742 = vmatmul.mubr.bf16.gmra.mrb[12].mxu0 %v2436_v10 }
 0x234   : > { %v1440_v17 = vpop.f32.mrb[0].mxu1 }
 0x235   : > { %v1442_v14 = vpop.f32.mrb[1].mxu1 }
 0x236   : > { %v1713_v12 = vpop.f32.mrb[0].mxu0  ;;  %v1444_v19 = vpop.f32.mrb[2].mxu1 }
 0x237   : > { %v1714_v13 = vadd.f32 %v1713_v12, %v1440_v17  ;;  %v1715_v57 = vpop.f32.mrb[1].mxu0  ;;  %v1446_v48 = vpop.f32.mrb[3].mxu1 }
 0x238   : > { %v1716_v16 = vadd.f32 %v1715_v57, %v1442_v14  ;;  %v1717_v22 = vpop.f32.mrb[2].mxu0 }
 0x239   : > { %v1752_v23 = vadd.f32 %v1714_v13, %v1003_v11  ;;  %v1718_v24 = vadd.f32 %v1717_v22, %v1444_v19  ;;  %v1719_v29 = vpop.f32.mrb[3].mxu0  ;;  %v1016_v11 = vld [vmem:[#allocation2 + $0x68] sm:$0xff]  ;;  %v1018_v22 = vld [vmem:[#allocation2 + $0x78] sm:$0xff] }
 0x23a   : > { %v1753_v30 = vadd.f32 %v1716_v16, %v1004_v20  ;;  %v1720_v50 = vadd.f32 %v1719_v29, %v1446_v48  ;;  %v1017_v20 = vld [vmem:[#allocation2 + $0x70] sm:$0xff] }
 0x23b   : > { %1768 = vst [vmem:[#allocation2] sm:$0xff] %v1752_v23  ;;  %v1754_v26 = vadd.f32 %v1718_v24, %v1005_v21 }
 0x23c   : > { %1769 = vst [vmem:[#allocation2 + $0x8] sm:$0xff] %v1753_v30  ;;  %v1755_v32 = vadd.f32 %v1720_v50, %v1006_v27  ;;  %v1450_v33 = vpop.f32.mrb[4].mxu1 }
 0x23d   : > { %1770 = vst [vmem:[#allocation2 + $0x10] sm:$0xff] %v1754_v26  ;;  %v1452_v37 = vpop.f32.mrb[5].mxu1 }
 0x23e   : > { %1771 = vst [vmem:[#allocation2 + $0x18] sm:$0xff] %v1755_v32  ;;  %v1723_v35 = vpop.f32.mrb[4].mxu0  ;;  %v1454_v58 = vpop.f32.mrb[6].mxu1 }
 0x23f   : > { %v1724_v36 = vadd.f32 %v1723_v35, %v1450_v33  ;;  %v1725_v39 = vpop.f32.mrb[5].mxu0  ;;  %v1456_v44 = vpop.f32.mrb[7].mxu1 }
 0x240   : > { %v1726_v40 = vadd.f32 %v1725_v39, %v1452_v37  ;;  %v1727_v41 = vpop.f32.mrb[6].mxu0 }
 0x241   : > { %v1756_v42 = vadd.f32 %v1724_v36, %v1007_v34  ;;  %v1728_v43 = vadd.f32 %v1727_v41, %v1454_v58  ;;  %v1729_v46 = vpop.f32.mrb[7].mxu0 }
 0x242   : > { %v1757_v47 = vadd.f32 %v1726_v40, %v1008_v38  ;;  %v1730_v49 = vadd.f32 %v1729_v46, %v1456_v44 }
 0x243   : > { %1772 = vst [vmem:[#allocation2 + $0x20] sm:$0xff] %v1756_v42  ;;  %v1758_v28 = vadd.f32 %v1728_v43, %v1009_v63 }
 0x244   : > { %1773 = vst [vmem:[#allocation2 + $0x28] sm:$0xff] %v1757_v47  ;;  %v1759_v51 = vadd.f32 %v1730_v49, %v1010_v45  ;;  %v1460_v52 = vpop.f32.mrb[8].mxu1 }
 0x245   : > { %1774 = vst [vmem:[#allocation2 + $0x30] sm:$0xff] %v1758_v28  ;;  %v1462_v54 = vpop.f32.mrb[9].mxu1 }
 0x246   : > { %1775 = vst [vmem:[#allocation2 + $0x38] sm:$0xff] %v1759_v51  ;;  %v1733_v15 = vpop.f32.mrb[8].mxu0  ;;  %v1464_v60 = vpop.f32.mrb[10].mxu1 }
 0x247   : > { %v1734_v18 = vadd.f32 %v1733_v15, %v1460_v52  ;;  %v1735_v56 = vpop.f32.mrb[9].mxu0  ;;  %v1466_v2 = vpop.f32.mrb[11].mxu1 }
 0x248   : > { %v1736_v59 = vadd.f32 %v1735_v56, %v1462_v54  ;;  %v1737_v62 = vpop.f32.mrb[10].mxu0 }
 0x249   : > { %v1760_v0 = vadd.f32 %v1734_v18, %v1011_v53  ;;  %v1738_v1 = vadd.f32 %v1737_v62, %v1464_v60  ;;  %v1739_v4 = vpop.f32.mrb[11].mxu0 }
 0x24a   : > { %v1761_v5 = vadd.f32 %v1736_v59, %v1012_v55  ;;  %v1740_v6 = vadd.f32 %v1739_v4, %v1466_v2 }
 0x24b   : > { %1776 = vst [vmem:[#allocation2 + $0x40] sm:$0xff] %v1760_v0  ;;  %v1762_v7 = vadd.f32 %v1738_v1, %v1013_v61 }
 0x24c   : > { %1777 = vst [vmem:[#allocation2 + $0x48] sm:$0xff] %v1761_v5  ;;  %v1763_v25 = vadd.f32 %v1740_v6, %v1014_v3  ;;  %v1470_v31 = vpop.f32.mrb[12].mxu1 }
 0x24d   : > { %1778 = vst [vmem:[#allocation2 + $0x50] sm:$0xff] %v1762_v7  ;;  %v1472_v17 = vpop.f32.mrb[13].mxu1 }
 0x24e   : > { %1779 = vst [vmem:[#allocation2 + $0x58] sm:$0xff] %v1763_v25  ;;  %v1743_v9 = vpop.f32.mrb[12].mxu0  ;;  %v1474_v14 = vpop.f32.mrb[14].mxu1 }
 0x24f   : > { %v1744_v10 = vadd.f32 %v1743_v9, %v1470_v31  ;;  %v1745_v12 = vpop.f32.mrb[13].mxu0  ;;  %v1476_v21 = vpop.f32.mrb[15].mxu1 }
 0x250   : > { %v1746_v13 = vadd.f32 %v1745_v12, %v1472_v17  ;;  %v1747_v57 = vpop.f32.mrb[14].mxu0 }
 0x251   : > { %v1764_v16 = vadd.f32 %v1744_v10, %v1015_v8  ;;  %v1748_v19 = vadd.f32 %v1747_v57, %v1474_v14  ;;  %v1749_v23 = vpop.f32.mrb[15].mxu0 }
 0x252   : > { %v1765_v24 = vadd.f32 %v1746_v13, %v1016_v11  ;;  %v1750_v48 = vadd.f32 %v1749_v23, %v1476_v21 }
 0x253   : > { %1780 = vst [vmem:[#allocation2 + $0x60] sm:$0xff] %v1764_v16  ;;  %v1766_v27 = vadd.f32 %v1748_v19, %v1017_v20 }
 0x254   : > { %1781 = vst [vmem:[#allocation2 + $0x68] sm:$0xff] %v1765_v24  ;;  %v1767_v29 = vadd.f32 %v1750_v48, %v1018_v22 }
 0x255   : > { %1782 = vst [vmem:[#allocation2 + $0x70] sm:$0xff] %v1766_v27 }
 0x256   : > { %1783 = vst [vmem:[#allocation2 + $0x78] sm:$0xff] %v1767_v29 }
 0x257 PF: > { %v1784_v30 = vld [vmem:[#allocation2] sm:$0xff]  ;;  %v1785_v50 = vld [vmem:[#allocation2 + $0x8] sm:$0xff]  ;;  %v1786_v26 = vld [vmem:[#allocation2 + $0x10] sm:$0xff]  ;;  %v1885_v43 = vlaneseq  ;;  %vm1868_vm3 = vcmask 1040384   ;;  %s2480_s11 = sshll.u32 (%p2918_p5), %s2829_s17, 1  ;;  %s2481_s12 = sshll.u32 (%p2918_p5), %s2833_s18, 5 }
 0x258   : > { %v3271_v32 = vld [vmem:[#allocation2 + $0x18] sm:$0xff]  ;;  %v3273_v33 = vld [vmem:[#allocation2 + $0x20] sm:$0xff]  ;;  %v3275_v34 = vld [vmem:[#allocation2 + $0x28] sm:$0xff]  ;;  %v1800_v35 = vadd.f32 %v1786_v26, %v1784_v30  ;;  %v1826_v36 = vmul.f32 %v1784_v30, %v1784_v30  ;;  %v1827_v40 = vmul.f32 %v1785_v50, %v1785_v50  ;;  %v1828_v58 = vmul.f32 %v1786_v26, %v1786_v26  ;;  %s2001_s13 = sadd.s32 (%p2918_p5), %s2481_s12, %s2480_s11 }
 0x259   : > { %v3277_v37 = vld [vmem:[#allocation2 + $0x30] sm:$0xff]  ;;  %v3279_v38 = vld [vmem:[#allocation2 + $0x38] sm:$0xff]  ;;  %v1813_v39 = vadd.f32 %v3271_v32, %v1785_v50  ;;  %v1829_v63 = vmul.f32 %v3271_v32, %v3271_v32  ;;  %v3284_v41 = vld [vmem:[#allocation2 + $0x40] sm:$0xff]  ;;  %v1830_v47 = vmul.f32 %v3273_v33, %v3273_v33  ;;  %v1831_v49 = vmul.f32 %v3275_v34, %v3275_v34  ;;  %s2482_s26 = sshll.u32 (%p2918_p5), %s2001_s13, 2 }
 0x25a   : > { %v1801_v42 = vadd.f32 %v1800_v35, %v3273_v33  ;;  %v3287_v44 = vld [vmem:[#allocation2 + $0x48] sm:$0xff]  ;;  %v3289_v45 = vld [vmem:[#allocation2 + $0x50] sm:$0xff]  ;;  %v3296_v28 = vld [vmem:[#allocation2 + $0x58] sm:$0xff]  ;;  %v1832_v52 = vmul.f32 %v3277_v37, %v3277_v37  ;;  %v1833_v53 = vmul.f32 %v3279_v38, %v3279_v38  ;;  %v1834_v54 = vmul.f32 %v3284_v41, %v3284_v41  ;;  %s2003_s24 = scalar_lea.vmem (%p2918_p5), %s3400_s3, %s2482_s26 }
 0x25b   : > { %v1814_v46 = vadd.f32 %v1813_v39, %v3275_v34  ;;  %v3303_v15 = vld [vmem:[#allocation2 + $0x60] sm:$0xff]  ;;  %v1842_v55 = vadd.f32 %v1828_v58, %v1826_v36  ;;  %v1855_v56 = vadd.f32 %v1829_v63, %v1827_v40  ;;  %v3308_v59 = vld [vmem:[#allocation2 + $0x68] sm:$0xff]  ;;  %v1835_v61 = vmul.f32 %v3287_v44, %v3287_v44 }
 0x25c   : > { %v1802_v51 = vadd.f32 %v1801_v42, %v3277_v37  ;;  %v1836_v62 = vmul.f32 %v3289_v45, %v3289_v45  ;;  %v1886_v0 = vshrl.u32 %v1885_v43, 7  ;;  %v3315_v1 = vld [vmem:[#allocation2 + $0x70] sm:$0xff]  ;;  %v1837_v3 = vmul.f32 %v3296_v28, %v3296_v28  ;;  %v1883_v6 = vld [vmem:[%s3399_s2] sm:$0x3] }
 0x25d   : > { %v1815_v18 = vadd.f32 %v1814_v46, %v3279_v38  ;;  %v1843_v4 = vadd.f32 %v1842_v55, %v1830_v47  ;;  %v1856_v5 = vadd.f32 %v1855_v56, %v1831_v49  ;;  %v3323_v7 = vld [vmem:[#allocation2 + $0x78] sm:$0xff]  ;;  %v1838_v31 = vmul.f32 %v3303_v15, %v3303_v15 }
 0x25e   : > { %v1803_v60 = vadd.f32 %v1802_v51, %v3284_v41  ;;  %v1887_v8 = vsub.s32 0, %v1886_v0  ;;  %v1891_v9 = vsub.s32 1, %v1886_v0  ;;  %v1839_v17 = vmul.f32 %v3308_v59, %v3308_v59 }
 0x25f   : > { %v1816_v2 = vadd.f32 %v1815_v18, %v3287_v44  ;;  %v1844_v11 = vadd.f32 %v1843_v4, %v1832_v52  ;;  %v1857_v12 = vadd.f32 %v1856_v5, %v1833_v53  ;;  %v1840_v14 = vmul.f32 %v3315_v1, %v3315_v1 }
 0x260   : > { %v1804_v25 = vadd.f32 %v1803_v60, %v3289_v45  ;;  %v1888_v20 = vrot.slane %v1883_v6, %v1887_v8  ;;  %v1892_v57 = vrot.slane %v1883_v6, %v1891_v9  ;;  %v1841_v19 = vmul.f32 %v3323_v7, %v3323_v7 }
 0x261   : > { %v1817_v10 = vadd.f32 %v1816_v2, %v3296_v28  ;;  %v1845_v21 = vadd.f32 %v1844_v11, %v1834_v54  ;;  %v1858_v22 = vadd.f32 %v1857_v12, %v1835_v61 }
 0x262   : > { %v1805_v13 = vadd.f32 %v1804_v25, %v3303_v15  ;;  %v1895_v24 = vadd.f32 %v1888_v20, %v1784_v30  ;;  %v1896_v48 = vadd.f32 %v1892_v57, %v1785_v50  ;;  %v1897_v27 = vadd.f32 %v1888_v20, %v1786_v26 }
 0x263   : > { %v1818_v16 = vadd.f32 %v1817_v10, %v3308_v59  ;;  %v1846_v35 = vadd.f32 %v1845_v21, %v1836_v62  ;;  %v1859_v36 = vadd.f32 %v1858_v22, %v1837_v3  ;;  %v1898_v39 = vadd.f32 %v1892_v57, %v3271_v32 }
 0x264   : > { %v1806_v23 = vadd.f32 %v1805_v13, %v3315_v1  ;;  %v2486_v58 = vpack.c.bf16 %v1896_v48, %v1895_v24  ;;  %v1899_v63 = vadd.f32 %v1888_v20, %v3273_v33  ;;  %v1900_v42 = vadd.f32 %v1892_v57, %v3275_v34 }
 0x265   : > { %v1819_v29 = vadd.f32 %v1818_v16, %v3323_v7  ;;  %v1847_v46 = vadd.f32 %v1846_v35, %v1838_v31  ;;  %v1860_v30 = vadd.f32 %v1859_v36, %v1839_v17  ;;  %v2487_v47 = vpack.c.bf16 %v1898_v39, %v1897_v27 }
 0x266   : > { %v1807_v40 = vrot.slane %v1806_v23, 4  ;;  %1975 = vst [vmem:[%s3116_s8] sm:$0xff] %v2486_v58  ;;  %v2488_v26 = vpack.c.bf16 %v1900_v42, %v1899_v63  ;;  %v1901_v49 = vadd.f32 %v1888_v20, %v3277_v37  ;;  %v1902_v51 = vadd.f32 %v1892_v57, %v3279_v38 }
 0x267   : > { %v1820_v43 = vrot.slane %v1819_v29, 4  ;;  %v1848_v52 = vadd.f32 %v1847_v46, %v1840_v14  ;;  %v1861_v53 = vadd.f32 %v1860_v30, %v1841_v19  ;;  %1976 = vst [vmem:[%s3116_s8 + $0x8] sm:$0xff] %v2487_v47  ;;  %v1903_v33 = vadd.f32 %v1888_v20, %v3284_v41 }
 0x268   : > { %v1808_v50 = vadd.f32 %v1807_v40, %v1806_v23  ;;  %1977 = vst [vmem:[%s3116_s8 + $0x10] sm:$0xff] %v2488_v26  ;;  %v2489_v18 = vpack.c.bf16 %v1902_v51, %v1901_v49  ;;  %v1904_v54 = vadd.f32 %v1892_v57, %v3287_v44  ;;  %v1905_v55 = vadd.f32 %v1888_v20, %v3289_v45 }
 0x269   : > { %v1821_v32 = vadd.f32 %v1820_v43, %v1819_v29  ;;  %v1849_v60 = vrot.slane %v1848_v52, 4  ;;  %v1862_v37 = vrot.slane %v1861_v53, 4  ;;  %v1906_v38 = vadd.f32 %v1892_v57, %v3296_v28 }
 0x26a   : > { %v1809_v34 = vrot.slane %v1808_v50, 2  ;;  %1978 = vst [vmem:[%s3116_s8 + $0x18] sm:$0xff] %v2489_v18  ;;  %v2490_v62 = vpack.c.bf16 %v1904_v54, %v1903_v33  ;;  %v1907_v41 = vadd.f32 %v1888_v20, %v3303_v15  ;;  %v1908_v0 = vadd.f32 %v1892_v57, %v3308_v59 }
 0x26b   : > { %v1822_v56 = vrot.slane %v1821_v32, 2  ;;  %v1850_v3 = vadd.f32 %v1849_v60, %v1848_v52  ;;  %v1863_v44 = vadd.f32 %v1862_v37, %v1861_v53  ;;  %v2491_v4 = vpack.c.bf16 %v1906_v38, %v1905_v55 }
 0x26c   : > { %v1810_v61 = vadd.f32 %v1809_v34, %v1808_v50  ;;  %1979 = vst [vmem:[%s3116_s8 + $0x20] sm:$0xff] %v2490_v62  ;;  %v2492_v45 = vpack.c.bf16 %v1908_v0, %v1907_v41  ;;  %v1909_v5 = vadd.f32 %v1888_v20, %v3315_v1  ;;  %v1910_v28 = vadd.f32 %v1892_v57, %v3323_v7 }
 0x26d   : > { %v1823_v2 = vadd.f32 %v1822_v56, %v1821_v32  ;;  %v1851_v31 = vrot.slane %v1850_v3, 2  ;;  %v1864_v8 = vrot.slane %v1863_v44, 2  ;;  %1980 = vst [vmem:[%s3116_s8 + $0x28] sm:$0xff] %v2491_v4  ;;  %v2045_v57 = vld [vmem:[%s3116_s8] sm:$0xff] (%p2918_p5) }
 0x26e   : > { %v1811_v6 = vrot.slane %v1810_v61, 1  ;;  %1981 = vst [vmem:[%s3116_s8 + $0x30] sm:$0xff] %v2492_v45  ;;  %v2493_v15 = vpack.c.bf16 %v1910_v28, %v1909_v5  ;;  %v2047_v16 = vld [vmem:[%s3116_s8 + $0x8] sm:$0xff] (%p2918_p5)  ;;  %2046 = vst [vmem:[%s2003_s24] sm:$0xff] (%p2918_p5), %v2045_v57 }
 0x26f   : > { %v1824_v25 = vrot.slane %v1823_v2, 1  ;;  %v1852_v59 = vadd.f32 %v1851_v31, %v1850_v3  ;;  %v1865_v9 = vadd.f32 %v1864_v8, %v1863_v44  ;;  %v2049_v19 = vld [vmem:[%s3116_s8 + $0x10] sm:$0xff] (%p2918_p5)  ;;  %2048 = vst [vmem:[%s2003_s24 + $0x10] sm:$0xff] (%p2918_p5), %v2047_v16 }
 0x270   : > { %1982 = vst [vmem:[%s3116_s8 + $0x38] sm:$0xff] %v2493_v15  ;;  %v1812_v10 = vadd.f32 %v1811_v6, %v1810_v61  ;;  %2050 = vst [vmem:[%s2003_s24 + $0x20] sm:$0xff] (%p2918_p5), %v2049_v19 }
 0x271   : > { %v1825_v17 = vadd.f32 %v1824_v25, %v1823_v2  ;;  %v1853_v11 = vrot.slane %v1852_v59, 1  ;;  %v1866_v12 = vrot.slane %v1865_v9, 1  ;;  %v2051_v21 = vld [vmem:[%s3116_s8 + $0x18] sm:$0xff] (%p2918_p5) }
 0x272   : > { %1998 = sbr.rel (!%p2918_p5) target bundleno = 633 (0x279), region = 40  ;;  %2052 = vst [vmem:[%s2003_s24 + $0x30] sm:$0xff] (%p2918_p5), %v2051_v21 }
 0x273   : > { %v1854_v13 = vadd.f32 %v1853_v11, %v1852_v59  ;;  %v1867_v1 = vadd.f32 %v1866_v12, %v1865_v9  ;;  %v2053_v22 = vld [vmem:[%s3116_s8 + $0x20] sm:$0xff] (%p2918_p5) }
 0x274   : > { %v2055_v23 = vld [vmem:[%s3116_s8 + $0x28] sm:$0xff] (%p2918_p5)  ;;  %2054 = vst [vmem:[%s2003_s24 + $0x40] sm:$0xff] (%p2918_p5), %v2053_v22 }
 0x275   : > { %v1869_v14 = vsel %vm1868_vm3, %v1812_v10, %v1854_v13  ;;  %v1870_v7 = vsel %vm1868_vm3, %v1825_v17, %v1867_v1  ;;  %v2057_v24 = vld [vmem:[%s3116_s8 + $0x30] sm:$0xff] (%p2918_p5)  ;;  %2056 = vst [vmem:[%s2003_s24 + $0x50] sm:$0xff] (%p2918_p5), %v2055_v23 }
 0x276   : > { %v1873_v20 = vcombine.low %v1869_v14, %v1870_v7  ;;  %2058 = vst [vmem:[%s2003_s24 + $0x60] sm:$0xff] (%p2918_p5), %v2057_v24 }
 0x277   : > { %v2059_v48 = vld [vmem:[%s3116_s8 + $0x38] sm:$0xff] (%p2918_p5) }
 0x278   : > { %2470 = vst.sshfl [vmem:[%s2954_s28] sm:$0x33 pattern:$0x76325410] %v1873_v20  ;;  %2060 = vst [vmem:[%s2003_s24 + $0x70] sm:$0xff] (%p2918_p5), %v2059_v48 }
 0x279 PF: > { %s15_s21 = sadd.s32 1, %s2845_s21   ;;  %s3405_s15 = smov %s2825_s16 }
 0x27a   : > { %p12_p12 = scmp.ge.s32.totalorder %s15_s21, 6   ;;  %s3406_s16 = smov %s2929_s30 }
 0x27b   : > { %s3407_s17 = smov %s2837_s19  ;;  %s3408_s18 = smov %s2841_s20 }
 0x27c   : > { %s3409_s19 = smov %s3412_s22  ;;  %s3410_s20 = smov %s3416_s23 }
 0x27d   :  { %14 = sbr.rel (!%p12_p12) target bundleno = 4 (0x4), region = 123 }

// kernel: tile.48
= control target key start
LH: loop header
LB: loop body
LE: loop exit
PB: predicated region body
PF: predicated region fallthrough
CT: control target
= control target key end

     0   :  { %s22_s0 = inlined_call_operand.vmem [shape: f32[64], index: 0, kind: input, shape index: {}]   ;;  %s23_s1 = inlined_call_operand.vmem [shape: f32[2,64], index: 1, kind: output, shape index: {}]  }
   0x1   :  { %v4_v0 = vld [vmem:[%s22_s0] ss:$0 sm:$0xff] }
   0x2   :  { %5 = vst [vmem:[%s23_s1] sm:$0x3] %v4_v0 }

// kernel: tile.49
= control target key start
LH: loop header
LB: loop body
LE: loop exit
PB: predicated region body
PF: predicated region fallthrough
CT: control target
= control target key end

     0   :  { %vm7_vm0 = vcmask 523264   ;;  %vm13_vm1 = vcmask 1048064   ;;  %s39_s0 = inlined_call_operand.vmem [shape: f32[2,64], index: 0, kind: input, shape index: {}]   ;;  %s40_s1 = inlined_call_operand.vmem [shape: f32[1,128], index: 1, kind: output, shape index: {}]  }
   0x1   :  { %v4_v0 = vld [vmem:[%s39_s0] sm:$0x3]  ;;  %s22_s0 = smov 64  }
   0x2   :  { %5 = vst [vmem:[#allocation1] sm:$0x3] %v4_v0 }
   0x9   :  { %v10_v1 = vld [vmem:[#allocation1 + $0x1] sm:$0x1]   ;;  %v6_v2 = vld [vmem:[#allocation1] sm:$0x1]  }
   0xa   :  { %11 = vrot.lane.b32.xlu0 %v10_v1, %s22_s0  ;;  %8 = vst.msk [vmem:[#allocation0] sm:$0x1] %vm7_vm0, %v6_v2  }
  0x7c   :  { %v12_v3 = vpop.permute.xlu0 %11  }
  0x7d   :  { %14 = vst.msk [vmem:[#allocation0] sm:$0x1] %vm13_vm1, %v12_v3  }
  0x84   :  { %v18_v4 = vld [vmem:[#allocation0] sm:$0x1] }
  0x85   :  { %20 = vst [vmem:[%s40_s1] sm:$0x1] %v18_v4 }

// kernel: soft_share.7
= control target key start
LH: loop header
LB: loop body
LE: loop exit
PB: predicated region body
PF: predicated region fallthrough
CT: control target
= control target key end

     0   :  { %s836_s12 = smov 0   ;;  %s1095_s0 = inlined_call_operand.vmem [shape: bf16[1024,128], index: 0, kind: input, shape index: {}]   ;;  %s1096_s1 = inlined_call_operand.vmem [shape: f32[1,128], index: 1, kind: input, shape index: {}]   ;;  %s1097_s2 = inlined_call_operand.vmem [shape: f32[1,128], index: 2, kind: input, shape index: {}]   ;;  %s1098_s3 = inlined_call_operand.vmem [shape: f32[1024,128], index: 3, kind: output, shape index: {}]  }
   0x1 LB: > { %s628_s13 = sadd.s32 4294967295, %s814_s12   ;;  %p632_p0 = scmp.ge.s32.totalorder %s814_s12, 1  ;;  %s814_s12 = sphi %s836_s12, %s13_s12  }
   0x2   : > { %p138_p1 = scmp.lt.s32.totalorder %s814_s12, 3 }
   0x4   : > { %p139_p2 = pnand %p632_p0, %p138_p1 }
   0x5   : > { %s633_s14 = sshll.u32 (!%p139_p2), %s628_s13, 6  ;;  %v855_v0 = vld [vmem:[%s1096_s1] ss:$0 sm:$0xff] (!%p139_p2) }
   0x6   : > { %142 = sbr.rel (%p139_p2) target bundleno = 85 (0x55), region = 32  ;;  %p163_p3 = scmp.lt.s32.totalorder (!%p139_p2), %s633_s14, 127  ;;  %v864_v9 = vld [vmem:[%s1097_s2] ss:$0 sm:$0xff] (!%p139_p2) }
   0xd   : > { %s1100_s14 = smov (!%p163_p3, %s633_s14), 127 }
   0xe   : > { %s634_s15 = sshll.u32 %s1100_s14, 2  ;;  %s636_s23 = sshll.u32 %s1100_s14, 3 }
   0xf   : > { %s850_s18 = scalar_lea.vmem %s1095_s0, %s634_s15  ;;  %s882_s26 = scalar_lea.vmem %s1098_s3, %s636_s23 }
  0x10   : > { %v642_v1 = vld [vmem:[%s850_s18] sm:$0xff]   ;;  %v769_v2 = vld [vmem:[%s850_s18 + $0x8] sm:$0xff]   ;;  %v770_v3 = vld [vmem:[%s850_s18 + $0x10] sm:$0xff]  }
  0x11   : > { %v643_v4 = vunpack.c.l.bf16 %v642_v1  ;;  %v644_v5 = vunpack.c.h.bf16 %v642_v1  ;;  %v647_v6 = vunpack.c.l.bf16 %v769_v2  ;;  %v648_v7 = vunpack.c.h.bf16 %v769_v2  ;;  %v771_v8 = vld [vmem:[%s850_s18 + $0x18] sm:$0xff]   ;;  %v772_v30 = vld [vmem:[%s850_s18 + $0x20] sm:$0xff]   ;;  %v773_v31 = vld [vmem:[%s850_s18 + $0x28] sm:$0xff]  }
  0x12   : > { %v651_v10 = vunpack.c.l.bf16 %v770_v3  ;;  %v652_v11 = vunpack.c.h.bf16 %v770_v3  ;;  %v655_v12 = vunpack.c.l.bf16 %v771_v8  ;;  %v656_v13 = vunpack.c.h.bf16 %v771_v8  ;;  %v774_v36 = vld [vmem:[%s850_s18 + $0x30] sm:$0xff]   ;;  %v775_v37 = vld [vmem:[%s850_s18 + $0x38] sm:$0xff]   ;;  %v776_v3 = vld [vmem:[%s850_s18 + $0x40] sm:$0xff]  }
  0x13   : > { %v309_v14 = vmul.f32 %v643_v4, %v855_v0  ;;  %v310_v15 = vmul.f32 %v644_v5, %v855_v0  ;;  %v311_v16 = vmul.f32 %v647_v6, %v855_v0  ;;  %v312_v17 = vmul.f32 %v648_v7, %v855_v0  ;;  %v777_v4 = vld [vmem:[%s850_s18 + $0x48] sm:$0xff]  }
  0x14   : > { %v313_v18 = vmul.f32 %v651_v10, %v855_v0  ;;  %v314_v19 = vmul.f32 %v652_v11, %v855_v0  ;;  %v315_v20 = vmul.f32 %v655_v12, %v855_v0  ;;  %v316_v21 = vmul.f32 %v656_v13, %v855_v0  ;;  %v778_v10 = vld [vmem:[%s850_s18 + $0x50] sm:$0xff]   ;;  %v779_v11 = vld [vmem:[%s850_s18 + $0x58] sm:$0xff]  }
  0x15   : > { %v380_v22 = vadd.f32 %v864_v9, %v309_v14  ;;  %v381_v23 = vadd.f32 %v864_v9, %v310_v15  ;;  %v382_v24 = vadd.f32 %v864_v9, %v311_v16  ;;  %v383_v25 = vadd.f32 %v864_v9, %v312_v17 }
  0x16   : > { %v384_v26 = vadd.f32 %v864_v9, %v313_v18  ;;  %v385_v27 = vadd.f32 %v864_v9, %v314_v19  ;;  %v386_v28 = vadd.f32 %v864_v9, %v315_v20  ;;  %v387_v29 = vadd.f32 %v864_v9, %v316_v21 }
  0x17   : > { %v444_v32 = vmax.f32 %v380_v22, 0.0  ;;  %v445_v33 = vmax.f32 %v381_v23, 0.0  ;;  %v446_v34 = vmax.f32 %v382_v24, 0.0  ;;  %v447_v35 = vmax.f32 %v383_v25, 0.0 }
  0x18   : > { %v448_v38 = vmax.f32 %v384_v26, 0.0  ;;  %v449_v39 = vmax.f32 %v385_v27, 0.0  ;;  %v450_v40 = vmax.f32 %v386_v28, 0.0  ;;  %v451_v41 = vmax.f32 %v387_v29, 0.0 }
  0x19   : > { %508 = vst [vmem:[%s882_s26] sm:$0xff] %v444_v32  ;;  %509 = vst [vmem:[%s882_s26 + $0x8] sm:$0xff] %v445_v33  ;;  %v659_v42 = vunpack.c.l.bf16 %v772_v30  ;;  %v660_v43 = vunpack.c.h.bf16 %v772_v30  ;;  %v663_v44 = vunpack.c.l.bf16 %v773_v31  ;;  %v664_v45 = vunpack.c.h.bf16 %v773_v31 }
  0x1a   : > { %510 = vst [vmem:[%s882_s26 + $0x10] sm:$0xff] %v446_v34  ;;  %511 = vst [vmem:[%s882_s26 + $0x18] sm:$0xff] %v447_v35  ;;  %v667_v46 = vunpack.c.l.bf16 %v774_v36  ;;  %v668_v47 = vunpack.c.h.bf16 %v774_v36  ;;  %v671_v48 = vunpack.c.l.bf16 %v775_v37  ;;  %v672_v49 = vunpack.c.h.bf16 %v775_v37 }
  0x1b   : > { %512 = vst [vmem:[%s882_s26 + $0x20] sm:$0xff] %v448_v38  ;;  %513 = vst [vmem:[%s882_s26 + $0x28] sm:$0xff] %v449_v39  ;;  %v317_v50 = vmul.f32 %v659_v42, %v855_v0  ;;  %v318_v51 = vmul.f32 %v660_v43, %v855_v0  ;;  %v319_v52 = vmul.f32 %v663_v44, %v855_v0  ;;  %v675_v16 = vunpack.c.l.bf16 %v776_v3 }
  0x1c   : > { %514 = vst [vmem:[%s882_s26 + $0x30] sm:$0xff] %v450_v40  ;;  %515 = vst [vmem:[%s882_s26 + $0x38] sm:$0xff] %v451_v41  ;;  %v320_v53 = vmul.f32 %v664_v45, %v855_v0  ;;  %v321_v54 = vmul.f32 %v667_v46, %v855_v0  ;;  %v322_v55 = vmul.f32 %v668_v47, %v855_v0  ;;  %v676_v17 = vunpack.c.h.bf16 %v776_v3  ;;  %v780_v40 = vld [vmem:[%s850_s18 + $0x60] sm:$0xff]   ;;  %v781_v41 = vld [vmem:[%s850_s18 + $0x68] sm:$0xff]  }
  0x1d   : > { %v323_v56 = vmul.f32 %v671_v48, %v855_v0  ;;  %v324_v57 = vmul.f32 %v672_v49, %v855_v0  ;;  %v388_v58 = vadd.f32 %v864_v9, %v317_v50  ;;  %v389_v59 = vadd.f32 %v864_v9, %v318_v51  ;;  %v782_v46 = vld [vmem:[%s850_s18 + $0x70] sm:$0xff]   ;;  %v783_v47 = vld [vmem:[%s850_s18 + $0x78] sm:$0xff]  }
  0x1e   : > { %v390_v60 = vadd.f32 %v864_v9, %v319_v52  ;;  %v391_v61 = vadd.f32 %v864_v9, %v320_v53  ;;  %v392_v62 = vadd.f32 %v864_v9, %v321_v54  ;;  %v393_v63 = vadd.f32 %v864_v9, %v322_v55 }
  0x1f   : > { %v394_v1 = vadd.f32 %v864_v9, %v323_v56  ;;  %v395_v2 = vadd.f32 %v864_v9, %v324_v57  ;;  %v452_v5 = vmax.f32 %v388_v58, 0.0  ;;  %v453_v6 = vmax.f32 %v389_v59, 0.0 }
  0x20   : > { %v454_v7 = vmax.f32 %v390_v60, 0.0  ;;  %v455_v8 = vmax.f32 %v391_v61, 0.0  ;;  %v456_v12 = vmax.f32 %v392_v62, 0.0  ;;  %v457_v13 = vmax.f32 %v393_v63, 0.0 }
  0x21   : > { %v458_v14 = vmax.f32 %v394_v1, 0.0  ;;  %v459_v15 = vmax.f32 %v395_v2, 0.0  ;;  %516 = vst [vmem:[%s882_s26 + $0x40] sm:$0xff] %v452_v5  ;;  %517 = vst [vmem:[%s882_s26 + $0x48] sm:$0xff] %v453_v6  ;;  %v679_v18 = vunpack.c.l.bf16 %v777_v4  ;;  %v680_v19 = vunpack.c.h.bf16 %v777_v4 }
  0x22   : > { %518 = vst [vmem:[%s882_s26 + $0x50] sm:$0xff] %v454_v7  ;;  %519 = vst [vmem:[%s882_s26 + $0x58] sm:$0xff] %v455_v8  ;;  %v683_v20 = vunpack.c.l.bf16 %v778_v10  ;;  %v684_v21 = vunpack.c.h.bf16 %v778_v10  ;;  %v687_v22 = vunpack.c.l.bf16 %v779_v11  ;;  %v688_v23 = vunpack.c.h.bf16 %v779_v11 }
  0x23   : > { %520 = vst [vmem:[%s882_s26 + $0x60] sm:$0xff] %v456_v12  ;;  %521 = vst [vmem:[%s882_s26 + $0x68] sm:$0xff] %v457_v13  ;;  %v325_v24 = vmul.f32 %v675_v16, %v855_v0  ;;  %v326_v25 = vmul.f32 %v676_v17, %v855_v0  ;;  %v327_v26 = vmul.f32 %v679_v18, %v855_v0  ;;  %v691_v52 = vunpack.c.l.bf16 %v780_v40 }
  0x24   : > { %522 = vst [vmem:[%s882_s26 + $0x70] sm:$0xff] %v458_v14  ;;  %523 = vst [vmem:[%s882_s26 + $0x78] sm:$0xff] %v459_v15  ;;  %v328_v27 = vmul.f32 %v680_v19, %v855_v0  ;;  %v329_v28 = vmul.f32 %v683_v20, %v855_v0  ;;  %v330_v29 = vmul.f32 %v684_v21, %v855_v0  ;;  %v692_v53 = vunpack.c.h.bf16 %v780_v40  ;;  %v784_v14 = vld [vmem:[%s850_s18 + $0x80] sm:$0xff]   ;;  %v785_v15 = vld [vmem:[%s850_s18 + $0x88] sm:$0xff]  }
  0x25   : > { %v331_v30 = vmul.f32 %v687_v22, %v855_v0  ;;  %v332_v31 = vmul.f32 %v688_v23, %v855_v0  ;;  %v396_v32 = vadd.f32 %v864_v9, %v325_v24  ;;  %v397_v33 = vadd.f32 %v864_v9, %v326_v25  ;;  %v786_v20 = vld [vmem:[%s850_s18 + $0x90] sm:$0xff]   ;;  %v787_v21 = vld [vmem:[%s850_s18 + $0x98] sm:$0xff]  }
  0x26   : > { %v398_v34 = vadd.f32 %v864_v9, %v327_v26  ;;  %v399_v35 = vadd.f32 %v864_v9, %v328_v27  ;;  %v400_v36 = vadd.f32 %v864_v9, %v329_v28  ;;  %v401_v37 = vadd.f32 %v864_v9, %v330_v29 }
  0x27   : > { %v402_v38 = vadd.f32 %v864_v9, %v331_v30  ;;  %v403_v39 = vadd.f32 %v864_v9, %v332_v31  ;;  %v460_v42 = vmax.f32 %v396_v32, 0.0  ;;  %v461_v43 = vmax.f32 %v397_v33, 0.0 }
  0x28   : > { %v462_v44 = vmax.f32 %v398_v34, 0.0  ;;  %v463_v45 = vmax.f32 %v399_v35, 0.0  ;;  %v464_v48 = vmax.f32 %v400_v36, 0.0  ;;  %v465_v49 = vmax.f32 %v401_v37, 0.0 }
  0x29   : > { %v466_v50 = vmax.f32 %v402_v38, 0.0  ;;  %v467_v51 = vmax.f32 %v403_v39, 0.0  ;;  %524 = vst [vmem:[%s882_s26 + $0x80] sm:$0xff] %v460_v42  ;;  %525 = vst [vmem:[%s882_s26 + $0x88] sm:$0xff] %v461_v43  ;;  %v695_v54 = vunpack.c.l.bf16 %v781_v41  ;;  %v696_v55 = vunpack.c.h.bf16 %v781_v41 }
  0x2a   : > { %526 = vst [vmem:[%s882_s26 + $0x90] sm:$0xff] %v462_v44  ;;  %527 = vst [vmem:[%s882_s26 + $0x98] sm:$0xff] %v463_v45  ;;  %v699_v56 = vunpack.c.l.bf16 %v782_v46  ;;  %v700_v57 = vunpack.c.h.bf16 %v782_v46  ;;  %v703_v58 = vunpack.c.l.bf16 %v783_v47  ;;  %v704_v59 = vunpack.c.h.bf16 %v783_v47 }
  0x2b   : > { %528 = vst [vmem:[%s882_s26 + $0xa0] sm:$0xff] %v464_v48  ;;  %529 = vst [vmem:[%s882_s26 + $0xa8] sm:$0xff] %v465_v49  ;;  %v333_v60 = vmul.f32 %v691_v52, %v855_v0  ;;  %v334_v61 = vmul.f32 %v692_v53, %v855_v0  ;;  %v335_v62 = vmul.f32 %v695_v54, %v855_v0  ;;  %v707_v26 = vunpack.c.l.bf16 %v784_v14 }
  0x2c   : > { %530 = vst [vmem:[%s882_s26 + $0xb0] sm:$0xff] %v466_v50  ;;  %531 = vst [vmem:[%s882_s26 + $0xb8] sm:$0xff] %v467_v51  ;;  %v336_v63 = vmul.f32 %v696_v55, %v855_v0  ;;  %v337_v1 = vmul.f32 %v699_v56, %v855_v0  ;;  %v338_v2 = vmul.f32 %v700_v57, %v855_v0  ;;  %v708_v27 = vunpack.c.h.bf16 %v784_v14  ;;  %v788_v50 = vld [vmem:[%s850_s18 + $0xa0] sm:$0xff]   ;;  %v789_v51 = vld [vmem:[%s850_s18 + $0xa8] sm:$0xff]  }
  0x2d   : > { %v339_v3 = vmul.f32 %v703_v58, %v855_v0  ;;  %v340_v4 = vmul.f32 %v704_v59, %v855_v0  ;;  %v404_v5 = vadd.f32 %v864_v9, %v333_v60  ;;  %v405_v6 = vadd.f32 %v864_v9, %v334_v61  ;;  %v790_v56 = vld [vmem:[%s850_s18 + $0xb0] sm:$0xff]   ;;  %v791_v57 = vld [vmem:[%s850_s18 + $0xb8] sm:$0xff]  }
  0x2e   : > { %v406_v7 = vadd.f32 %v864_v9, %v335_v62  ;;  %v407_v8 = vadd.f32 %v864_v9, %v336_v63  ;;  %v408_v10 = vadd.f32 %v864_v9, %v337_v1  ;;  %v409_v11 = vadd.f32 %v864_v9, %v338_v2 }
  0x2f   : > { %v410_v12 = vadd.f32 %v864_v9, %v339_v3  ;;  %v411_v13 = vadd.f32 %v864_v9, %v340_v4  ;;  %v468_v16 = vmax.f32 %v404_v5, 0.0  ;;  %v469_v17 = vmax.f32 %v405_v6, 0.0 }
  0x30   : > { %v470_v18 = vmax.f32 %v406_v7, 0.0  ;;  %v471_v19 = vmax.f32 %v407_v8, 0.0  ;;  %v472_v22 = vmax.f32 %v408_v10, 0.0  ;;  %v473_v23 = vmax.f32 %v409_v11, 0.0 }
  0x31   : > { %v474_v24 = vmax.f32 %v410_v12, 0.0  ;;  %v475_v25 = vmax.f32 %v411_v13, 0.0  ;;  %532 = vst [vmem:[%s882_s26 + $0xc0] sm:$0xff] %v468_v16  ;;  %533 = vst [vmem:[%s882_s26 + $0xc8] sm:$0xff] %v469_v17  ;;  %v711_v28 = vunpack.c.l.bf16 %v785_v15  ;;  %v712_v29 = vunpack.c.h.bf16 %v785_v15 }
  0x32   : > { %534 = vst [vmem:[%s882_s26 + $0xd0] sm:$0xff] %v470_v18  ;;  %535 = vst [vmem:[%s882_s26 + $0xd8] sm:$0xff] %v471_v19  ;;  %v715_v30 = vunpack.c.l.bf16 %v786_v20  ;;  %v716_v31 = vunpack.c.h.bf16 %v786_v20  ;;  %v719_v32 = vunpack.c.l.bf16 %v787_v21  ;;  %v720_v33 = vunpack.c.h.bf16 %v787_v21 }
  0x33   : > { %536 = vst [vmem:[%s882_s26 + $0xe0] sm:$0xff] %v472_v22  ;;  %537 = vst [vmem:[%s882_s26 + $0xe8] sm:$0xff] %v473_v23  ;;  %v341_v34 = vmul.f32 %v707_v26, %v855_v0  ;;  %v342_v35 = vmul.f32 %v708_v27, %v855_v0  ;;  %v343_v36 = vmul.f32 %v711_v28, %v855_v0  ;;  %v723_v62 = vunpack.c.l.bf16 %v788_v50 }
  0x34   : > { %538 = vst [vmem:[%s882_s26 + $0xf0] sm:$0xff] %v474_v24  ;;  %539 = vst [vmem:[%s882_s26 + $0xf8] sm:$0xff] %v475_v25  ;;  %v344_v37 = vmul.f32 %v712_v29, %v855_v0  ;;  %v345_v38 = vmul.f32 %v715_v30, %v855_v0  ;;  %v346_v39 = vmul.f32 %v716_v31, %v855_v0  ;;  %v724_v63 = vunpack.c.h.bf16 %v788_v50  ;;  %v792_v24 = vld [vmem:[%s850_s18 + $0xc0] sm:$0xff]   ;;  %v793_v25 = vld [vmem:[%s850_s18 + $0xc8] sm:$0xff]  }
  0x35   : > { %v347_v40 = vmul.f32 %v719_v32, %v855_v0  ;;  %v348_v41 = vmul.f32 %v720_v33, %v855_v0  ;;  %v412_v42 = vadd.f32 %v864_v9, %v341_v34  ;;  %v413_v43 = vadd.f32 %v864_v9, %v342_v35  ;;  %v794_v30 = vld [vmem:[%s850_s18 + $0xd0] sm:$0xff]   ;;  %v795_v31 = vld [vmem:[%s850_s18 + $0xd8] sm:$0xff]  }
  0x36   : > { %v414_v44 = vadd.f32 %v864_v9, %v343_v36  ;;  %v415_v45 = vadd.f32 %v864_v9, %v344_v37  ;;  %v416_v46 = vadd.f32 %v864_v9, %v345_v38  ;;  %v417_v47 = vadd.f32 %v864_v9, %v346_v39 }
  0x37   : > { %v418_v48 = vadd.f32 %v864_v9, %v347_v40  ;;  %v419_v49 = vadd.f32 %v864_v9, %v348_v41  ;;  %v476_v52 = vmax.f32 %v412_v42, 0.0  ;;  %v477_v53 = vmax.f32 %v413_v43, 0.0 }
  0x38   : > { %v478_v54 = vmax.f32 %v414_v44, 0.0  ;;  %v479_v55 = vmax.f32 %v415_v45, 0.0  ;;  %v480_v58 = vmax.f32 %v416_v46, 0.0  ;;  %v481_v59 = vmax.f32 %v417_v47, 0.0 }
  0x39   : > { %v482_v60 = vmax.f32 %v418_v48, 0.0  ;;  %v483_v61 = vmax.f32 %v419_v49, 0.0  ;;  %540 = vst [vmem:[%s882_s26 + $0x100] sm:$0xff] %v476_v52  ;;  %541 = vst [vmem:[%s882_s26 + $0x108] sm:$0xff] %v477_v53  ;;  %v727_v1 = vunpack.c.l.bf16 %v789_v51  ;;  %v728_v2 = vunpack.c.h.bf16 %v789_v51 }
  0x3a   : > { %542 = vst [vmem:[%s882_s26 + $0x110] sm:$0xff] %v478_v54  ;;  %543 = vst [vmem:[%s882_s26 + $0x118] sm:$0xff] %v479_v55  ;;  %v731_v3 = vunpack.c.l.bf16 %v790_v56  ;;  %v732_v4 = vunpack.c.h.bf16 %v790_v56  ;;  %v735_v5 = vunpack.c.l.bf16 %v791_v57  ;;  %v736_v6 = vunpack.c.h.bf16 %v791_v57 }
  0x3b   : > { %544 = vst [vmem:[%s882_s26 + $0x120] sm:$0xff] %v480_v58  ;;  %545 = vst [vmem:[%s882_s26 + $0x128] sm:$0xff] %v481_v59  ;;  %v349_v7 = vmul.f32 %v723_v62, %v855_v0  ;;  %v350_v8 = vmul.f32 %v724_v63, %v855_v0  ;;  %v351_v10 = vmul.f32 %v727_v1, %v855_v0  ;;  %v739_v36 = vunpack.c.l.bf16 %v792_v24 }
  0x3c   : > { %546 = vst [vmem:[%s882_s26 + $0x130] sm:$0xff] %v482_v60  ;;  %547 = vst [vmem:[%s882_s26 + $0x138] sm:$0xff] %v483_v61  ;;  %v352_v11 = vmul.f32 %v728_v2, %v855_v0  ;;  %v353_v12 = vmul.f32 %v731_v3, %v855_v0  ;;  %v354_v13 = vmul.f32 %v732_v4, %v855_v0  ;;  %v740_v37 = vunpack.c.h.bf16 %v792_v24  ;;  %v796_v60 = vld [vmem:[%s850_s18 + $0xe0] sm:$0xff]   ;;  %v797_v61 = vld [vmem:[%s850_s18 + $0xe8] sm:$0xff]  }
  0x3d   : > { %v355_v14 = vmul.f32 %v735_v5, %v855_v0  ;;  %v356_v15 = vmul.f32 %v736_v6, %v855_v0  ;;  %v420_v16 = vadd.f32 %v864_v9, %v349_v7  ;;  %v421_v17 = vadd.f32 %v864_v9, %v350_v8  ;;  %v798_v3 = vld [vmem:[%s850_s18 + $0xf0] sm:$0xff]   ;;  %v799_v4 = vld [vmem:[%s850_s18 + $0xf8] sm:$0xff]  }
  0x3e   : > { %v422_v18 = vadd.f32 %v864_v9, %v351_v10  ;;  %v423_v19 = vadd.f32 %v864_v9, %v352_v11  ;;  %v424_v20 = vadd.f32 %v864_v9, %v353_v12  ;;  %v425_v21 = vadd.f32 %v864_v9, %v354_v13 }
  0x3f   : > { %v426_v22 = vadd.f32 %v864_v9, %v355_v14  ;;  %v427_v23 = vadd.f32 %v864_v9, %v356_v15  ;;  %v484_v26 = vmax.f32 %v420_v16, 0.0  ;;  %v485_v27 = vmax.f32 %v421_v17, 0.0 }
  0x40   : > { %v486_v28 = vmax.f32 %v422_v18, 0.0  ;;  %v487_v29 = vmax.f32 %v423_v19, 0.0  ;;  %v488_v32 = vmax.f32 %v424_v20, 0.0  ;;  %v489_v33 = vmax.f32 %v425_v21, 0.0 }
  0x41   : > { %v490_v34 = vmax.f32 %v426_v22, 0.0  ;;  %v491_v35 = vmax.f32 %v427_v23, 0.0  ;;  %548 = vst [vmem:[%s882_s26 + $0x140] sm:$0xff] %v484_v26  ;;  %549 = vst [vmem:[%s882_s26 + $0x148] sm:$0xff] %v485_v27  ;;  %v743_v38 = vunpack.c.l.bf16 %v793_v25  ;;  %v744_v39 = vunpack.c.h.bf16 %v793_v25 }
  0x42   : > { %550 = vst [vmem:[%s882_s26 + $0x150] sm:$0xff] %v486_v28  ;;  %551 = vst [vmem:[%s882_s26 + $0x158] sm:$0xff] %v487_v29  ;;  %v747_v40 = vunpack.c.l.bf16 %v794_v30  ;;  %v748_v41 = vunpack.c.h.bf16 %v794_v30  ;;  %v751_v42 = vunpack.c.l.bf16 %v795_v31  ;;  %v752_v43 = vunpack.c.h.bf16 %v795_v31 }
  0x43   : > { %552 = vst [vmem:[%s882_s26 + $0x160] sm:$0xff] %v488_v32  ;;  %553 = vst [vmem:[%s882_s26 + $0x168] sm:$0xff] %v489_v33  ;;  %v357_v44 = vmul.f32 %v739_v36, %v855_v0  ;;  %v358_v45 = vmul.f32 %v740_v37, %v855_v0  ;;  %v359_v46 = vmul.f32 %v743_v38, %v855_v0  ;;  %v755_v10 = vunpack.c.l.bf16 %v796_v60 }
  0x44   : > { %554 = vst [vmem:[%s882_s26 + $0x170] sm:$0xff] %v490_v34  ;;  %555 = vst [vmem:[%s882_s26 + $0x178] sm:$0xff] %v491_v35  ;;  %v360_v47 = vmul.f32 %v744_v39, %v855_v0  ;;  %v361_v48 = vmul.f32 %v747_v40, %v855_v0  ;;  %v362_v49 = vmul.f32 %v748_v41, %v855_v0  ;;  %v756_v11 = vunpack.c.h.bf16 %v796_v60 }
  0x45   : > { %v363_v50 = vmul.f32 %v751_v42, %v855_v0  ;;  %v364_v51 = vmul.f32 %v752_v43, %v855_v0  ;;  %v428_v52 = vadd.f32 %v864_v9, %v357_v44  ;;  %v429_v53 = vadd.f32 %v864_v9, %v358_v45 }
  0x46   : > { %v430_v54 = vadd.f32 %v864_v9, %v359_v46  ;;  %v431_v55 = vadd.f32 %v864_v9, %v360_v47  ;;  %v432_v56 = vadd.f32 %v864_v9, %v361_v48  ;;  %v433_v57 = vadd.f32 %v864_v9, %v362_v49 }
  0x47   : > { %v434_v58 = vadd.f32 %v864_v9, %v363_v50  ;;  %v435_v59 = vadd.f32 %v864_v9, %v364_v51  ;;  %v492_v62 = vmax.f32 %v428_v52, 0.0  ;;  %v493_v63 = vmax.f32 %v429_v53, 0.0 }
  0x48   : > { %v494_v1 = vmax.f32 %v430_v54, 0.0  ;;  %v495_v2 = vmax.f32 %v431_v55, 0.0  ;;  %v496_v5 = vmax.f32 %v432_v56, 0.0  ;;  %v497_v6 = vmax.f32 %v433_v57, 0.0 }
  0x49   : > { %v498_v7 = vmax.f32 %v434_v58, 0.0  ;;  %v499_v8 = vmax.f32 %v435_v59, 0.0  ;;  %556 = vst [vmem:[%s882_s26 + $0x180] sm:$0xff] %v492_v62  ;;  %557 = vst [vmem:[%s882_s26 + $0x188] sm:$0xff] %v493_v63  ;;  %v759_v12 = vunpack.c.l.bf16 %v797_v61  ;;  %v760_v13 = vunpack.c.h.bf16 %v797_v61 }
  0x4a   : > { %558 = vst [vmem:[%s882_s26 + $0x190] sm:$0xff] %v494_v1  ;;  %559 = vst [vmem:[%s882_s26 + $0x198] sm:$0xff] %v495_v2  ;;  %v763_v14 = vunpack.c.l.bf16 %v798_v3  ;;  %v764_v15 = vunpack.c.h.bf16 %v798_v3  ;;  %v767_v16 = vunpack.c.l.bf16 %v799_v4  ;;  %v768_v17 = vunpack.c.h.bf16 %v799_v4 }
  0x4b   : > { %560 = vst [vmem:[%s882_s26 + $0x1a0] sm:$0xff] %v496_v5  ;;  %561 = vst [vmem:[%s882_s26 + $0x1a8] sm:$0xff] %v497_v6  ;;  %v365_v18 = vmul.f32 %v755_v10, %v855_v0  ;;  %v366_v19 = vmul.f32 %v756_v11, %v855_v0  ;;  %v367_v20 = vmul.f32 %v759_v12, %v855_v0 }
  0x4c   : > { %562 = vst [vmem:[%s882_s26 + $0x1b0] sm:$0xff] %v498_v7  ;;  %563 = vst [vmem:[%s882_s26 + $0x1b8] sm:$0xff] %v499_v8  ;;  %v368_v21 = vmul.f32 %v760_v13, %v855_v0  ;;  %v369_v22 = vmul.f32 %v763_v14, %v855_v0  ;;  %v370_v23 = vmul.f32 %v764_v15, %v855_v0 }
  0x4d   : > { %v371_v24 = vmul.f32 %v767_v16, %v855_v0  ;;  %v372_v25 = vmul.f32 %v768_v17, %v855_v0  ;;  %v436_v26 = vadd.f32 %v864_v9, %v365_v18  ;;  %v437_v27 = vadd.f32 %v864_v9, %v366_v19 }
  0x4e   : > { %v438_v28 = vadd.f32 %v864_v9, %v367_v20  ;;  %v439_v29 = vadd.f32 %v864_v9, %v368_v21  ;;  %v440_v30 = vadd.f32 %v864_v9, %v369_v22  ;;  %v441_v31 = vadd.f32 %v864_v9, %v370_v23 }
  0x4f   : > { %v442_v0 = vadd.f32 %v864_v9, %v371_v24  ;;  %v443_v32 = vadd.f32 %v864_v9, %v372_v25  ;;  %v500_v33 = vmax.f32 %v436_v26, 0.0  ;;  %v501_v34 = vmax.f32 %v437_v27, 0.0 }
  0x50   : > { %v502_v35 = vmax.f32 %v438_v28, 0.0  ;;  %v503_v36 = vmax.f32 %v439_v29, 0.0  ;;  %v504_v37 = vmax.f32 %v440_v30, 0.0  ;;  %v505_v38 = vmax.f32 %v441_v31, 0.0 }
  0x51   : > { %v506_v39 = vmax.f32 %v442_v0, 0.0  ;;  %v507_v40 = vmax.f32 %v443_v32, 0.0  ;;  %564 = vst [vmem:[%s882_s26 + $0x1c0] sm:$0xff] %v500_v33  ;;  %565 = vst [vmem:[%s882_s26 + $0x1c8] sm:$0xff] %v501_v34 }
  0x52   : > { %566 = vst [vmem:[%s882_s26 + $0x1d0] sm:$0xff] %v502_v35  ;;  %567 = vst [vmem:[%s882_s26 + $0x1d8] sm:$0xff] %v503_v36 }
  0x53   : > { %568 = vst [vmem:[%s882_s26 + $0x1e0] sm:$0xff] %v504_v37  ;;  %569 = vst [vmem:[%s882_s26 + $0x1e8] sm:$0xff] %v505_v38 }
  0x54   : > { %570 = vst [vmem:[%s882_s26 + $0x1f0] sm:$0xff] %v506_v39  ;;  %571 = vst [vmem:[%s882_s26 + $0x1f8] sm:$0xff] %v507_v40 }
  0x55 PF: > { %s13_s12 = sadd.s32 1, %s814_s12  }
  0x56   : > { %p10_p4 = scmp.ge.s32.totalorder %s13_s12, 4  }
  0x58   :  { %12 = sbr.rel (!%p10_p4) target bundleno = 1 (0x1), region = 62 }

// kernel: soft_share.6
= control target key start
LH: loop header
LB: loop body
LE: loop exit
PB: predicated region body
PF: predicated region fallthrough
CT: control target
= control target key end

     0   :  { %s4035_s15 = smov 0   ;;  %s4037_s16 = smov 0   ;;  %s4821_s0 = inlined_call_operand.vmem [shape: bf16[2,17,17,128], index: 0, kind: input, shape index: {}]   ;;  %s4822_s1 = inlined_call_operand.vmem [shape: bf16[2,4,128,128], index: 1, kind: input, shape index: {}]   ;;  %s4823_s2 = inlined_call_operand.vmem [shape: f32[1,128], index: 2, kind: input, shape index: {}]   ;;  %s4824_s3 = inlined_call_operand.vmem [shape: bf16[2,16,2,16,128], index: 3, kind: output, shape index: {0}]   ;;  %s4825_s4 = inlined_call_operand.vmem [shape: f32[2,2,2,128], index: 4, kind: output, shape index: {1}]  }
   0x1   :  { %s4039_s17 = smov 0   ;;  %s4041_s18 = smov 0  }
   0x2   :  { %s4043_s19 = smov 0   ;;  %s4045_s20 = smov 0  }
   0x3   :  { %s4047_s21 = smov 0  }
   0x4 LB: > { %s24_s22 = sadd.s32 1, %s4000_s19  ;;  %s27_s23 = sadd.s32 1, %s4004_s20  ;;  %s4008_s21 = sphi %s4047_s21, %s15_s21   ;;  %s4004_s20 = sphi %s4045_s20, %s4834_s20   ;;  %s4000_s19 = sphi %s4043_s19, %s4833_s19   ;;  %s3996_s18 = sphi %s4041_s18, %s4832_s18   ;;  %s3992_s17 = sphi %s4039_s17, %s4831_s17   ;;  %s3988_s16 = sphi %s4037_s16, %s4830_s16   ;;  %s3984_s15 = sphi %s4035_s15, %s4829_s15  }
   0x5   : > { %p25_p0 = scmp.ge.s32.totalorder %s24_s22, 2  ;;  %s3110_s24 = sadd.s32 4294967295, %s4008_s21  }
   0x6   : > { %p119_p1 = scmp.ne.s32.totalorder %s3988_s16, %s3984_s15  ;;  %p120_p2 = scmp.eq.s32.totalorder %s3110_s24, 3 }
   0x7   : > { %s4836_s22 = smov (%p25_p0, %s24_s22), 0  ;;  %s4838_s23 = smov (!%p25_p0, %s27_s23), %s4004_s20 }
   0x8   : > { %s105_s25 = ssub.s32 %s4000_s19, %s4836_s22  ;;  %p29_p3 = scmp.ge.s32.totalorder %s4838_s23, 2 }
   0x9   : > { %p3114_p4 = scmp.ge.s32.totalorder %s4008_s21, 1  ;;  %p4081_p5 = por %p120_p2, %p119_p1 }
   0xa   : > { %p191_p6 = scmp.lt.s32.totalorder %s4008_s21, 5  ;;  %s4840_s23 = smov (%p29_p3, %s4838_s23), 0 }
   0xb   : > { %s104_s27 = ssub.s32 %s4004_s20, %s4840_s23  ;;  %s109_s29 = sadd.s32 1, %s3988_s16 }
   0xc   : > { %p192_p7 = pnand %p3114_p4, %p191_p6  ;;  %s106_s28 = sor.u32 %s105_s25, %s104_s27 }
   0xd   : > { %p107_p8 = scmp.eq.s32.totalorder %s106_s28, 0  ;;  %s216_s5 = sand.u32 (!%p192_p7), 1, %s3984_s15   ;;  %vm312_vm0 = vsmask.f32 (!%p192_p7), 3328  ;;  %vm313_vm1 = vsmask.f32 (!%p192_p7), 7440 }
   0xe   : > { %195 = sbr.rel (%p192_p7) target bundleno = 697 (0x2b9), region = 32  ;;  %p229_p9 = scmp.lt.s32.totalorder (!%p192_p7), %s3996_s18, 1  ;;  %vm4156_vm2 = vmor (!%p192_p7), %vm312_vm0, %vm313_vm1 }
   0xf   : > { %s4092_s30 = scalar_select %p107_p8, %s3988_s16, %s109_s29  }
  0x10   : > { %s4096_s6 = sshll.u32 (!%p192_p7), %s216_s5, 7  ;;  %p234_p10 = scmp.lt.s32.totalorder (!%p192_p7), %s3992_s17, 1 }
  0x11   : > { %p3185_p11 = scmp.ne.s32.totalorder (!%p192_p7), %s3992_s17, 1 }
  0x15   : > { %s4100_s7 = scalar_select %p229_p9, %s3996_s18, 1 }
  0x16   : > { %s235_s8 = scalar_select %p234_p10, %s3992_s17, 1 }
  0x17   : > { %s3119_s9 = sshll.u32 %s4100_s7, 1  ;;  %s3833_s28 = smul.u32 204, %s4100_s7 }
  0x18   : > { %s3353_s10 = sshll.u32 %s235_s8, 8  ;;  %s244_s11 = sadd.s32 %s3119_s9, %s235_s8 }
  0x19   : > { %s4107_s14 = scalar_lea.vmem %s4822_s1, %s3353_s10  ;;  %s3120_s15 = sshll.u32 %s244_s11, 1 }
  0x1a   : > { %v3890_v0 = vld [vmem:[%s4107_s14 + $0x40] sm:$0xff]   ;;  %s4113_s27 = scalar_lea.vmem %s4825_s4, %s3120_s15  ;;  %v3892_v2 = vld [vmem:[%s4107_s14 + $0x48] sm:$0xff]   ;;  %v3894_v4 = vld [vmem:[%s4107_s14 + $0x50] sm:$0xff]   ;;  %s4127_s8 = scalar_lea.vmem %s4821_s0, %s3833_s28 }
  0x1b   : > { %v3891_v1 = vld [vmem:[%s4107_s14] sm:$0xff]   ;;  %3577 = vmatprep.subr.bf16.mxu1 %v3890_v0  ;;  %v3893_v3 = vld [vmem:[%s4107_s14 + $0x8] sm:$0xff]   ;;  %v3895_v5 = vld [vmem:[%s4107_s14 + $0x10] sm:$0xff]   ;;  %s4353_s7 = scalar_lea.vmem [#allocation3], %s4096_s6 }
  0x1c   : > { %3625 = vmatprep.subr.bf16.mxu0 %v3891_v1  ;;  %3578 = vmatpush3.bf16.msra.mxu1 %v3890_v0  ;;  %v3896_v6 = vld [vmem:[%s4107_s14 + $0x58] sm:$0xff]   ;;  %v3898_v8 = vld [vmem:[%s4107_s14 + $0x60] sm:$0xff]   ;;  %v3900_v10 = vld [vmem:[%s4107_s14 + $0x68] sm:$0xff]  }
  0x1d   : > { %3626 = vmatpush3.bf16.msra.mxu0 %v3891_v1  ;;  %3579 = vmatprep.subr.bf16.mxu1 %v3892_v2  ;;  %v3897_v7 = vld [vmem:[%s4107_s14 + $0x18] sm:$0xff]   ;;  %v3899_v9 = vld [vmem:[%s4107_s14 + $0x20] sm:$0xff]   ;;  %v3901_v11 = vld [vmem:[%s4107_s14 + $0x28] sm:$0xff]  }
  0x1e   : > { %3627 = vmatprep.subr.bf16.mxu0 %v3893_v3  ;;  %v248_v12 = vld [vmem:[%s4127_s8] sm:$0xf]  ;;  %v249_v13 = vld [vmem:[%s4127_s8 + $0x4] sm:$0xf]  ;;  %v296_v14 = vld [vmem:[%s4127_s8 + $0x8] sm:$0x1] }
  0x1f   : > { %v316_v15 = vshrl.u32 %v248_v12, 16  ;;  %v319_v16 = vshll.u32 %v248_v12, 16  ;;  %v325_v17 = vshll.u32 %v249_v13, 16  ;;  %v329_v18 = vshrl.u32 %v249_v13, 16  ;;  %v4136_v19 = vld [vmem:[%s4127_s8 + $0xc] sm:$0xf] }
  0x20   : > { %3580 = vmatpush3.bf16.msra.mxu1 %v3892_v2  ;;  %v335_v20 = vshll.u32 %v296_v14, 16  ;;  %v3161_v21 = vcombine.low %v248_v12, %v249_v13  ;;  %v4139_v22 = vld [vmem:[%s4127_s8 + $0x10] sm:$0xf]  ;;  %v297_v23 = vld [vmem:[%s4127_s8 + $0x14] sm:$0x1]  ;;  %v340_v24 = vshrl.u32 %v4136_v19, 16 }
  0x21   : > { %3628 = vmatpush3.bf16.msra.mxu0 %v3893_v3  ;;  %3581 = vmatprep.subr.bf16.mxu1 %v3894_v4  ;;  %v318_v25 = vrot.slane %v316_v15, 4  ;;  %v321_v26 = vrot.slane %v319_v16, 5  ;;  %v327_v27 = vrot.slane %v325_v17, 5  ;;  %v331_v28 = vrot.slane %v329_v18, 4  ;;  %v4144_v29 = vld [vmem:[%s4127_s8 + $0x18] sm:$0xf] }
  0x22   : > { %3629 = vmatprep.subr.bf16.mxu0 %v3895_v5  ;;  %v3902_v30 = vld [vmem:[%s4107_s14 + $0x70] sm:$0xff]   ;;  %v337_v31 = vrot.slane %v335_v20, 5  ;;  %v342_v32 = vrot.slane %v340_v24, 4  ;;  %v343_v33 = vshll.u32 %v4136_v19, 16  ;;  %v349_v34 = vshll.u32 %v4139_v22, 16  ;;  %3641 = vmatprep.mubr.bf16.mxu0 %v3161_v21  ;;  %v3904_v50 = vld [vmem:[%s4107_s14 + $0x78] sm:$0xff]  }
  0x23   : > { %v3903_v35 = vld [vmem:[%s4107_s14 + $0x30] sm:$0xff]   ;;  %v322_v36 = vor.u32 %v321_v26, %v318_v25  ;;  %v332_v37 = vor.u32 %v331_v28, %v327_v27  ;;  %v353_v38 = vshrl.u32 %v4139_v22, 16  ;;  %v359_v39 = vshll.u32 %v297_v23, 16  ;;  %v4152_v40 = vld [vmem:[%s4127_s8 + $0x1c] sm:$0xf] }
  0x24   : > { %3582 = vmatpush3.bf16.msra.mxu1 %v3894_v4  ;;  %v345_v42 = vrot.slane %v343_v33, 5  ;;  %v351_v43 = vrot.slane %v349_v34, 5  ;;  %v3162_v44 = vcombine.low %v4136_v19, %v4139_v22  ;;  %v364_v45 = vshrl.u32 %v4144_v29, 16  ;;  %v298_v52 = vld [vmem:[%s4127_s8 + $0x20] sm:$0x1]  ;;  %v3905_v56 = vld [vmem:[%s4107_s14 + $0x38] sm:$0xff]  }
  0x25   : > { %3630 = vmatpush3.bf16.msra.mxu0 %v3895_v5  ;;  %3583 = vmatprep.subr.bf16.mxu1 %v3896_v6  ;;  %v323_v46 = vrot.slane %v322_v36, 4  ;;  %v333_v47 = vrot.slane %v332_v37, 4  ;;  %v355_v48 = vrot.slane %v353_v38, 4  ;;  %v361_v49 = vrot.slane %v359_v39, 5  ;;  %v4174_v61 = vld [vmem:[%s4127_s8 + $0x24] sm:$0xf] }
  0x26   : > { %3631 = vmatprep.subr.bf16.mxu0 %v3897_v7  ;;  %v346_v51 = vor.u32 %v345_v42, %v342_v32  ;;  %v366_v53 = vrot.slane %v364_v45, 4  ;;  %v367_v54 = vshll.u32 %v4144_v29, 16  ;;  %v373_v55 = vshll.u32 %v4152_v40, 16  ;;  %v4177_v2 = vld [vmem:[%s4127_s8 + $0x28] sm:$0xf] }
  0x27   : > { %v328_v57 = vsel %vm4156_vm2, %v323_v46, %v327_v27  ;;  %v338_v58 = vsel %vm4156_vm2, %v333_v47, %v337_v31  ;;  %v356_v59 = vor.u32 %v355_v48, %v351_v43  ;;  %v377_v60 = vshrl.u32 %v4152_v40, 16  ;;  %v4190_v16 = vld [vmem:[%s4127_s8 + $0x30] sm:$0xf]  ;;  %v4194_v27 = vld [vmem:[%s4127_s8 + $0x34] sm:$0xf] }
  0x28   : > { %3584 = vmatpush3.bf16.msra.mxu1 %v3896_v6  ;;  %v3137_v62 = vcombine.low %v328_v57, %v338_v58  ;;  %v347_v63 = vrot.slane %v346_v51, 4  ;;  %v369_v0 = vrot.slane %v367_v54, 5  ;;  %v375_v1 = vrot.slane %v373_v55, 5  ;;  %v300_v31 = vld [vmem:[%s4127_s8 + $0x38] sm:$0x1] }
  0x29   : > { %3632 = vmatpush3.bf16.msra.mxu0 %v3897_v7  ;;  %3585 = vmatprep.subr.bf16.mxu1 %v3898_v8  ;;  %v357_v3 = vrot.slane %v356_v59, 4  ;;  %v379_v4 = vrot.slane %v377_v60, 4  ;;  %v383_v5 = vshll.u32 %v298_v52, 16  ;;  %v3163_v6 = vcombine.low %v4144_v29, %v4152_v40  ;;  %v4206_v37 = vld [vmem:[%s4127_s8 + $0x3c] sm:$0xf] }
  0x2a   : > { %3633 = vmatprep.subr.bf16.mxu0 %v3899_v9  ;;  %v352_v7 = vsel %vm4156_vm2, %v347_v63, %v351_v43  ;;  %3593 = vmatprep.mubr.bf16.mxu1 %v3137_v62  ;;  %v397_v15 = vshll.u32 %v4177_v2, 16  ;;  %v401_v25 = vshrl.u32 %v4177_v2, 16  ;;  %v412_v32 = vshrl.u32 %v4190_v16, 16  ;;  %v4214_v48 = vld [vmem:[%s4127_s8 + $0x40] sm:$0xf] }
  0x2b   : > { %v362_v12 = vsel %vm4156_vm2, %v357_v3, %v361_v49  ;;  %v380_v13 = vor.u32 %v379_v4, %v375_v1  ;;  %v385_v14 = vrot.slane %v383_v5, 5  ;;  %v415_v36 = vshll.u32 %v4190_v16, 16  ;;  %v301_v19 = vld [vmem:[%s4127_s8 + $0x44] sm:$0x1]  ;;  %v4228_v63 = vld [vmem:[%s4127_s8 + $0x48] sm:$0xf] }
  0x2c   : > { %3586 = vmatpush3.bf16.msra.mxu1 %v3898_v8  ;;  %v370_v8 = vor.u32 %v369_v0, %v366_v53  ;;  %v3138_v17 = vcombine.low %v352_v7, %v362_v12  ;;  %v399_v24 = vrot.slane %v397_v15, 5  ;;  %v403_v34 = vrot.slane %v401_v25, 4  ;;  %v4231_v0 = vld [vmem:[%s4127_s8 + $0x4c] sm:$0xf]  ;;  %v302_v5 = vld [vmem:[%s4127_s8 + $0x50] sm:$0x1] }
  0x2d   : > { %3634 = vmatpush3.bf16.msra.mxu0 %v3899_v9  ;;  %3587 = vmatprep.subr.bf16.mxu1 %v3900_v10  ;;  %v299_v9 = vld [vmem:[%s4127_s8 + $0x2c] sm:$0x1]  ;;  %v381_v23 = vrot.slane %v380_v13, 4  ;;  %v414_v40 = vrot.slane %v412_v32, 4  ;;  %v421_v42 = vshll.u32 %v4194_v27, 16  ;;  %v417_v45 = vrot.slane %v415_v36, 5 }
  0x2e   : > { %3635 = vmatprep.subr.bf16.mxu0 %v3901_v11  ;;  %v371_v18 = vrot.slane %v370_v8, 4  ;;  %v407_v26 = vshll.u32 %v299_v9, 16  ;;  %v404_v43 = vor.u32 %v403_v34, %v399_v24  ;;  %v425_v46 = vshrl.u32 %v4194_v27, 16  ;;  %v4248_v25 = vld [vmem:[%s4127_s8 + $0x58] sm:$0xf] }
  0x2f   : > { %v386_v33 = vsel %vm4156_vm2, %v381_v23, %v385_v14  ;;  %v431_v47 = vshll.u32 %v300_v31, 16  ;;  %v3165_v51 = vcombine.low %v4190_v16, %v4194_v27  ;;  %v436_v22 = vshrl.u32 %v4206_v37, 16 }
  0x30   : > { %3588 = vmatpush3.bf16.msra.mxu1 %v3900_v10  ;;  %v388_v10 = vshrl.u32 %v4174_v61, 16  ;;  %v376_v28 = vsel %vm4156_vm2, %v371_v18, %v375_v1  ;;  %v418_v52 = vor.u32 %v417_v45, %v414_v40  ;;  %v427_v53 = vrot.slane %v425_v46, 4  ;;  %v4245_v18 = vld [vmem:[%s4127_s8 + $0x54] sm:$0xf] }
  0x31   : > { %3636 = vmatpush3.bf16.msra.mxu0 %v3901_v11  ;;  %3589 = vmatprep.subr.bf16.mxu1 %v3902_v30  ;;  %v391_v11 = vshll.u32 %v4174_v61, 16  ;;  %v3139_v38 = vcombine.low %v376_v28, %v386_v33  ;;  %v433_v54 = vrot.slane %v431_v47, 5  ;;  %v438_v55 = vrot.slane %v436_v22, 4 }
  0x32   : > { %3637 = vmatprep.subr.bf16.mxu0 %v3903_v35  ;;  %v390_v20 = vrot.slane %v388_v10, 4  ;;  %v445_v57 = vshll.u32 %v4214_v48, 16  ;;  %v449_v58 = vshrl.u32 %v4214_v48, 16  ;;  %v419_v60 = vrot.slane %v418_v52, 4 }
  0x33   : > { %v393_v21 = vrot.slane %v391_v11, 5  ;;  %v455_v62 = vshll.u32 %v301_v19, 16  ;;  %v3166_v9 = vcombine.low %v4206_v37, %v4214_v48  ;;  %v460_v12 = vshrl.u32 %v4228_v63, 16 }
  0x34   : > { %3590 = vmatpush3.bf16.msra.mxu1 %v3902_v30  ;;  %v3164_v30 = vcombine.low %v4174_v61, %v4177_v2  ;;  %v447_v3 = vrot.slane %v445_v57, 5  ;;  %v451_v4 = vrot.slane %v449_v58, 4  ;;  %v463_v13 = vshll.u32 %v4228_v63, 16  ;;  %v4271_v57 = vld [vmem:[%s4127_s8 + $0x6c] sm:$0xf] }
  0x35   : > { %3638 = vmatpush3.bf16.msra.mxu0 %v3903_v35  ;;  %3591 = vmatprep.subr.bf16.mxu1 %v3904_v50  ;;  %v394_v29 = vor.u32 %v393_v21, %v390_v20  ;;  %v409_v35 = vrot.slane %v407_v26, 5  ;;  %v457_v8 = vrot.slane %v455_v62, 5  ;;  %v469_v15 = vshll.u32 %v4231_v0, 16 }
  0x36   : > { %3639 = vmatprep.subr.bf16.mxu0 %v3905_v56  ;;  %v452_v11 = vor.u32 %v451_v4, %v447_v3  ;;  %v473_v16 = vshrl.u32 %v4231_v0, 16  ;;  %v465_v26 = vrot.slane %v463_v13, 5  ;;  %v3167_v33 = vcombine.low %v4228_v63, %v4231_v0 }
  0x37   : > { %v395_v39 = vrot.slane %v394_v29, 4  ;;  %v471_v27 = vrot.slane %v469_v15, 5  ;;  %v484_v34 = vshrl.u32 %v4245_v18, 16 }
  0x38   : > { %3592 = vmatpush3.bf16.msra.mxu1 %v3904_v50  ;;  %v423_v50 = vrot.slane %v421_v42, 5  ;;  %v453_v23 = vrot.slane %v452_v11, 4  ;;  %v475_v28 = vrot.slane %v473_v16, 4  ;;  %v493_v42 = vshll.u32 %v4248_v25, 16  ;;  %v305_v11 = vld [vmem:[%s4127_s8 + $0x74] sm:$0x1] }
  0x39   : > { %3640 = vmatpush3.bf16.msra.mxu0 %v3905_v56  ;;  %v400_v49 = vsel %vm4156_vm2, %v395_v39, %v399_v24  ;;  %v439_v56 = vshll.u32 %v4206_v37, 16  ;;  %v462_v24 = vrot.slane %v460_v12, 4  ;;  %v264_v39 = vld [vmem:[%s4127_s8 + $0x60] sm:$0xf]  ;;  %v486_v40 = vrot.slane %v484_v34, 4 }
  0x3a   : > { %v428_v61 = vor.u32 %v427_v53, %v423_v50  ;;  %v458_v32 = vsel %vm4156_vm2, %v453_v23, %v457_v8  ;;  %v476_v37 = vor.u32 %v475_v28, %v471_v27  ;;  %v508_v52 = vshrl.u32 %v264_v39, 16  ;;  %v268_v16 = vld [vmem:[%s4127_s8 + $0x78] sm:$0xf]  ;;  %v269_v23 = vld [vmem:[%s4127_s8 + $0x7c] sm:$0xf] }
  0x3b   : > { %3594 = vmatmul.mubr.bf16.vlgmr.msra.gmra.mrb[0].mxu1 %v3138_v17  ;;  %v441_v2 = vrot.slane %v439_v56, 5  ;;  %v479_v17 = vshll.u32 %v302_v5, 16  ;;  %v466_v36 = vor.u32 %v465_v26, %v462_v24  ;;  %v511_v56 = vshll.u32 %v264_v39, 16  ;;  %v306_v34 = vld [vmem:[%s4127_s8 + $0x80] sm:$0x1] }
  0x3c   : > { %3642 = vmatmul.mubr.bf16.vlgmr.msra.gmra.mrb[0].mxu0 %v3162_v44  ;;  %3597 = vmatprep.mubr.bf16.mxu1 %v3139_v38  ;;  %v405_v44 = vrot.slane %v404_v43, 4  ;;  %v429_v7 = vrot.slane %v428_v61, 4  ;;  %v487_v38 = vshll.u32 %v4245_v18, 16  ;;  %v497_v43 = vshrl.u32 %v4248_v25, 16 }
  0x3d   : > { %3645 = vmatprep.mubr.bf16.mxu0 %v3163_v6  ;;  %v424_v6 = vsel %vm4156_vm2, %v419_v60, %v423_v50  ;;  %v442_v10 = vor.u32 %v441_v2, %v438_v55  ;;  %v481_v29 = vrot.slane %v479_v17, 5  ;;  %v467_v46 = vrot.slane %v466_v36, 4  ;;  %v265_v50 = vld [vmem:[%s4127_s8 + $0x64] sm:$0xf]  ;;  %v4274_v2 = vld [vmem:[%s4127_s8 + $0x70] sm:$0xf] }
  0x3e   : > { %v410_v59 = vsel %vm4156_vm2, %v405_v44, %v409_v35  ;;  %v434_v14 = vsel %vm4156_vm2, %v429_v7, %v433_v54  ;;  %v477_v47 = vrot.slane %v476_v37, 4  ;;  %v489_v48 = vrot.slane %v487_v38, 5  ;;  %v304_v44 = vld [vmem:[%s4127_s8 + $0x68] sm:$0x1] }
  0x3f   : > { %v3140_v1 = vcombine.low %v400_v49, %v410_v59  ;;  %v3141_v20 = vcombine.low %v424_v6, %v434_v14  ;;  %v443_v21 = vrot.slane %v442_v10, 4  ;;  %v3168_v49 = vcombine.low %v4245_v18, %v4248_v25 }
  0x40   : > { %v499_v19 = vrot.slane %v497_v43, 4  ;;  %v472_v53 = vsel %vm4156_vm2, %v467_v46, %v471_v27  ;;  %v482_v54 = vsel %vm4156_vm2, %v477_v47, %v481_v29  ;;  %v490_v55 = vor.u32 %v489_v48, %v486_v40  ;;  %v4298_v48 = vld [vmem:[%s4127_s8 + $0x88] sm:$0xf] }
  0x41   : > { %v448_v31 = vsel %vm4156_vm2, %v443_v21, %v447_v3  ;;  %v3143_v58 = vcombine.low %v472_v53, %v482_v54  ;;  %v510_v60 = vrot.slane %v508_v52, 4  ;;  %v517_v61 = vshll.u32 %v265_v50, 16  ;;  %v307_v52 = vld [vmem:[%s4127_s8 + $0x8c] sm:$0x1] }
  0x42   : > { %v3142_v35 = vcombine.low %v448_v31, %v458_v32  ;;  %v491_v62 = vrot.slane %v490_v55, 4  ;;  %v513_v63 = vrot.slane %v511_v56, 5  ;;  %v521_v0 = vshrl.u32 %v265_v50, 16 }
  0x43   : > { %3598 = vmatmul.mubr.bf16.gmra.mrb[4].mxu1 %v3140_v1  ;;  %v527_v1 = vshll.u32 %v304_v44, 16  ;;  %v519_v4 = vrot.slane %v517_v61, 5  ;;  %v3169_v5 = vcombine.low %v264_v39, %v265_v50  ;;  %v532_v6 = vshrl.u32 %v4271_v57, 16 }
  0x44   : > { %3646 = vmatmul.mubr.bf16.gmra.mrb[4].mxu0 %v3164_v30  ;;  %v303_v30 = vld [vmem:[%s4127_s8 + $0x5c] sm:$0x1]  ;;  %3601 = vmatprep.mubr.bf16.mxu1 %v3141_v20  ;;  %v514_v8 = vor.u32 %v513_v63, %v510_v60  ;;  %v535_v14 = vshll.u32 %v4271_v57, 16  ;;  %v541_v15 = vshll.u32 %v4274_v2, 16  ;;  %v545_v21 = vshrl.u32 %v4274_v2, 16 }
  0x45   : > { %3649 = vmatprep.mubr.bf16.mxu0 %v3165_v51  ;;  %v503_v45 = vshll.u32 %v303_v30, 16  ;;  %v495_v51 = vrot.slane %v493_v42, 5  ;;  %v529_v10 = vrot.slane %v527_v1, 5  ;;  %v534_v13 = vrot.slane %v532_v6, 4  ;;  %v4295_v42 = vld [vmem:[%s4127_s8 + $0x84] sm:$0xf] }
  0x46   : > { %v515_v18 = vrot.slane %v514_v8, 4  ;;  %v537_v24 = vrot.slane %v535_v14, 5  ;;  %v543_v25 = vrot.slane %v541_v15, 5  ;;  %v551_v26 = vshll.u32 %v305_v11, 16  ;;  %v308_v8 = vld [vmem:[%s4127_s8 + $0x98] sm:$0x1] }
  0x47   : > { %v505_v22 = vrot.slane %v503_v45, 5  ;;  %v500_v59 = vor.u32 %v499_v19, %v495_v51  ;;  %v496_v7 = vsel %vm4156_vm2, %v491_v62, %v495_v51  ;;  %v3170_v27 = vcombine.low %v4271_v57, %v4274_v2  ;;  %v4319_v14 = vld [vmem:[%s4127_s8 + $0x9c] sm:$0xf] }
  0x48   : > { %v520_v28 = vsel %vm4156_vm2, %v515_v18, %v519_v4  ;;  %v547_v30 = vrot.slane %v545_v21, 4  ;;  %v556_v31 = vshrl.u32 %v268_v16, 16  ;;  %v538_v32 = vor.u32 %v537_v24, %v534_v13 }
  0x49   : > { %v501_v3 = vrot.slane %v500_v59, 4  ;;  %v565_v36 = vshll.u32 %v269_v23, 16  ;;  %v569_v40 = vshrl.u32 %v269_v23, 16  ;;  %v575_v51 = vshll.u32 %v306_v34, 16  ;;  %v272_v59 = vld [vmem:[%s4127_s8 + $0x90] sm:$0xf] }
  0x4a   : > { %v548_v38 = vor.u32 %v547_v30, %v543_v25  ;;  %v558_v39 = vrot.slane %v556_v31, 4  ;;  %v539_v45 = vrot.slane %v538_v32, 4  ;;  %v3171_v19 = vcombine.low %v268_v16, %v269_v23 }
  0x4b   : > { %3602 = vmatmul.mubr.bf16.gmra.mrb[8].mxu1 %v3142_v35  ;;  %v506_v12 = vsel %vm4156_vm2, %v501_v3, %v505_v22  ;;  %v559_v35 = vshll.u32 %v268_v16, 16  ;;  %v567_v47 = vrot.slane %v565_v36, 5  ;;  %v571_v50 = vrot.slane %v569_v40, 4 }
  0x4c   : > { %3650 = vmatmul.mubr.bf16.gmra.mrb[8].mxu0 %v3166_v9  ;;  %3605 = vmatprep.mubr.bf16.mxu1 %v3143_v58  ;;  %v523_v9 = vrot.slane %v521_v0, 4  ;;  %v3144_v17 = vcombine.low %v496_v7, %v506_v12  ;;  %v544_v22 = vsel %vm4156_vm2, %v539_v45, %v543_v25  ;;  %v580_v53 = vshrl.u32 %v4295_v42, 16  ;;  %v275_v25 = vld [vmem:[%s4127_s8 + $0xa0] sm:$0xf]  ;;  %v276_v45 = vld [vmem:[%s4127_s8 + $0xa8] sm:$0xf] }
  0x4d   : > { %3653 = vmatprep.mubr.bf16.mxu0 %v3167_v33  ;;  %v553_v33 = vrot.slane %v551_v26, 5  ;;  %v561_v46 = vrot.slane %v559_v35, 5  ;;  %v583_v54 = vshll.u32 %v4295_v42, 16  ;;  %v572_v56 = vor.u32 %v571_v50, %v567_v47 }
  0x4e   : > { %v524_v20 = vor.u32 %v523_v9, %v519_v4  ;;  %v577_v57 = vrot.slane %v575_v51, 5  ;;  %v589_v58 = vshll.u32 %v4298_v48, 16  ;;  %v582_v62 = vrot.slane %v580_v53, 4  ;;  %v273_v4 = vld [vmem:[%s4127_s8 + $0x94] sm:$0xf] }
  0x4f   : > { %v562_v44 = vor.u32 %v561_v46, %v558_v39  ;;  %v585_v63 = vrot.slane %v583_v54, 5  ;;  %v573_v0 = vrot.slane %v572_v56, 4  ;;  %v593_v2 = vshrl.u32 %v4298_v48, 16  ;;  %v277_v46 = vld [vmem:[%s4127_s8 + $0xac] sm:$0xf] }
  0x50   : > { %v525_v29 = vrot.slane %v524_v20, 4  ;;  %v591_v1 = vrot.slane %v589_v58, 5  ;;  %v599_v3 = vshll.u32 %v307_v52, 16  ;;  %v3172_v7 = vcombine.low %v4295_v42, %v4298_v48  ;;  %v310_v51 = vld [vmem:[%s4127_s8 + $0xb0] sm:$0x1] }
  0x51   : > { %v563_v61 = vrot.slane %v562_v44, 4  ;;  %v586_v6 = vor.u32 %v585_v63, %v582_v62  ;;  %v604_v9 = vshrl.u32 %v272_v59, 16  ;;  %v595_v11 = vrot.slane %v593_v2, 4  ;;  %v279_v2 = vld [vmem:[%s4127_s8 + $0xb8] sm:$0xf] }
  0x52   : > { %v530_v37 = vsel %vm4156_vm2, %v525_v29, %v529_v10  ;;  %v578_v10 = vsel %vm4156_vm2, %v573_v0, %v577_v57  ;;  %v601_v12 = vrot.slane %v599_v3, 5  ;;  %v607_v13 = vshll.u32 %v272_v59, 16  ;;  %v309_v29 = vld [vmem:[%s4127_s8 + $0xa4] sm:$0x1] }
  0x53   : > { %3606 = vmatmul.mubr.bf16.gmra.mrb[12].mxu1 %v3144_v17  ;;  %v3145_v43 = vcombine.low %v520_v28, %v530_v37  ;;  %v587_v16 = vrot.slane %v586_v6, 4  ;;  %v606_v17 = vrot.slane %v604_v9, 4  ;;  %v613_v18 = vshll.u32 %v273_v4, 16 }
  0x54   : > { %3654 = vmatmul.mubr.bf16.gmra.mrb[12].mxu0 %v3168_v49  ;;  %v549_v49 = vrot.slane %v548_v38, 4  ;;  %v596_v20 = vor.u32 %v595_v11, %v591_v1  ;;  %v609_v21 = vrot.slane %v607_v13, 5  ;;  %v617_v23 = vshrl.u32 %v273_v4, 16 }
  0x55   : > { %3657 = vmatprep.mubr.bf16.mxu0 %v3169_v5  ;;  %3609 = vmatprep.mubr.bf16.mxu1 %v3145_v43  ;;  %v568_v5 = vsel %vm4156_vm2, %v563_v61, %v567_v47  ;;  %v623_v24 = vshll.u32 %v308_v8, 16  ;;  %v592_v26 = vsel %vm4156_vm2, %v587_v16, %v591_v1  ;;  %v3173_v28 = vcombine.low %v272_v59, %v273_v4  ;;  %v278_v61 = vld [vmem:[%s4127_s8 + $0xb4] sm:$0xf] }
  0x56   : > { %v554_v55 = vsel %vm4156_vm2, %v549_v49, %v553_v33  ;;  %v3147_v15 = vcombine.low %v568_v5, %v578_v10  ;;  %v628_v30 = vshrl.u32 %v4319_v14, 16  ;;  %v597_v31 = vrot.slane %v596_v20, 4 }
  0x57   : > { %v3146_v60 = vcombine.low %v544_v22, %v554_v55  ;;  %v610_v32 = vor.u32 %v609_v21, %v606_v17  ;;  %v619_v33 = vrot.slane %v617_v23, 4  ;;  %v625_v34 = vrot.slane %v623_v24, 5 }
  0x58   : > { %v630_v35 = vrot.slane %v628_v30, 4  ;;  %v631_v36 = vshll.u32 %v4319_v14, 16  ;;  %v637_v37 = vshll.u32 %v275_v25, 16  ;;  %v641_v38 = vshrl.u32 %v275_v25, 16 }
  0x59   : > { %v602_v39 = vsel %vm4156_vm2, %v597_v31, %v601_v12  ;;  %v611_v40 = vrot.slane %v610_v32, 4  ;;  %v647_v43 = vshll.u32 %v309_v29, 16  ;;  %v3174_v52 = vcombine.low %v4319_v14, %v275_v25 }
  0x5a   : > { %v3148_v47 = vcombine.low %v592_v26, %v602_v39  ;;  %v633_v48 = vrot.slane %v631_v36, 5  ;;  %v639_v49 = vrot.slane %v637_v37, 5  ;;  %v643_v50 = vrot.slane %v641_v38, 4 }
  0x5b   : > { %3610 = vmatmul.mubr.bf16.gmra.mrb[16].mxu1 %v3146_v60  ;;  %v649_v44 = vrot.slane %v647_v43, 5  ;;  %v652_v55 = vshrl.u32 %v276_v45, 16  ;;  %v655_v56 = vshll.u32 %v276_v45, 16  ;;  %v661_v58 = vshll.u32 %v277_v46, 16 }
  0x5c   : > { %3658 = vmatmul.mubr.bf16.gmra.mrb[16].mxu0 %v3170_v27  ;;  %3613 = vmatprep.mubr.bf16.mxu1 %v3147_v15  ;;  %v615_v27 = vrot.slane %v613_v18, 5  ;;  %v634_v53 = vor.u32 %v633_v48, %v630_v35  ;;  %v644_v54 = vor.u32 %v643_v50, %v639_v49  ;;  %v665_v59 = vshrl.u32 %v277_v46, 16 }
  0x5d   : > { %3661 = vmatprep.mubr.bf16.mxu0 %v3171_v19  ;;  %v671_v60 = vshll.u32 %v310_v51, 16  ;;  %v654_v1 = vrot.slane %v652_v55, 4  ;;  %v657_v3 = vrot.slane %v655_v56, 5  ;;  %v663_v4 = vrot.slane %v661_v58, 5 }
  0x5e   : > { %v620_v42 = vor.u32 %v619_v33, %v615_v27  ;;  %v616_v19 = vsel %vm4156_vm2, %v611_v40, %v615_v27  ;;  %v635_v63 = vrot.slane %v634_v53, 4  ;;  %v645_v0 = vrot.slane %v644_v54, 4 }
  0x5f   : > { %v667_v5 = vrot.slane %v665_v59, 4  ;;  %v673_v6 = vrot.slane %v671_v60, 5  ;;  %v3175_v10 = vcombine.low %v276_v45, %v277_v46  ;;  %v676_v11 = vshrl.u32 %v278_v61, 16 }
  0x60   : > { %v621_v22 = vrot.slane %v620_v42, 4  ;;  %v640_v8 = vsel %vm4156_vm2, %v635_v63, %v639_v49  ;;  %v650_v9 = vsel %vm4156_vm2, %v645_v0, %v649_v44  ;;  %v658_v13 = vor.u32 %v657_v3, %v654_v1 }
  0x61   : > { %v3150_v12 = vcombine.low %v640_v8, %v650_v9  ;;  %v668_v14 = vor.u32 %v667_v5, %v663_v4  ;;  %v679_v15 = vshll.u32 %v278_v61, 16  ;;  %v678_v16 = vrot.slane %v676_v11, 4 }
  0x62   : > { %v626_v57 = vsel %vm4156_vm2, %v621_v22, %v625_v34  ;;  %v685_v17 = vshll.u32 %v279_v2, 16  ;;  %v689_v18 = vshrl.u32 %v279_v2, 16  ;;  %v659_v21 = vrot.slane %v658_v13, 4 }
  0x63   : > { %3614 = vmatmul.mubr.bf16.gmra.mrb[20].mxu1 %v3148_v47  ;;  %v3149_v62 = vcombine.low %v616_v19, %v626_v57  ;;  %v669_v23 = vrot.slane %v668_v14, 4  ;;  %v681_v24 = vrot.slane %v679_v15, 5  ;;  %v3176_v30 = vcombine.low %v278_v61, %v279_v2 }
  0x64   : > { %3662 = vmatmul.mubr.bf16.gmra.mrb[20].mxu0 %v3172_v7  ;;  %v311_v7 = vld [vmem:[%s4127_s8 + $0xbc] sm:$0x1]  ;;  %v687_v25 = vrot.slane %v685_v17, 5  ;;  %v691_v26 = vrot.slane %v689_v18, 4  ;;  %v664_v27 = vsel %vm4156_vm2, %v659_v21, %v663_v4 }
  0x65   : > { %3665 = vmatprep.mubr.bf16.mxu0 %v3173_v28  ;;  %3617 = vmatprep.mubr.bf16.mxu1 %v3149_v62  ;;  %v695_v20 = vshll.u32 %v311_v7, 16  ;;  %v674_v28 = vsel %vm4156_vm2, %v669_v23, %v673_v6  ;;  %v682_v29 = vor.u32 %v681_v24, %v678_v16 }
  0x66   : > { %v3151_v31 = vcombine.low %v664_v27, %v674_v28  ;;  %v692_v32 = vor.u32 %v691_v26, %v687_v25 }
  0x67   : > { %v697_v33 = vrot.slane %v695_v20, 5  ;;  %v683_v34 = vrot.slane %v682_v29, 4 }
  0x68   : > { %v693_v35 = vrot.slane %v692_v32, 4 }
  0x69   : > { %v688_v36 = vsel %vm4156_vm2, %v683_v34, %v687_v25 }
  0x6a   : > { %v698_v37 = vsel %vm4156_vm2, %v693_v35, %v697_v33 }
  0x6b   : > { %3618 = vmatmul.mubr.bf16.gmra.mrb[24].mxu1 %v3150_v12  ;;  %v3152_v38 = vcombine.low %v688_v36, %v698_v37 }
  0x6c   : > { %3666 = vmatmul.mubr.bf16.gmra.mrb[24].mxu0 %v3174_v52  ;;  %3621 = vmatprep.mubr.bf16.mxu1 %v3151_v31 }
  0x6d   : > { %3669 = vmatprep.mubr.bf16.mxu0 %v3175_v10 }
  0x73   : > { %3622 = vmatmul.mubr.bf16.gmra.mrb[28].mxu1 %v3152_v38 }
  0x74   : > { %3670 = vmatmul.mubr.bf16.gmra.mrb[28].mxu0 %v3176_v30 }
 0x10e   : > { %v3595_v39 = vpop.f32.mrb[0].mxu1 }
 0x10f   : > { %v3643_v40 = vpop.f32.mrb[0].mxu0  ;;  %v862_v42 = vpop.f32.mrb[1].mxu1 }
 0x110   : > { %v1176_v43 = vadd.f32 %v3643_v40, %v3595_v39  ;;  %v1167_v45 = vpop.f32.mrb[1].mxu0  ;;  %v3596_v46 = vpop.f32.mrb[2].mxu1 }
 0x111   : > { %v1168_v47 = vadd.f32 %v1167_v45, %v862_v42  ;;  %v3644_v48 = vpop.f32.mrb[2].mxu0  ;;  %v865_v49 = vpop.f32.mrb[3].mxu1 }
 0x112   : > { %1296 = vst [vmem:[#allocation2 + $0x10] sm:$0xff] %v1176_v43  ;;  %v1179_v50 = vadd.f32 %v3644_v48, %v3596_v46  ;;  %v1170_v51 = vpop.f32.mrb[3].mxu0 }
 0x113   : > { %1294 = vst [vmem:[#allocation2] sm:$0xff] %v1168_v47  ;;  %v1171_v19 = vadd.f32 %v1170_v51, %v865_v49 }
 0x114   : > { %1297 = vst [vmem:[#allocation2 + $0x18] sm:$0xff] %v1179_v50 }
 0x115   : > { %1295 = vst [vmem:[#allocation2 + $0x8] sm:$0xff] %v1171_v19 }
 0x116   : > { %v3599_v22 = vpop.f32.mrb[4].mxu1 }
 0x117   : > { %v3647_v44 = vpop.f32.mrb[4].mxu0  ;;  %v878_v52 = vpop.f32.mrb[5].mxu1 }
 0x118   : > { %v1192_v53 = vadd.f32 %v3647_v44, %v3599_v22  ;;  %v1183_v54 = vpop.f32.mrb[5].mxu0  ;;  %v3600_v55 = vpop.f32.mrb[6].mxu1 }
 0x119   : > { %v1184_v56 = vadd.f32 %v1183_v54, %v878_v52  ;;  %v3648_v57 = vpop.f32.mrb[6].mxu0  ;;  %v881_v58 = vpop.f32.mrb[7].mxu1 }
 0x11a   : > { %1300 = vst [vmem:[#allocation2 + $0x30] sm:$0xff] %v1192_v53  ;;  %v1195_v59 = vadd.f32 %v3648_v57, %v3600_v55  ;;  %v1186_v60 = vpop.f32.mrb[7].mxu0 }
 0x11b   : > { %1298 = vst [vmem:[#allocation2 + $0x20] sm:$0xff] %v1184_v56  ;;  %v1187_v61 = vadd.f32 %v1186_v60, %v881_v58 }
 0x11c   : > { %1301 = vst [vmem:[#allocation2 + $0x38] sm:$0xff] %v1195_v59 }
 0x11d   : > { %1299 = vst [vmem:[#allocation2 + $0x28] sm:$0xff] %v1187_v61 }
 0x11e   : > { %v3603_v62 = vpop.f32.mrb[8].mxu1 }
 0x11f   : > { %v3651_v63 = vpop.f32.mrb[8].mxu0  ;;  %v894_v0 = vpop.f32.mrb[9].mxu1 }
 0x120   : > { %v1208_v1 = vadd.f32 %v3651_v63, %v3603_v62  ;;  %v1199_v2 = vpop.f32.mrb[9].mxu0  ;;  %v3604_v3 = vpop.f32.mrb[10].mxu1 }
 0x121   : > { %v1200_v4 = vadd.f32 %v1199_v2, %v894_v0  ;;  %v3652_v5 = vpop.f32.mrb[10].mxu0  ;;  %v897_v6 = vpop.f32.mrb[11].mxu1 }
 0x122   : > { %1304 = vst [vmem:[#allocation2 + $0x50] sm:$0xff] %v1208_v1  ;;  %v1211_v7 = vadd.f32 %v3652_v5, %v3604_v3  ;;  %v1202_v8 = vpop.f32.mrb[11].mxu0 }
 0x123   : > { %1302 = vst [vmem:[#allocation2 + $0x40] sm:$0xff] %v1200_v4  ;;  %v1203_v9 = vadd.f32 %v1202_v8, %v897_v6  ;;  %v3923_v8 = vld [vmem:[%s4107_s14 + $0x80] sm:$0xff] (!%p3185_p11)  }
 0x124   : > { %1305 = vst [vmem:[#allocation2 + $0x58] sm:$0xff] %v1211_v7  ;;  %v3922_v7 = vld [vmem:[%s4107_s14 + $0xc0] sm:$0xff] (!%p3185_p11)   ;;  %3721 = vmatprep.subr.bf16.mxu0 (!%p3185_p11), %v3923_v8 }
 0x125   : > { %1303 = vst [vmem:[#allocation2 + $0x48] sm:$0xff] %v1203_v9  ;;  %3673 = vmatprep.subr.bf16.mxu1 (!%p3185_p11), %v3922_v7  ;;  %v3924_v9 = vld [vmem:[%s4107_s14 + $0xc8] sm:$0xff] (!%p3185_p11)   ;;  %3722 = vmatpush3.bf16.msra.mxu0 (!%p3185_p11), %v3923_v8 }
 0x126   : > { %v3607_v10 = vpop.f32.mrb[12].mxu1  ;;  %3674 = vmatpush3.bf16.msra.mxu1 (!%p3185_p11), %v3922_v7 }
 0x127   : > { %v3655_v11 = vpop.f32.mrb[12].mxu0  ;;  %v910_v13 = vpop.f32.mrb[13].mxu1  ;;  %3675 = vmatprep.subr.bf16.mxu1 (!%p3185_p11), %v3924_v9 }
 0x128   : > { %v1224_v12 = vadd.f32 %v3655_v11, %v3607_v10  ;;  %v1215_v14 = vpop.f32.mrb[13].mxu0  ;;  %v3608_v16 = vpop.f32.mrb[14].mxu1  ;;  %v3925_v10 = vld [vmem:[%s4107_s14 + $0x88] sm:$0xff] (!%p3185_p11)   ;;  %v3926_v11 = vld [vmem:[%s4107_s14 + $0xd0] sm:$0xff] (!%p3185_p11)  }
 0x129   : > { %v1216_v15 = vadd.f32 %v1215_v14, %v910_v13  ;;  %v3656_v17 = vpop.f32.mrb[14].mxu0  ;;  %v913_v20 = vpop.f32.mrb[15].mxu1  ;;  %3723 = vmatprep.subr.bf16.mxu0 (!%p3185_p11), %v3925_v10  ;;  %v3928_v13 = vld [vmem:[%s4107_s14 + $0xd8] sm:$0xff] (!%p3185_p11)  }
 0x12a   : > { %1308 = vst [vmem:[#allocation2 + $0x70] sm:$0xff] %v1224_v12  ;;  %v1227_v18 = vadd.f32 %v3656_v17, %v3608_v16  ;;  %v1218_v21 = vpop.f32.mrb[15].mxu0  ;;  %v3927_v12 = vld [vmem:[%s4107_s14 + $0x90] sm:$0xff] (!%p3185_p11)   ;;  %3676 = vmatpush3.bf16.msra.mxu1 (!%p3185_p11), %v3924_v9  ;;  %3724 = vmatpush3.bf16.msra.mxu0 (!%p3185_p11), %v3925_v10  ;;  %v3929_v14 = vld [vmem:[%s4107_s14 + $0x98] sm:$0xff] (!%p3185_p11)   ;;  %v3931_v16 = vld [vmem:[%s4107_s14 + $0xa0] sm:$0xff] (!%p3185_p11)  }
 0x12b   : > { %1306 = vst [vmem:[#allocation2 + $0x60] sm:$0xff] %v1216_v15  ;;  %v1219_v23 = vadd.f32 %v1218_v21, %v913_v20  ;;  %3677 = vmatprep.subr.bf16.mxu1 (!%p3185_p11), %v3926_v11  ;;  %3725 = vmatprep.subr.bf16.mxu0 (!%p3185_p11), %v3927_v12  ;;  %v3930_v15 = vld [vmem:[%s4107_s14 + $0xe0] sm:$0xff] (!%p3185_p11)   ;;  %v3932_v17 = vld [vmem:[%s4107_s14 + $0xe8] sm:$0xff] (!%p3185_p11)   ;;  %v3187_v21 = vld [vmem:[%s4127_s8 + $0x10] sm:$0xf] (!%p3185_p11) }
 0x12c   : > { %1309 = vst [vmem:[#allocation2 + $0x78] sm:$0xff] %v1227_v18  ;;  %v3933_v18 = vld [vmem:[%s4107_s14 + $0xa8] sm:$0xff] (!%p3185_p11)   ;;  %v4407_v9 = vld [vmem:[%s4127_s8 + $0x34] sm:$0xf] (!%p3185_p11) }
 0x12d   : > { %1307 = vst [vmem:[#allocation2 + $0x68] sm:$0xff] %v1219_v23  ;;  %v3186_v20 = vld [vmem:[%s4127_s8 + $0xc] sm:$0xf] (!%p3185_p11)  ;;  %v3234_v23 = vld [vmem:[%s4127_s8 + $0x14] sm:$0x1] (!%p3185_p11) }
 0x12e   : > { %v3611_v25 = vpop.f32.mrb[16].mxu1  ;;  %3678 = vmatpush3.bf16.msra.mxu1 (!%p3185_p11), %v3926_v11  ;;  %3726 = vmatpush3.bf16.msra.mxu0 (!%p3185_p11), %v3927_v12 }
 0x12f   : > { %v3659_v24 = vpop.f32.mrb[16].mxu0  ;;  %v926_v28 = vpop.f32.mrb[17].mxu1  ;;  %3679 = vmatprep.subr.bf16.mxu1 (!%p3185_p11), %v3928_v13  ;;  %3727 = vmatprep.subr.bf16.mxu0 (!%p3185_p11), %v3929_v14 }
 0x130   : > { %v1231_v26 = vpop.f32.mrb[17].mxu0  ;;  %v1240_v27 = vadd.f32 %v3659_v24, %v3611_v25  ;;  %v3612_v31 = vpop.f32.mrb[18].mxu1  ;;  %v1429_v24 = vshrl.u32 (!%p3185_p11), %v3186_v20, 16  ;;  %v1432_v25 = vshll.u32 (!%p3185_p11), %v3186_v20, 16 }
 0x131   : > { %v3660_v29 = vpop.f32.mrb[18].mxu0  ;;  %v1232_v30 = vadd.f32 %v1231_v26, %v926_v28  ;;  %v929_v34 = vpop.f32.mrb[19].mxu1  ;;  %v1438_v26 = vshll.u32 (!%p3185_p11), %v3187_v21, 16  ;;  %v4372_v28 = vld [vmem:[%s4127_s8 + $0x18] sm:$0xf] (!%p3185_p11) }
 0x132   : > { %v1234_v32 = vpop.f32.mrb[19].mxu0  ;;  %1312 = vst [vmem:[#allocation2 + $0x90] sm:$0xff] %v1240_v27  ;;  %v1243_v33 = vadd.f32 %v3660_v29, %v3612_v31  ;;  %3680 = vmatpush3.bf16.msra.mxu1 (!%p3185_p11), %v3928_v13  ;;  %3728 = vmatpush3.bf16.msra.mxu0 (!%p3185_p11), %v3929_v14  ;;  %v1442_v27 = vshrl.u32 (!%p3185_p11), %v3187_v21, 16  ;;  %v1448_v29 = vshll.u32 (!%p3185_p11), %v3234_v23, 16  ;;  %v4375_v31 = vld [vmem:[%s4127_s8 + $0x1c] sm:$0xf] (!%p3185_p11) }
 0x133   : > { %1310 = vst [vmem:[#allocation2 + $0x80] sm:$0xff] %v1232_v30  ;;  %v1235_v35 = vadd.f32 %v1234_v32, %v929_v34  ;;  %3681 = vmatprep.subr.bf16.mxu1 (!%p3185_p11), %v3930_v15  ;;  %3729 = vmatprep.subr.bf16.mxu0 (!%p3185_p11), %v3931_v16  ;;  %v3290_v30 = vcombine.low (!%p3185_p11), %v3186_v20, %v3187_v21  ;;  %v3235_v32 = vld [vmem:[%s4127_s8 + $0x20] sm:$0x1] (!%p3185_p11)  ;;  %v1431_v34 = vrot.slane (!%p3185_p11), %v1429_v24, 4  ;;  %v1510_v24 = vshll.u32 (!%p3185_p11), %v4407_v9, 16 }
 0x134   : > { %1313 = vst [vmem:[#allocation2 + $0x98] sm:$0xff] %v1243_v33  ;;  %v1453_v33 = vshrl.u32 (!%p3185_p11), %v4372_v28, 16 }
 0x135   : > { %1311 = vst [vmem:[#allocation2 + $0x88] sm:$0xff] %v1235_v35  ;;  %v1434_v35 = vrot.slane (!%p3185_p11), %v1432_v25, 5  ;;  %3737 = vmatprep.mubr.bf16.mxu0 (!%p3185_p11), %v3290_v30  ;;  %v4420_v25 = vld [vmem:[%s4127_s8 + $0x3c] sm:$0xf] (!%p3185_p11) }
 0x136   : > { %v3615_v39 = vpop.f32.mrb[20].mxu1  ;;  %3682 = vmatpush3.bf16.msra.mxu1 (!%p3185_p11), %v3930_v15  ;;  %3730 = vmatpush3.bf16.msra.mxu0 (!%p3185_p11), %v3931_v16  ;;  %v3237_v16 = vld [vmem:[%s4127_s8 + $0x38] sm:$0x1] (!%p3185_p11) }
 0x137   : > { %v3663_v36 = vpop.f32.mrb[20].mxu0  ;;  %v942_v43 = vpop.f32.mrb[21].mxu1  ;;  %3683 = vmatprep.subr.bf16.mxu1 (!%p3185_p11), %v3932_v17  ;;  %3731 = vmatprep.subr.bf16.mxu0 (!%p3185_p11), %v3933_v18 }
 0x138   : > { %v1247_v37 = vpop.f32.mrb[21].mxu0  ;;  %v1256_v42 = vadd.f32 %v3663_v36, %v3615_v39  ;;  %v3616_v46 = vpop.f32.mrb[22].mxu1  ;;  %v1440_v36 = vrot.slane (!%p3185_p11), %v1438_v26, 5  ;;  %v3934_v39 = vld [vmem:[%s4107_s14 + $0xf0] sm:$0xff] (!%p3185_p11)  }
 0x139   : > { %v3664_v38 = vpop.f32.mrb[22].mxu0  ;;  %v1248_v45 = vadd.f32 %v1247_v37, %v942_v43  ;;  %v945_v48 = vpop.f32.mrb[23].mxu1  ;;  %v1444_v37 = vrot.slane (!%p3185_p11), %v1442_v27, 4  ;;  %v1456_v43 = vshll.u32 (!%p3185_p11), %v4372_v28, 16 }
 0x13a   : > { %v1250_v40 = vpop.f32.mrb[23].mxu0  ;;  %1316 = vst [vmem:[#allocation2 + $0xb0] sm:$0xff] %v1256_v42  ;;  %v1259_v47 = vadd.f32 %v3664_v38, %v3616_v46  ;;  %v4380_v38 = vld [vmem:[%s4127_s8 + $0x24] sm:$0xf] (!%p3185_p11)  ;;  %v1455_v42 = vrot.slane (!%p3185_p11), %v1453_v33, 4  ;;  %v3935_v46 = vld [vmem:[%s4107_s14 + $0xb0] sm:$0xff] (!%p3185_p11)   ;;  %3684 = vmatpush3.bf16.msra.mxu1 (!%p3185_p11), %v3932_v17  ;;  %3732 = vmatpush3.bf16.msra.mxu0 (!%p3185_p11), %v3933_v18 }
 0x13b   : > { %1314 = vst [vmem:[#allocation2 + $0xa0] sm:$0xff] %v1248_v45  ;;  %v1251_v49 = vadd.f32 %v1250_v40, %v945_v48  ;;  %v1450_v40 = vrot.slane (!%p3185_p11), %v1448_v29, 5  ;;  %v1462_v45 = vshll.u32 (!%p3185_p11), %v4375_v31, 16  ;;  %v1445_v48 = vor.u32 (!%p3185_p11), %v1444_v37, %v1440_v36  ;;  %3685 = vmatprep.subr.bf16.mxu1 (!%p3185_p11), %v3934_v39  ;;  %3733 = vmatprep.subr.bf16.mxu0 (!%p3185_p11), %v3935_v46 }
 0x13c   : > { %1317 = vst [vmem:[#allocation2 + $0xb8] sm:$0xff] %v1259_v47  ;;  %v1435_v47 = vor.u32 (!%p3185_p11), %v1434_v35, %v1431_v34  ;;  %v1512_v33 = vrot.slane (!%p3185_p11), %v1510_v24, 5  ;;  %v1514_v34 = vshrl.u32 (!%p3185_p11), %v4407_v9, 16  ;;  %v1520_v35 = vshll.u32 (!%p3185_p11), %v3237_v16, 16 }
 0x13d   : > { %1315 = vst [vmem:[#allocation2 + $0xa8] sm:$0xff] %v1251_v49  ;;  %v1466_v49 = vshrl.u32 (!%p3185_p11), %v4375_v31, 16 }
 0x13e   : > { %v3619_v22 = vpop.f32.mrb[24].mxu1  ;;  %3686 = vmatpush3.bf16.msra.mxu1 (!%p3185_p11), %v3934_v39  ;;  %3734 = vmatpush3.bf16.msra.mxu0 (!%p3185_p11), %v3935_v46  ;;  %v1522_v46 = vrot.slane (!%p3185_p11), %v1520_v35, 5 }
 0x13f   : > { %v3667_v50 = vpop.f32.mrb[24].mxu0  ;;  %v958_v53 = vpop.f32.mrb[25].mxu1 }
 0x140   : > { %v1263_v51 = vpop.f32.mrb[25].mxu0  ;;  %v1272_v52 = vadd.f32 %v3667_v50, %v3619_v22  ;;  %v3620_v55 = vpop.f32.mrb[26].mxu1  ;;  %v1472_v50 = vshll.u32 (!%p3185_p11), %v3235_v32, 16  ;;  %v1464_v22 = vrot.slane (!%p3185_p11), %v1462_v45, 5  ;;  %v1516_v45 = vrot.slane (!%p3185_p11), %v1514_v34, 4 }
 0x141   : > { %v3668_v19 = vpop.f32.mrb[26].mxu0  ;;  %v1264_v54 = vadd.f32 %v1263_v51, %v958_v53  ;;  %v961_v57 = vpop.f32.mrb[27].mxu1  ;;  %v4388_v51 = vld [vmem:[%s4127_s8 + $0x28] sm:$0xf] (!%p3185_p11)  ;;  %v1436_v53 = vrot.slane (!%p3185_p11), %v1435_v47, 4  ;;  %v1528_v47 = vshll.u32 (!%p3185_p11), %v4420_v25, 16 }
 0x142   : > { %v1266_v44 = vpop.f32.mrb[27].mxu0  ;;  %1320 = vst [vmem:[#allocation2 + $0xd0] sm:$0xff] %v1272_v52  ;;  %v1275_v56 = vadd.f32 %v3668_v19, %v3620_v55  ;;  %v1458_v19 = vrot.slane (!%p3185_p11), %v1456_v43, 5  ;;  %v1477_v52 = vshrl.u32 (!%p3185_p11), %v4380_v38, 16  ;;  %v1468_v55 = vrot.slane (!%p3185_p11), %v1466_v49, 4 }
 0x143   : > { %1318 = vst [vmem:[#allocation2 + $0xc0] sm:$0xff] %v1264_v54  ;;  %v1267_v58 = vadd.f32 %v1266_v44, %v961_v57  ;;  %v3291_v44 = vcombine.low (!%p3185_p11), %v4372_v28, %v4375_v31  ;;  %v1446_v54 = vrot.slane (!%p3185_p11), %v1445_v48, 4  ;;  %v3936_v57 = vld [vmem:[%s4107_s14 + $0xf8] sm:$0xff] (!%p3185_p11)   ;;  %v3292_v13 = vcombine.low (!%p3185_p11), %v4380_v38, %v4388_v51  ;;  %v4436_v48 = vld [vmem:[%s4127_s8 + $0x48] sm:$0xf] (!%p3185_p11) }
 0x144   : > { %1321 = vst [vmem:[#allocation2 + $0xd8] sm:$0xff] %v1275_v56  ;;  %v1474_v56 = vrot.slane (!%p3185_p11), %v1472_v50, 5  ;;  %3687 = vmatprep.subr.bf16.mxu1 (!%p3185_p11), %v3936_v57  ;;  %v3239_v28 = vld [vmem:[%s4127_s8 + $0x50] sm:$0x1] (!%p3185_p11)  ;;  %v1549_v31 = vshrl.u32 (!%p3185_p11), %v4436_v48, 16 }
 0x145   : > { %1319 = vst [vmem:[#allocation2 + $0xc8] sm:$0xff] %v1267_v58  ;;  %v1459_v58 = vor.u32 (!%p3185_p11), %v1458_v19, %v1455_v42  ;;  %3688 = vmatpush3.bf16.msra.mxu1 (!%p3185_p11), %v3936_v57  ;;  %v1525_v42 = vshrl.u32 (!%p3185_p11), %v4420_v25, 16  ;;  %v4478_v34 = vld [vmem:[%s4127_s8 + $0x64] sm:$0xf] (!%p3185_p11) }
 0x146   : > { %v3623_v63 = vpop.f32.mrb[28].mxu1 }
 0x147   : > { %v3671_v59 = vpop.f32.mrb[28].mxu0  ;;  %v974_v1 = vpop.f32.mrb[29].mxu1  ;;  %1329 = sbr.rel (%p3185_p11) target bundleno = 618 (0x26a), region = 36 }
 0x148   : > { %v1279_v60 = vpop.f32.mrb[29].mxu0  ;;  %v1288_v0 = vadd.f32 %v3671_v59, %v3623_v63  ;;  %v3624_v3 = vpop.f32.mrb[30].mxu1  ;;  %v3236_v59 = vld [vmem:[%s4127_s8 + $0x2c] sm:$0x1] (!%p3185_p11)  ;;  %v3937_v63 = vld [vmem:[%s4107_s14 + $0xb8] sm:$0xff] (!%p3185_p11)  }
 0x149   : > { %v3672_v61 = vpop.f32.mrb[30].mxu0  ;;  %v1280_v2 = vadd.f32 %v1279_v60, %v974_v1  ;;  %v977_v5 = vpop.f32.mrb[31].mxu1  ;;  %v1479_v60 = vrot.slane (!%p3185_p11), %v1477_v52, 4  ;;  %v1451_v1 = vsel (!%p3185_p11), %vm4156_vm2, %v1446_v54, %v1450_v40  ;;  %v1496_v12 = vshll.u32 (!%p3185_p11), %v3236_v59, 16  ;;  %3735 = vmatprep.subr.bf16.mxu0 (!%p3185_p11), %v3937_v63  ;;  %v3238_v40 = vld [vmem:[%s4127_s8 + $0x44] sm:$0x1] (!%p3185_p11) }
 0x14a   : > { %v1282_v62 = vpop.f32.mrb[31].mxu0  ;;  %1324 = vst [vmem:[#allocation2 + $0xf0] sm:$0xff] %v1288_v0  ;;  %v1291_v4 = vadd.f32 %v3672_v61, %v3624_v3  ;;  %v1480_v61 = vshll.u32 (!%p3185_p11), %v4380_v38, 16  ;;  %v1441_v0 = vsel (!%p3185_p11), %vm4156_vm2, %v1436_v53, %v1440_v36  ;;  %v1490_v3 = vshrl.u32 (!%p3185_p11), %v4388_v51, 16  ;;  %v4424_v36 = vld [vmem:[%s4127_s8 + $0x40] sm:$0xf] (!%p3185_p11)  ;;  %3736 = vmatpush3.bf16.msra.mxu0 (!%p3185_p11), %v3937_v63 }
 0x14b   : > { %1322 = vst [vmem:[#allocation2 + $0xe0] sm:$0xff] %v1280_v2  ;;  %v1283_v6 = vadd.f32 %v1282_v62, %v977_v5  ;;  %v1486_v62 = vshll.u32 (!%p3185_p11), %v4388_v51, 16  ;;  %v1469_v2 = vor.u32 (!%p3185_p11), %v1468_v55, %v1464_v22  ;;  %v3266_v5 = vcombine.low (!%p3185_p11), %v1441_v0, %v1451_v1  ;;  %v4444_v55 = vld [vmem:[%s4127_s8 + $0x4c] sm:$0xf] (!%p3185_p11) }
 0x14c   : > { %1325 = vst [vmem:[#allocation2 + $0xf8] sm:$0xff] %v1291_v4  ;;  %v4404_v4 = vld [vmem:[%s4127_s8 + $0x30] sm:$0xf] (!%p3185_p11)  ;;  %v1482_v7 = vrot.slane (!%p3185_p11), %v1480_v61, 5  ;;  %v1492_v11 = vrot.slane (!%p3185_p11), %v1490_v3, 4  ;;  %v1498_v23 = vrot.slane (!%p3185_p11), %v1496_v12, 5  ;;  %v3295_v16 = vcombine.low (!%p3185_p11), %v4436_v48, %v4444_v55 }
 0x14d   : > { %1323 = vst [vmem:[#allocation2 + $0xe8] sm:$0xff] %v1283_v6  ;;  %v1460_v6 = vrot.slane (!%p3185_p11), %v1459_v58, 4  ;;  %v1488_v8 = vrot.slane (!%p3185_p11), %v1486_v62, 5  ;;  %v1470_v10 = vrot.slane (!%p3185_p11), %v1469_v2, 4  ;;  %v1501_v17 = vshrl.u32 (!%p3185_p11), %v4404_v4, 16  ;;  %3689 = vmatprep.mubr.bf16.mxu1 (!%p3185_p11), %v3266_v5  ;;  %3738 = vmatmul.mubr.bf16.vlgmr.msra.gmra.mrb[0].mxu0 (!%p3185_p11), %v3291_v44 }
 0x14e   : > { %v1483_v15 = vor.u32 %v1482_v7, %v1479_v60  ;;  %v1504_v18 = vshll.u32 %v4404_v4, 16  ;;  %v3293_v39 = vcombine.low %v4404_v4, %v4407_v9  ;;  %v1527_v51 = vrot.slane %v1525_v42, 4  ;;  %3741 = vmatprep.mubr.bf16.mxu0 %v3292_v13  ;;  %v4461_v7 = vld [vmem:[%s4127_s8 + $0x58] sm:$0xf]  ;;  %v3240_v12 = vld [vmem:[%s4127_s8 + $0x5c] sm:$0x1] }
 0x14f   : > { %v1465_v14 = vsel %vm4156_vm2, %v1460_v6, %v1464_v22  ;;  %v1475_v20 = vsel %vm4156_vm2, %v1470_v10, %v1474_v56  ;;  %v1493_v21 = vor.u32 %v1492_v11, %v1488_v8  ;;  %v1503_v29 = vrot.slane %v1501_v17, 4  ;;  %v4458_v6 = vld [vmem:[%s4127_s8 + $0x54] sm:$0xf] }
 0x150   : > { %v3267_v26 = vcombine.low %v1465_v14, %v1475_v20  ;;  %v1484_v27 = vrot.slane %v1483_v15, 4  ;;  %v1506_v30 = vrot.slane %v1504_v18, 5  ;;  %v1534_v19 = vshll.u32 %v4424_v36, 16 }
 0x151   : > { %v1494_v32 = vrot.slane %v1493_v21, 4  ;;  %v1517_v22 = vor.u32 %v1516_v45, %v1512_v33  ;;  %v1530_v52 = vrot.slane %v1528_v47, 5  ;;  %v1538_v53 = vshrl.u32 %v4424_v36, 16 }
 0x152   : > { %v1489_v37 = vsel %vm4156_vm2, %v1484_v27, %v1488_v8  ;;  %v1507_v38 = vor.u32 %v1506_v30, %v1503_v29  ;;  %3690 = vmatmul.mubr.bf16.vlgmr.msra.gmra.mrb[0].mxu1 %v3267_v26  ;;  %v1544_v54 = vshll.u32 %v3238_v40, 16  ;;  %v1536_v57 = vrot.slane %v1534_v19, 5  ;;  %v4475_v27 = vld [vmem:[%s4127_s8 + $0x60] sm:$0xf] }
 0x153   : > { %v1499_v43 = vsel %vm4156_vm2, %v1494_v32, %v1498_v23  ;;  %v3294_v58 = vcombine.low %v4420_v25, %v4424_v36  ;;  %v1518_v44 = vrot.slane %v1517_v22, 4  ;;  %v1531_v59 = vor.u32 %v1530_v52, %v1527_v51 }
 0x154   : > { %v3268_v49 = vcombine.low %v1489_v37, %v1499_v43  ;;  %v1508_v50 = vrot.slane %v1507_v38, 4  ;;  %v1540_v60 = vrot.slane %v1538_v53, 4  ;;  %v1546_v61 = vrot.slane %v1544_v54, 5 }
 0x155   : > { %v1551_v62 = vrot.slane %v1549_v31, 4  ;;  %v1552_v63 = vshll.u32 %v4436_v48, 16  ;;  %v1558_v0 = vshll.u32 %v4444_v55, 16  ;;  %v1562_v1 = vshrl.u32 %v4444_v55, 16  ;;  %3742 = vmatmul.mubr.bf16.gmra.mrb[4].mxu0 %v3293_v39  ;;  %v3241_v39 = vld [vmem:[%s4127_s8 + $0x68] sm:$0x1] }
 0x156   : > { %3693 = vmatprep.mubr.bf16.mxu1 %v3268_v49  ;;  %v1513_v56 = vsel %vm4156_vm2, %v1508_v50, %v1512_v33  ;;  %v1523_v2 = vsel %vm4156_vm2, %v1518_v44, %v1522_v46  ;;  %v1532_v3 = vrot.slane %v1531_v59, 4  ;;  %v1541_v4 = vor.u32 %v1540_v60, %v1536_v57  ;;  %3745 = vmatprep.mubr.bf16.mxu0 %v3294_v58  ;;  %v3202_v50 = vld [vmem:[%s4127_s8 + $0x6c] sm:$0xf]  ;;  %v3242_v44 = vld [vmem:[%s4127_s8 + $0x74] sm:$0x1] }
 0x157   : > { %v1568_v5 = vshll.u32 %v3239_v28, 16  ;;  %v3269_v8 = vcombine.low %v1513_v56, %v1523_v2  ;;  %v1554_v9 = vrot.slane %v1552_v63, 5  ;;  %v1560_v10 = vrot.slane %v1558_v0, 5  ;;  %v4501_v0 = vld [vmem:[%s4127_s8 + $0x78] sm:$0xf] }
 0x158   : > { %v1564_v11 = vrot.slane %v1562_v1, 4  ;;  %v1537_v13 = vsel %vm4156_vm2, %v1532_v3, %v1536_v57  ;;  %v1542_v14 = vrot.slane %v1541_v4, 4  ;;  %v1573_v20 = vshrl.u32 %v4458_v6, 16  ;;  %v3203_v57 = vld [vmem:[%s4127_s8 + $0x70] sm:$0xf] }
 0x159   : > { %v1570_v15 = vrot.slane %v1568_v5, 5  ;;  %v1555_v17 = vor.u32 %v1554_v9, %v1551_v62  ;;  %v1576_v21 = vshll.u32 %v4458_v6, 16  ;;  %v1582_v24 = vshll.u32 %v4461_v7, 16  ;;  %v4504_v9 = vld [vmem:[%s4127_s8 + $0x7c] sm:$0xf] }
 0x15a   : > { %3694 = vmatmul.mubr.bf16.gmra.mrb[4].mxu1 %v3269_v8  ;;  %v1565_v18 = vor.u32 %v1564_v11, %v1560_v10  ;;  %v1547_v23 = vsel %vm4156_vm2, %v1542_v14, %v1546_v61  ;;  %v1586_v25 = vshrl.u32 %v4461_v7, 16  ;;  %v1592_v26 = vshll.u32 %v3240_v12, 16 }
 0x15b   : > { %v3270_v29 = vcombine.low %v1537_v13, %v1547_v23  ;;  %v1556_v30 = vrot.slane %v1555_v17, 4  ;;  %v1575_v33 = vrot.slane %v1573_v20, 4  ;;  %v1578_v35 = vrot.slane %v1576_v21, 5 }
 0x15c   : > { %v1566_v32 = vrot.slane %v1565_v18, 4  ;;  %v1584_v36 = vrot.slane %v1582_v24, 5  ;;  %v1588_v37 = vrot.slane %v1586_v25, 4  ;;  %v1594_v38 = vrot.slane %v1592_v26, 5  ;;  %v3243_v18 = vld [vmem:[%s4127_s8 + $0x80] sm:$0x1] }
 0x15d   : > { %3697 = vmatprep.mubr.bf16.mxu1 %v3270_v29  ;;  %v1561_v40 = vsel %vm4156_vm2, %v1556_v30, %v1560_v10  ;;  %v3296_v43 = vcombine.low %v4458_v6, %v4461_v7  ;;  %v1597_v45 = vshrl.u32 %v4475_v27, 16  ;;  %v1579_v47 = vor.u32 %v1578_v35, %v1575_v33  ;;  %3746 = vmatmul.mubr.bf16.gmra.mrb[8].mxu0 %v3295_v16  ;;  %v3206_v25 = vld [vmem:[%s4127_s8 + $0x84] sm:$0xf] }
 0x15e   : > { %v1571_v42 = vsel %vm4156_vm2, %v1566_v32, %v1570_v15  ;;  %v1589_v48 = vor.u32 %v1588_v37, %v1584_v36  ;;  %v1600_v49 = vshll.u32 %v4475_v27, 16  ;;  %v1606_v19 = vshll.u32 %v4478_v34, 16  ;;  %v3207_v32 = vld [vmem:[%s4127_s8 + $0x88] sm:$0xf] }
 0x15f   : > { %v3271_v46 = vcombine.low %v1561_v40, %v1571_v42  ;;  %v1599_v51 = vrot.slane %v1597_v45, 4  ;;  %v1610_v22 = vshrl.u32 %v4478_v34, 16  ;;  %v1616_v52 = vshll.u32 %v3241_v39, 16  ;;  %3749 = vmatprep.mubr.bf16.mxu0 %v3296_v43  ;;  %v3244_v45 = vld [vmem:[%s4127_s8 + $0x8c] sm:$0x1] }
 0x160   : > { %v1580_v53 = vrot.slane %v1579_v47, 4  ;;  %v1590_v54 = vrot.slane %v1589_v48, 4  ;;  %v1602_v55 = vrot.slane %v1600_v49, 5  ;;  %v3297_v56 = vcombine.low %v4475_v27, %v4478_v34 }
 0x161   : > { %v1608_v58 = vrot.slane %v1606_v19, 5  ;;  %v1612_v28 = vrot.slane %v1610_v22, 4  ;;  %v1618_v31 = vrot.slane %v1616_v52, 5  ;;  %v1621_v59 = vshrl.u32 %v3202_v50, 16  ;;  %v4525_v19 = vld [vmem:[%s4127_s8 + $0x90] sm:$0xf] }
 0x162   : > { %3698 = vmatmul.mubr.bf16.gmra.mrb[8].mxu1 %v3271_v46  ;;  %v1585_v60 = vsel %vm4156_vm2, %v1580_v53, %v1584_v36  ;;  %v1595_v61 = vsel %vm4156_vm2, %v1590_v54, %v1594_v38  ;;  %v1603_v62 = vor.u32 %v1602_v55, %v1599_v51  ;;  %v1624_v63 = vshll.u32 %v3202_v50, 16  ;;  %v4528_v55 = vld [vmem:[%s4127_s8 + $0x94] sm:$0xf] }
 0x163   : > { %v3272_v1 = vcombine.low %v1585_v60, %v1595_v61  ;;  %v1613_v2 = vor.u32 %v1612_v28, %v1608_v58  ;;  %v1623_v3 = vrot.slane %v1621_v59, 4  ;;  %v1630_v4 = vshll.u32 %v3203_v57, 16  ;;  %v3245_v59 = vld [vmem:[%s4127_s8 + $0x98] sm:$0x1] }
 0x164   : > { %v1604_v5 = vrot.slane %v1603_v62, 4  ;;  %v1626_v6 = vrot.slane %v1624_v63, 5  ;;  %v1634_v7 = vshrl.u32 %v3203_v57, 16  ;;  %v1640_v8 = vshll.u32 %v3242_v44, 16 }
 0x165   : > { %3701 = vmatprep.mubr.bf16.mxu1 %v3272_v1  ;;  %v1614_v10 = vrot.slane %v1613_v2, 4  ;;  %v1632_v11 = vrot.slane %v1630_v4, 5  ;;  %v3298_v12 = vcombine.low %v3202_v50, %v3203_v57  ;;  %v1645_v13 = vshrl.u32 %v4501_v0, 16  ;;  %3750 = vmatmul.mubr.bf16.gmra.mrb[12].mxu0 %v3297_v56  ;;  %v3210_v2 = vld [vmem:[%s4127_s8 + $0x9c] sm:$0xf] }
 0x166   : > { %v1609_v14 = vsel %vm4156_vm2, %v1604_v5, %v1608_v58  ;;  %v1627_v15 = vor.u32 %v1626_v6, %v1623_v3  ;;  %v1636_v16 = vrot.slane %v1634_v7, 4  ;;  %v1642_v17 = vrot.slane %v1640_v8, 5 }
 0x167   : > { %v1619_v20 = vsel %vm4156_vm2, %v1614_v10, %v1618_v31  ;;  %v1647_v21 = vrot.slane %v1645_v13, 4  ;;  %v1648_v23 = vshll.u32 %v4501_v0, 16  ;;  %v1654_v24 = vshll.u32 %v4504_v9, 16  ;;  %3753 = vmatprep.mubr.bf16.mxu0 %v3298_v12 }
 0x168   : > { %v3273_v26 = vcombine.low %v1609_v14, %v1619_v20  ;;  %v1628_v27 = vrot.slane %v1627_v15, 4  ;;  %v1637_v29 = vor.u32 %v1636_v16, %v1632_v11  ;;  %v1658_v30 = vshrl.u32 %v4504_v9, 16  ;;  %v3246_v15 = vld [vmem:[%s4127_s8 + $0xa4] sm:$0x1] }
 0x169   : > { %v1650_v33 = vrot.slane %v1648_v23, 5  ;;  %v1656_v34 = vrot.slane %v1654_v24, 5  ;;  %v1664_v35 = vshll.u32 %v3243_v18, 16  ;;  %v3299_v36 = vcombine.low %v4501_v0, %v4504_v9  ;;  %v4549_v23 = vld [vmem:[%s4127_s8 + $0xa8] sm:$0xf] }
 0x16a   : > { %3702 = vmatmul.mubr.bf16.gmra.mrb[12].mxu1 %v3273_v26  ;;  %v1633_v37 = vsel %vm4156_vm2, %v1628_v27, %v1632_v11  ;;  %v1638_v38 = vrot.slane %v1637_v29, 4  ;;  %v1660_v39 = vrot.slane %v1658_v30, 4  ;;  %v1669_v40 = vshrl.u32 %v3206_v25, 16  ;;  %v3211_v11 = vld [vmem:[%s4127_s8 + $0xa0] sm:$0xf] }
 0x16b   : > { %v1651_v42 = vor.u32 %v1650_v33, %v1647_v21  ;;  %v1666_v43 = vrot.slane %v1664_v35, 5  ;;  %v1672_v46 = vshll.u32 %v3206_v25, 16  ;;  %v1678_v47 = vshll.u32 %v3207_v32, 16 }
 0x16c   : > { %v1643_v48 = vsel %vm4156_vm2, %v1638_v38, %v1642_v17  ;;  %v1661_v49 = vor.u32 %v1660_v39, %v1656_v34  ;;  %v1671_v50 = vrot.slane %v1669_v40, 4  ;;  %v1682_v51 = vshrl.u32 %v3207_v32, 16  ;;  %v3247_v38 = vld [vmem:[%s4127_s8 + $0xb0] sm:$0x1] }
 0x16d   : > { %v3274_v22 = vcombine.low %v1633_v37, %v1643_v48  ;;  %v1652_v52 = vrot.slane %v1651_v42, 4  ;;  %v1674_v53 = vrot.slane %v1672_v46, 5  ;;  %v1680_v54 = vrot.slane %v1678_v47, 5  ;;  %3754 = vmatmul.mubr.bf16.gmra.mrb[16].mxu0 %v3299_v36 }
 0x16e   : > { %v1662_v56 = vrot.slane %v1661_v49, 4  ;;  %v1684_v57 = vrot.slane %v1682_v51, 4  ;;  %v1688_v58 = vshll.u32 %v3244_v45, 16  ;;  %v3300_v28 = vcombine.low %v3206_v25, %v3207_v32 }
 0x16f   : > { %3705 = vmatprep.mubr.bf16.mxu1 %v3274_v22  ;;  %v1657_v31 = vsel %vm4156_vm2, %v1652_v52, %v1656_v34  ;;  %v1675_v44 = vor.u32 %v1674_v53, %v1671_v50  ;;  %v1693_v60 = vshrl.u32 %v4525_v19, 16  ;;  %v1696_v61 = vshll.u32 %v4525_v19, 16  ;;  %v3213_v34 = vld [vmem:[%s4127_s8 + $0xac] sm:$0xf]  ;;  %v3214_v52 = vld [vmem:[%s4127_s8 + $0xb4] sm:$0xf] }
 0x170   : > { %v1667_v62 = vsel %vm4156_vm2, %v1662_v56, %v1666_v43  ;;  %v1685_v63 = vor.u32 %v1684_v57, %v1680_v54  ;;  %v1690_v0 = vrot.slane %v1688_v58, 5  ;;  %v1702_v1 = vshll.u32 %v4528_v55, 16  ;;  %3757 = vmatprep.mubr.bf16.mxu0 %v3300_v28  ;;  %v3215_v53 = vld [vmem:[%s4127_s8 + $0xb8] sm:$0xf]  ;;  %v3248_v58 = vld [vmem:[%s4127_s8 + $0xbc] sm:$0x1] }
 0x171   : > { %v3275_v3 = vcombine.low %v1657_v31, %v1667_v62  ;;  %v1676_v4 = vrot.slane %v1675_v44, 4  ;;  %v1695_v5 = vrot.slane %v1693_v60, 4  ;;  %v1698_v6 = vrot.slane %v1696_v61, 5 }
 0x172   : > { %v1686_v7 = vrot.slane %v1685_v63, 4  ;;  %v1704_v8 = vrot.slane %v1702_v1, 5  ;;  %v1706_v9 = vshrl.u32 %v4528_v55, 16  ;;  %v1712_v10 = vshll.u32 %v3245_v59, 16 }
 0x173   : > { %3706 = vmatmul.mubr.bf16.gmra.mrb[16].mxu1 %v3275_v3  ;;  %v1681_v12 = vsel %vm4156_vm2, %v1676_v4, %v1680_v54  ;;  %v1699_v13 = vor.u32 %v1698_v6, %v1695_v5  ;;  %v3301_v14 = vcombine.low %v4525_v19, %v4528_v55  ;;  %v1717_v16 = vshrl.u32 %v3210_v2, 16  ;;  %v3216_v4 = vld [vmem:[%s4127_s8 + $0xc0] sm:$0xf] }
 0x174   : > { %v1691_v17 = vsel %vm4156_vm2, %v1686_v7, %v1690_v0  ;;  %v1708_v18 = vrot.slane %v1706_v9, 4  ;;  %v1714_v20 = vrot.slane %v1712_v10, 5  ;;  %v1720_v21 = vshll.u32 %v3210_v2, 16  ;;  %v3217_v9 = vld [vmem:[%s4127_s8 + $0xc4] sm:$0xf] }
 0x175   : > { %v3276_v24 = vcombine.low %v1681_v12, %v1691_v17  ;;  %v1700_v25 = vrot.slane %v1699_v13, 4  ;;  %v1719_v26 = vrot.slane %v1717_v16, 4  ;;  %v1726_v27 = vshll.u32 %v3211_v11, 16  ;;  %3758 = vmatmul.mubr.bf16.gmra.mrb[20].mxu0 %v3301_v14  ;;  %v3249_v14 = vld [vmem:[%s4127_s8 + $0xc8] sm:$0x1] }
 0x176   : > { %v1709_v29 = vor.u32 %v1708_v18, %v1704_v8  ;;  %v1722_v30 = vrot.slane %v1720_v21, 5  ;;  %v1730_v32 = vshrl.u32 %v3211_v11, 16  ;;  %v1736_v33 = vshll.u32 %v3246_v15, 16 }
 0x177   : > { %3709 = vmatprep.mubr.bf16.mxu1 %v3276_v24  ;;  %v1705_v35 = vsel %vm4156_vm2, %v1700_v25, %v1704_v8  ;;  %v1728_v36 = vrot.slane %v1726_v27, 5  ;;  %v3302_v37 = vcombine.low %v3210_v2, %v3211_v11  ;;  %v1741_v39 = vshrl.u32 %v4549_v23, 16 }
 0x178   : > { %v1710_v40 = vrot.slane %v1709_v29, 4  ;;  %v1723_v42 = vor.u32 %v1722_v30, %v1719_v26  ;;  %v1732_v43 = vrot.slane %v1730_v32, 4  ;;  %v1738_v45 = vrot.slane %v1736_v33, 5 }
 0x179   : > { %v1743_v46 = vrot.slane %v1741_v39, 4  ;;  %v1744_v47 = vshll.u32 %v4549_v23, 16  ;;  %v1750_v48 = vshll.u32 %v3213_v34, 16  ;;  %v1754_v49 = vshrl.u32 %v3213_v34, 16  ;;  %3761 = vmatprep.mubr.bf16.mxu0 %v3302_v37 }
 0x17a   : > { %v1715_v50 = vsel %vm4156_vm2, %v1710_v40, %v1714_v20  ;;  %v1724_v51 = vrot.slane %v1723_v42, 4  ;;  %v1733_v19 = vor.u32 %v1732_v43, %v1728_v36  ;;  %v1760_v22 = vshll.u32 %v3247_v38, 16 }
 0x17b   : > { %v3277_v54 = vcombine.low %v1705_v35, %v1715_v50  ;;  %v1746_v55 = vrot.slane %v1744_v47, 5  ;;  %v1752_v56 = vrot.slane %v1750_v48, 5  ;;  %v1756_v57 = vrot.slane %v1754_v49, 4 }
 0x17c   : > { %v1729_v28 = vsel %vm4156_vm2, %v1724_v51, %v1728_v36  ;;  %v1734_v31 = vrot.slane %v1733_v19, 4  ;;  %v1762_v44 = vrot.slane %v1760_v22, 5  ;;  %v3303_v59 = vcombine.low %v4549_v23, %v3213_v34  ;;  %v1332_v51 = vld [vmem:[#allocation2 + $0x10] sm:$0xff] }
 0x17d   : > { %3710 = vmatmul.mubr.bf16.gmra.mrb[20].mxu1 %v3277_v54  ;;  %v1747_v60 = vor.u32 %v1746_v55, %v1743_v46  ;;  %v1757_v61 = vor.u32 %v1756_v57, %v1752_v56  ;;  %v1765_v62 = vshrl.u32 %v3214_v52, 16  ;;  %v1768_v63 = vshll.u32 %v3214_v52, 16  ;;  %v1333_v57 = vld [vmem:[#allocation2 + $0x18] sm:$0xff] }
 0x17e   : > { %v1739_v0 = vsel %vm4156_vm2, %v1734_v31, %v1738_v45  ;;  %v1774_v1 = vshll.u32 %v3215_v53, 16  ;;  %v1778_v2 = vshrl.u32 %v3215_v53, 16  ;;  %v1784_v3 = vshll.u32 %v3248_v58, 16  ;;  %3762 = vmatmul.mubr.bf16.gmra.mrb[24].mxu0 %v3303_v59  ;;  %v1331_v59 = vld [vmem:[#allocation2 + $0x8] sm:$0xff] }
 0x17f   : > { %v3278_v5 = vcombine.low %v1729_v28, %v1739_v0  ;;  %v1748_v6 = vrot.slane %v1747_v60, 4  ;;  %v1758_v7 = vrot.slane %v1757_v61, 4  ;;  %v1767_v8 = vrot.slane %v1765_v62, 4 }
 0x180   : > { %v1770_v10 = vrot.slane %v1768_v63, 5  ;;  %v1776_v11 = vrot.slane %v1774_v1, 5  ;;  %v1780_v12 = vrot.slane %v1778_v2, 4  ;;  %v1786_v13 = vrot.slane %v1784_v3, 5  ;;  %v1336_v1 = vld [vmem:[#allocation2 + $0x30] sm:$0xff] }
 0x181   : > { %3713 = vmatprep.mubr.bf16.mxu1 %v3278_v5  ;;  %v1753_v15 = vsel %vm4156_vm2, %v1748_v6, %v1752_v56  ;;  %v1763_v16 = vsel %vm4156_vm2, %v1758_v7, %v1762_v44  ;;  %v3304_v17 = vcombine.low %v3214_v52, %v3215_v53  ;;  %v1789_v18 = vshrl.u32 %v3216_v4, 16  ;;  %v1330_v53 = vld [vmem:[#allocation2] sm:$0xff] }
 0x182   : > { %v3279_v20 = vcombine.low %v1753_v15, %v1763_v16  ;;  %v1771_v21 = vor.u32 %v1770_v10, %v1767_v8  ;;  %v1781_v23 = vor.u32 %v1780_v12, %v1776_v11  ;;  %v1792_v24 = vshll.u32 %v3216_v4, 16  ;;  %v1334_v5 = vld [vmem:[#allocation2 + $0x20] sm:$0xff] }
 0x183   : > { %3765 = vmatprep.mubr.bf16.mxu0 %v3304_v17  ;;  %v1791_v25 = vrot.slane %v1789_v18, 4  ;;  %v1798_v26 = vshll.u32 %v3217_v9, 16  ;;  %v1802_v27 = vshrl.u32 %v3217_v9, 16  ;;  %v1808_v29 = vshll.u32 %v3249_v14, 16  ;;  %v1335_v14 = vld [vmem:[#allocation2 + $0x28] sm:$0xff] }
 0x184   : > { %v1772_v30 = vrot.slane %v1771_v21, 4  ;;  %v1782_v32 = vrot.slane %v1781_v23, 4  ;;  %v1794_v33 = vrot.slane %v1792_v24, 5  ;;  %v3305_v39 = vcombine.low %v3216_v4, %v3217_v9  ;;  %v1337_v9 = vld [vmem:[#allocation2 + $0x38] sm:$0xff]  ;;  %v1340_v23 = vld [vmem:[#allocation2 + $0x50] sm:$0xff] }
 0x185   : > { %3714 = vmatmul.mubr.bf16.gmra.mrb[24].mxu1 %v3279_v20  ;;  %v1800_v34 = vrot.slane %v1798_v26, 5  ;;  %v1804_v35 = vrot.slane %v1802_v27, 4  ;;  %v1810_v43 = vrot.slane %v1808_v29, 5  ;;  %v1338_v27 = vld [vmem:[#allocation2 + $0x40] sm:$0xff] }
 0x186   : > { %v1777_v36 = vsel %vm4156_vm2, %v1772_v30, %v1776_v11  ;;  %v1787_v37 = vsel %vm4156_vm2, %v1782_v32, %v1786_v13  ;;  %v1795_v38 = vor.u32 %v1794_v33, %v1791_v25  ;;  %3766 = vmatmul.mubr.bf16.gmra.mrb[28].mxu0 %v3305_v39  ;;  %v1341_v33 = vld [vmem:[#allocation2 + $0x58] sm:$0xff] }
 0x187   : > { %v3280_v40 = vcombine.low %v1777_v36, %v1787_v37  ;;  %v1805_v42 = vor.u32 %v1804_v35, %v1800_v34 }
 0x188   : > { %v1796_v45 = vrot.slane %v1795_v38, 4  ;;  %v1339_v38 = vld [vmem:[#allocation2 + $0x48] sm:$0xff] }
 0x189   : > { %3717 = vmatprep.mubr.bf16.mxu1 %v3280_v40  ;;  %v1806_v46 = vrot.slane %v1805_v42, 4 }
 0x18a   : > { %v1801_v47 = vsel %vm4156_vm2, %v1796_v45, %v1800_v34 }
 0x18b   : > { %v1811_v48 = vsel %vm4156_vm2, %v1806_v46, %v1810_v43 }
 0x18c   : > { %v3281_v49 = vcombine.low %v1801_v47, %v1811_v48  ;;  %v1344_v47 = vld [vmem:[#allocation2 + $0x70] sm:$0xff] }
 0x18e   : > { %3718 = vmatmul.mubr.bf16.gmra.mrb[28].mxu1 %v3281_v49 }
 0x220   : > { %v3739_v19 = vpop.f32.mrb[0].mxu0 }
 0x221   : > { %v2280_v54 = vpop.f32.mrb[1].mxu0 }
 0x222   : > { %v3740_v58 = vpop.f32.mrb[2].mxu0 }
 0x223   : > { %v2283_v60 = vpop.f32.mrb[3].mxu0 }
 0x225   : > { %v3691_v50 = vpop.f32.mrb[0].mxu1 }
 0x226   : > { %v1975_v22 = vpop.f32.mrb[1].mxu1  ;;  %v2289_v52 = vadd.f32 %v3739_v19, %v3691_v50 }
 0x227   : > { %v3692_v55 = vpop.f32.mrb[2].mxu1  ;;  %v2281_v56 = vadd.f32 %v2280_v54, %v1975_v22 }
 0x228   : > { %v1978_v28 = vpop.f32.mrb[3].mxu1  ;;  %v2409_v31 = vadd.f32 %v2289_v52, %v1332_v51  ;;  %v2292_v44 = vadd.f32 %v3740_v58, %v3692_v55  ;;  %v3743_v2 = vpop.f32.mrb[4].mxu0  ;;  %v1342_v51 = vld [vmem:[#allocation2 + $0x60] sm:$0xff]  ;;  %v1343_v58 = vld [vmem:[#allocation2 + $0x68] sm:$0xff] }
 0x229   : > { %v2407_v41 = vadd.f32 %v2281_v56, %v1330_v53  ;;  %v2284_v61 = vadd.f32 %v2283_v60, %v1978_v28  ;;  %v2296_v6 = vpop.f32.mrb[5].mxu0  ;;  %v1345_v53 = vld [vmem:[#allocation2 + $0x78] sm:$0xff] }
 0x22a   : > { %2441 = vst [vmem:[#allocation2 + $0x10] sm:$0xff] %v2409_v31  ;;  %v2410_v62 = vadd.f32 %v2292_v44, %v1333_v57  ;;  %v3744_v10 = vpop.f32.mrb[6].mxu0 }
 0x22b   : > { %2439 = vst [vmem:[#allocation2] sm:$0xff] %v2407_v41  ;;  %v2408_v63 = vadd.f32 %v2284_v61, %v1331_v59  ;;  %v2299_v15 = vpop.f32.mrb[7].mxu0 }
 0x22c   : > { %2442 = vst [vmem:[#allocation2 + $0x18] sm:$0xff] %v2410_v62  ;;  %v1348_v62 = vld [vmem:[#allocation2 + $0x90] sm:$0xff] }
 0x22d   : > { %v3695_v0 = vpop.f32.mrb[4].mxu1  ;;  %2440 = vst [vmem:[#allocation2 + $0x8] sm:$0xff] %v2408_v63 }
 0x22e   : > { %v1991_v3 = vpop.f32.mrb[5].mxu1  ;;  %v2305_v4 = vadd.f32 %v3743_v2, %v3695_v0  ;;  %v1346_v2 = vld [vmem:[#allocation2 + $0x80] sm:$0xff] }
 0x22f   : > { %v3696_v7 = vpop.f32.mrb[6].mxu1  ;;  %v2297_v8 = vadd.f32 %v2296_v6, %v1991_v3  ;;  %v1349_v6 = vld [vmem:[#allocation2 + $0x98] sm:$0xff] }
 0x230   : > { %v1994_v11 = vpop.f32.mrb[7].mxu1  ;;  %v2413_v12 = vadd.f32 %v2305_v4, %v1336_v1  ;;  %v2308_v13 = vadd.f32 %v3744_v10, %v3696_v7  ;;  %v3747_v24 = vpop.f32.mrb[8].mxu0 }
 0x231   : > { %v2411_v16 = vadd.f32 %v2297_v8, %v1334_v5  ;;  %v2300_v17 = vadd.f32 %v2299_v15, %v1994_v11  ;;  %v2312_v29 = vpop.f32.mrb[9].mxu0  ;;  %v1347_v11 = vld [vmem:[#allocation2 + $0x88] sm:$0xff] }
 0x232   : > { %2445 = vst [vmem:[#allocation2 + $0x30] sm:$0xff] %v2413_v12  ;;  %v2414_v18 = vadd.f32 %v2308_v13, %v1337_v9  ;;  %v3748_v34 = vpop.f32.mrb[10].mxu0 }
 0x233   : > { %2443 = vst [vmem:[#allocation2 + $0x20] sm:$0xff] %v2411_v16  ;;  %v2412_v20 = vadd.f32 %v2300_v17, %v1335_v14  ;;  %v2315_v39 = vpop.f32.mrb[11].mxu0 }
 0x234   : > { %2446 = vst [vmem:[#allocation2 + $0x38] sm:$0xff] %v2414_v18 }
 0x235   : > { %v3699_v21 = vpop.f32.mrb[8].mxu1  ;;  %2444 = vst [vmem:[#allocation2 + $0x28] sm:$0xff] %v2412_v20 }
 0x236   : > { %v2007_v25 = vpop.f32.mrb[9].mxu1  ;;  %v2321_v26 = vadd.f32 %v3747_v24, %v3699_v21  ;;  %v1352_v21 = vld [vmem:[#allocation2 + $0xb0] sm:$0xff] }
 0x237   : > { %v3700_v30 = vpop.f32.mrb[10].mxu1  ;;  %v2313_v32 = vadd.f32 %v2312_v29, %v2007_v25 }
 0x238   : > { %v2010_v35 = vpop.f32.mrb[11].mxu1  ;;  %v2417_v36 = vadd.f32 %v2321_v26, %v1340_v23  ;;  %v2324_v37 = vadd.f32 %v3748_v34, %v3700_v30  ;;  %v3751_v48 = vpop.f32.mrb[12].mxu0  ;;  %v1350_v26 = vld [vmem:[#allocation2 + $0xa0] sm:$0xff]  ;;  %v1353_v30 = vld [vmem:[#allocation2 + $0xb8] sm:$0xff] }
 0x239   : > { %v2415_v40 = vadd.f32 %v2313_v32, %v1338_v27  ;;  %v2316_v42 = vadd.f32 %v2315_v39, %v2010_v35  ;;  %v2328_v19 = vpop.f32.mrb[13].mxu0  ;;  %v1351_v35 = vld [vmem:[#allocation2 + $0xa8] sm:$0xff] }
 0x23a   : > { %2449 = vst [vmem:[#allocation2 + $0x50] sm:$0xff] %v2417_v36  ;;  %v2418_v43 = vadd.f32 %v2324_v37, %v1341_v33  ;;  %v3752_v54 = vpop.f32.mrb[14].mxu0 }
 0x23b   : > { %2447 = vst [vmem:[#allocation2 + $0x40] sm:$0xff] %v2415_v40  ;;  %v2416_v45 = vadd.f32 %v2316_v42, %v1339_v38  ;;  %v2331_v28 = vpop.f32.mrb[15].mxu0 }
 0x23c   : > { %2450 = vst [vmem:[#allocation2 + $0x58] sm:$0xff] %v2418_v43 }
 0x23d   : > { %2448 = vst [vmem:[#allocation2 + $0x48] sm:$0xff] %v2416_v45  ;;  %v3703_v46 = vpop.f32.mrb[12].mxu1 }
 0x23e   : > { %v2337_v49 = vadd.f32 %v3751_v48, %v3703_v46  ;;  %v2023_v50 = vpop.f32.mrb[13].mxu1  ;;  %v1356_v46 = vld [vmem:[#allocation2 + $0xd0] sm:$0xff] }
 0x23f   : > { %v2329_v22 = vadd.f32 %v2328_v19, %v2023_v50  ;;  %v3704_v52 = vpop.f32.mrb[14].mxu1  ;;  %v1354_v50 = vld [vmem:[#allocation2 + $0xc0] sm:$0xff] }
 0x240   : > { %v2421_v55 = vadd.f32 %v2337_v49, %v1344_v47  ;;  %v2340_v56 = vadd.f32 %v3752_v54, %v3704_v52  ;;  %v2026_v57 = vpop.f32.mrb[15].mxu1  ;;  %v3755_v41 = vpop.f32.mrb[16].mxu0 }
 0x241   : > { %v2419_v31 = vadd.f32 %v2329_v22, %v1342_v51  ;;  %v2332_v44 = vadd.f32 %v2331_v28, %v2026_v57  ;;  %v2344_v63 = vpop.f32.mrb[17].mxu0  ;;  %v1357_v22 = vld [vmem:[#allocation2 + $0xd8] sm:$0xff] }
 0x242   : > { %2453 = vst [vmem:[#allocation2 + $0x70] sm:$0xff] %v2421_v55  ;;  %v2422_v59 = vadd.f32 %v2340_v56, %v1345_v53  ;;  %v3756_v3 = vpop.f32.mrb[18].mxu0  ;;  %v1355_v55 = vld [vmem:[#allocation2 + $0xc8] sm:$0xff] }
 0x243   : > { %2451 = vst [vmem:[#allocation2 + $0x60] sm:$0xff] %v2419_v31  ;;  %v2420_v60 = vadd.f32 %v2332_v44, %v1343_v58  ;;  %v2347_v7 = vpop.f32.mrb[19].mxu0 }
 0x244   : > { %2454 = vst [vmem:[#allocation2 + $0x78] sm:$0xff] %v2422_v59 }
 0x245   : > { %2452 = vst [vmem:[#allocation2 + $0x68] sm:$0xff] %v2420_v60 }
 0x246   : > { %v3707_v61 = vpop.f32.mrb[16].mxu1 }
 0x247   : > { %v2353_v0 = vadd.f32 %v3755_v41, %v3707_v61  ;;  %v2039_v1 = vpop.f32.mrb[17].mxu1  ;;  %v1360_v61 = vld [vmem:[#allocation2 + $0xf0] sm:$0xff] }
 0x248   : > { %v2345_v4 = vadd.f32 %v2344_v63, %v2039_v1  ;;  %v3708_v5 = vpop.f32.mrb[18].mxu1  ;;  %v3759_v16 = vpop.f32.mrb[20].mxu0 }
 0x249   : > { %v2425_v8 = vadd.f32 %v2353_v0, %v1348_v62  ;;  %v2356_v9 = vadd.f32 %v3756_v3, %v3708_v5  ;;  %v2042_v10 = vpop.f32.mrb[19].mxu1  ;;  %v2360_v17 = vpop.f32.mrb[21].mxu0  ;;  %v1358_v0 = vld [vmem:[#allocation2 + $0xe0] sm:$0xff]  ;;  %v1361_v3 = vld [vmem:[#allocation2 + $0xf8] sm:$0xff] }
 0x24a   : > { %v2423_v12 = vadd.f32 %v2345_v4, %v1346_v2  ;;  %v2348_v13 = vadd.f32 %v2347_v7, %v2042_v10  ;;  %v3760_v18 = vpop.f32.mrb[22].mxu0  ;;  %v1359_v7 = vld [vmem:[#allocation2 + $0xe8] sm:$0xff] }
 0x24b   : > { %2457 = vst [vmem:[#allocation2 + $0x90] sm:$0xff] %v2425_v8  ;;  %v2426_v14 = vadd.f32 %v2356_v9, %v1349_v6  ;;  %v2363_v23 = vpop.f32.mrb[23].mxu0 }
 0x24c   : > { %2455 = vst [vmem:[#allocation2 + $0x80] sm:$0xff] %v2423_v12  ;;  %v2424_v15 = vadd.f32 %v2348_v13, %v1347_v11 }
 0x24d   : > { %2458 = vst [vmem:[#allocation2 + $0x98] sm:$0xff] %v2426_v14 }
 0x24e   : > { %2456 = vst [vmem:[#allocation2 + $0x88] sm:$0xff] %v2424_v15 }
 0x250   : > { %v3711_v20 = vpop.f32.mrb[20].mxu1 }
 0x251   : > { %v2369_v24 = vadd.f32 %v3759_v16, %v3711_v20  ;;  %v2055_v25 = vpop.f32.mrb[21].mxu1  ;;  %v3763_v39 = vpop.f32.mrb[24].mxu0 }
 0x252   : > { %v2361_v27 = vadd.f32 %v2360_v17, %v2055_v25  ;;  %v3712_v29 = vpop.f32.mrb[22].mxu1  ;;  %v2376_v42 = vpop.f32.mrb[25].mxu0 }
 0x253   : > { %v2429_v32 = vadd.f32 %v2369_v24, %v1352_v21  ;;  %v2372_v33 = vadd.f32 %v3760_v18, %v3712_v29  ;;  %v2058_v34 = vpop.f32.mrb[23].mxu1  ;;  %v3764_v43 = vpop.f32.mrb[26].mxu0 }
 0x254   : > { %v2427_v36 = vadd.f32 %v2361_v27, %v1350_v26  ;;  %v2364_v37 = vadd.f32 %v2363_v23, %v2058_v34  ;;  %v2379_v47 = vpop.f32.mrb[27].mxu0 }
 0x255   : > { %2461 = vst [vmem:[#allocation2 + $0xb0] sm:$0xff] %v2429_v32  ;;  %v2430_v38 = vadd.f32 %v2372_v33, %v1353_v30 }
 0x256   : > { %2459 = vst [vmem:[#allocation2 + $0xa0] sm:$0xff] %v2427_v36  ;;  %v2428_v40 = vadd.f32 %v2364_v37, %v1351_v35 }
 0x257   : > { %2462 = vst [vmem:[#allocation2 + $0xb8] sm:$0xff] %v2430_v38 }
 0x258   : > { %2460 = vst [vmem:[#allocation2 + $0xa8] sm:$0xff] %v2428_v40  ;;  %v3715_v45 = vpop.f32.mrb[24].mxu1 }
 0x259   : > { %v2385_v48 = vadd.f32 %v3763_v39, %v3715_v45  ;;  %v2071_v49 = vpop.f32.mrb[25].mxu1  ;;  %v3767_v28 = vpop.f32.mrb[28].mxu0 }
 0x25a   : > { %v2377_v51 = vadd.f32 %v2376_v42, %v2071_v49  ;;  %v3716_v19 = vpop.f32.mrb[26].mxu1  ;;  %v2392_v44 = vpop.f32.mrb[29].mxu0 }
 0x25b   : > { %v2433_v52 = vadd.f32 %v2385_v48, %v1356_v46  ;;  %v2388_v53 = vadd.f32 %v3764_v43, %v3716_v19  ;;  %v2074_v54 = vpop.f32.mrb[27].mxu1  ;;  %v3768_v59 = vpop.f32.mrb[30].mxu0 }
 0x25c   : > { %v2431_v56 = vadd.f32 %v2377_v51, %v1354_v50  ;;  %v2380_v57 = vadd.f32 %v2379_v47, %v2074_v54  ;;  %v2395_v60 = vpop.f32.mrb[31].mxu0 }
 0x25d   : > { %2465 = vst [vmem:[#allocation2 + $0xd0] sm:$0xff] %v2433_v52  ;;  %v2434_v58 = vadd.f32 %v2388_v53, %v1357_v22 }
 0x25e   : > { %2463 = vst [vmem:[#allocation2 + $0xc0] sm:$0xff] %v2431_v56  ;;  %v2432_v31 = vadd.f32 %v2380_v57, %v1355_v55 }
 0x25f   : > { %2466 = vst [vmem:[#allocation2 + $0xd8] sm:$0xff] %v2434_v58 }
 0x260   : > { %2464 = vst [vmem:[#allocation2 + $0xc8] sm:$0xff] %v2432_v31 }
 0x261   : > { %v3719_v41 = vpop.f32.mrb[28].mxu1 }
 0x262   : > { %v2401_v62 = vadd.f32 %v3767_v28, %v3719_v41  ;;  %v2087_v63 = vpop.f32.mrb[29].mxu1 }
 0x263   : > { %v2393_v1 = vadd.f32 %v2392_v44, %v2087_v63  ;;  %v3720_v2 = vpop.f32.mrb[30].mxu1 }
 0x264   : > { %v2437_v4 = vadd.f32 %v2401_v62, %v1360_v61  ;;  %v2404_v5 = vadd.f32 %v3768_v59, %v3720_v2  ;;  %v2090_v6 = vpop.f32.mrb[31].mxu1 }
 0x265   : > { %v2435_v8 = vadd.f32 %v2393_v1, %v1358_v0  ;;  %v2396_v9 = vadd.f32 %v2395_v60, %v2090_v6 }
 0x266   : > { %2469 = vst [vmem:[#allocation2 + $0xf0] sm:$0xff] %v2437_v4  ;;  %v2438_v10 = vadd.f32 %v2404_v5, %v1361_v3 }
 0x267   : > { %2467 = vst [vmem:[#allocation2 + $0xe0] sm:$0xff] %v2435_v8  ;;  %v2436_v11 = vadd.f32 %v2396_v9, %v1359_v7 }
 0x268   : > { %2470 = vst [vmem:[#allocation2 + $0xf8] sm:$0xff] %v2438_v10 }
 0x269   : > { %2468 = vst [vmem:[#allocation2 + $0xe8] sm:$0xff] %v2436_v11 }
 0x26a PF: > { %v2471_v12 = vld [vmem:[#allocation2] sm:$0xff]  ;;  %v2472_v13 = vld [vmem:[#allocation2 + $0x8] sm:$0xff]  ;;  %v2473_v14 = vld [vmem:[#allocation2 + $0x10] sm:$0xff]  ;;  %vm2609_vm3 = vcmask 1040384   ;;  %s3348_s10 = sshll.u32 (%p4081_p5), %s3992_s17, 1  ;;  %s3349_s11 = sshll.u32 (%p4081_p5), %s3996_s18, 6 }
 0x26b   : > { %v2474_v15 = vld [vmem:[#allocation2 + $0x18] sm:$0xff]  ;;  %v2503_v16 = vadd.f32 %v2472_v13, %v2471_v12  ;;  %v2540_v17 = vmul.f32 %v2471_v12, %v2471_v12  ;;  %v2541_v18 = vmul.f32 %v2472_v13, %v2472_v13  ;;  %v2542_v20 = vmul.f32 %v2473_v14, %v2473_v14  ;;  %v2475_v21 = vld [vmem:[#allocation2 + $0x20] sm:$0xff]  ;;  %v2476_v26 = vld [vmem:[#allocation2 + $0x28] sm:$0xff]  ;;  %s2828_s26 = sadd.s32 (%p4081_p5), %s3349_s11, %s3348_s10 }
 0x26c   : > { %v2543_v24 = vmul.f32 %v2474_v15, %v2474_v15  ;;  %v2477_v27 = vld [vmem:[#allocation2 + $0x30] sm:$0xff]  ;;  %v2478_v30 = vld [vmem:[#allocation2 + $0x38] sm:$0xff]  ;;  %v2479_v32 = vld [vmem:[#allocation2 + $0x40] sm:$0xff]  ;;  %v2544_v34 = vmul.f32 %v2475_v21, %v2475_v21  ;;  %v2545_v43 = vmul.f32 %v2476_v26, %v2476_v26  ;;  %s3350_s12 = sshll.u32 (%p4081_p5), %s2828_s26, 2 }
 0x26d   : > { %v2504_v23 = vadd.f32 %v2503_v16, %v2473_v14  ;;  %v2572_v25 = vadd.f32 %v2541_v18, %v2540_v17  ;;  %v2480_v33 = vld [vmem:[#allocation2 + $0x48] sm:$0xff]  ;;  %v2481_v36 = vld [vmem:[#allocation2 + $0x50] sm:$0xff]  ;;  %v4582_v37 = vld [vmem:[#allocation2 + $0x58] sm:$0xff]  ;;  %v2546_v45 = vmul.f32 %v2477_v27, %v2477_v27  ;;  %v2547_v48 = vmul.f32 %v2478_v30, %v2478_v30  ;;  %s2830_s15 = scalar_lea.vmem (%p4081_p5), %s4824_s3, %s3350_s12 }
 0x26e   : > { %v4584_v38 = vld [vmem:[#allocation2 + $0x60] sm:$0xff]  ;;  %v4586_v40 = vld [vmem:[#allocation2 + $0x68] sm:$0xff]  ;;  %v4588_v42 = vld [vmem:[#allocation2 + $0x70] sm:$0xff]  ;;  %v2548_v49 = vmul.f32 %v2479_v32, %v2479_v32  ;;  %v2549_v50 = vmul.f32 %v2480_v33, %v2480_v33  ;;  %v4590_v51 = vmul.f32 %v2481_v36, %v2481_v36  ;;  %v4594_v19 = vmul.f32 %v4582_v37, %v4582_v37 }
 0x26f   : > { %v2505_v29 = vadd.f32 %v2504_v23, %v2474_v15  ;;  %v2573_v35 = vadd.f32 %v2572_v25, %v2542_v20  ;;  %v4598_v22 = vmul.f32 %v4584_v38, %v4584_v38  ;;  %v4603_v53 = vld [vmem:[%s4823_s2] ss:$0 sm:$0xff]  ;;  %v4607_v55 = vmul.f32 %v4586_v40, %v4586_v40  ;;  %v4628_v10 = vld [vmem:[#allocation2 + $0x78] sm:$0xff]  ;;  %v4637_v16 = vld [vmem:[#allocation2 + $0x88] sm:$0xff] }
 0x270   : > { %v4611_v56 = vmul.f32 %v4588_v42, %v4588_v42  ;;  %v2619_v57 = vadd.f32 %v4603_v53, %v2471_v12  ;;  %v2620_v28 = vadd.f32 %v4603_v53, %v2472_v13  ;;  %v2621_v31 = vadd.f32 %v4603_v53, %v2473_v14  ;;  %v4644_v23 = vld [vmem:[#allocation2 + $0x90] sm:$0xff] }
 0x271   : > { %v2506_v39 = vadd.f32 %v2505_v29, %v2475_v21  ;;  %v2574_v46 = vadd.f32 %v2573_v35, %v2543_v24  ;;  %v2622_v44 = vadd.f32 %v4603_v53, %v2474_v15  ;;  %v2623_v60 = vadd.f32 %v4603_v53, %v2475_v21  ;;  %v4635_v15 = vld [vmem:[#allocation2 + $0x80] sm:$0xff]  ;;  %v4646_v24 = vld [vmem:[#allocation2 + $0x98] sm:$0xff] }
 0x272   : > { %v2624_v41 = vadd.f32 %v4603_v53, %v2476_v26  ;;  %v2625_v61 = vadd.f32 %v4603_v53, %v2477_v27  ;;  %v3389_v63 = vpack.c.bf16 %v2620_v28, %v2619_v57  ;;  %v2626_v1 = vadd.f32 %v4603_v53, %v2478_v30  ;;  %v4684_v28 = vld [vmem:[#allocation2 + $0xd8] sm:$0xff] }
 0x273   : > { %v2507_v47 = vadd.f32 %v2506_v39, %v2476_v26  ;;  %v2575_v52 = vadd.f32 %v2574_v46, %v2544_v34  ;;  %v3394_v0 = vpack.c.bf16 %v2622_v44, %v2621_v31  ;;  %v2627_v4 = vadd.f32 %v4603_v53, %v2479_v32  ;;  %v4662_v39 = vld [vmem:[#allocation2 + $0xb0] sm:$0xff] }
 0x274   : > { %v3399_v3 = vpack.c.bf16 %v2624_v41, %v2623_v60  ;;  %v2628_v5 = vadd.f32 %v4603_v53, %v2480_v33  ;;  %3390 = vst [vmem:[%s4353_s7] sm:$0xff] %v3389_v63   ;;  %v3404_v7 = vpack.c.bf16 %v2626_v1, %v2625_v61  ;;  %v2629_v8 = vadd.f32 %v4603_v53, %v2481_v36  ;;  %v4692_v60 = vld [vmem:[#allocation2 + $0xe0] sm:$0xff]  ;;  %v4694_v41 = vld [vmem:[#allocation2 + $0xe8] sm:$0xff]  ;;  %v4704_v1 = vld [vmem:[#allocation2 + $0xf8] sm:$0xff] }
 0x275   : > { %v2508_v54 = vadd.f32 %v2507_v47, %v2477_v27  ;;  %v2576_v58 = vadd.f32 %v2575_v52, %v2545_v43  ;;  %3466 = vst [vmem:[%s4353_s7 + $0x8] sm:$0xff] %v3394_v0   ;;  %v2630_v9 = vadd.f32 %v4603_v53, %v4582_v37  ;;  %v2631_v13 = vadd.f32 %v4603_v53, %v4584_v38  ;;  %v4664_v43 = vld [vmem:[#allocation2 + $0xb8] sm:$0xff]  ;;  %v4702_v0 = vld [vmem:[#allocation2 + $0xf0] sm:$0xff] }
 0x276   : > { %3467 = vst [vmem:[%s4353_s7 + $0x10] sm:$0xff] %v3399_v3   ;;  %v3409_v12 = vpack.c.bf16 %v2628_v5, %v2627_v4  ;;  %v2632_v14 = vadd.f32 %v4603_v53, %v4586_v40  ;;  %3468 = vst [vmem:[%s4353_s7 + $0x18] sm:$0xff] %v3404_v7   ;;  %v2633_v20 = vadd.f32 %v4603_v53, %v4588_v42 }
 0x277   : > { %v2509_v59 = vadd.f32 %v2508_v54, %v2478_v30  ;;  %v2577_v62 = vadd.f32 %v2576_v58, %v2546_v45  ;;  %v3414_v18 = vpack.c.bf16 %v2630_v9, %v2629_v8  ;;  %v2634_v21 = vadd.f32 %v4603_v53, %v4628_v10  ;;  %v4653_v30 = vld [vmem:[#allocation2 + $0xa0] sm:$0xff]  ;;  %v4682_v58 = vld [vmem:[#allocation2 + $0xd0] sm:$0xff] }
 0x278   : > { %3469 = vst [vmem:[%s4353_s7 + $0x20] sm:$0xff] %v3409_v12   ;;  %v3419_v26 = vpack.c.bf16 %v2632_v14, %v2631_v13  ;;  %v2635_v27 = vadd.f32 %v4603_v53, %v4635_v15  ;;  %v2636_v29 = vadd.f32 %v4603_v53, %v4637_v16  ;;  %v2637_v35 = vadd.f32 %v4603_v53, %v4644_v23 }
 0x279   : > { %v2510_v2 = vadd.f32 %v2509_v59, %v2479_v32  ;;  %v2578_v6 = vadd.f32 %v2577_v62, %v2547_v48  ;;  %v4655_v32 = vld [vmem:[#allocation2 + $0xa8] sm:$0xff]  ;;  %3470 = vst [vmem:[%s4353_s7 + $0x28] sm:$0xff] %v3414_v18   ;;  %v3424_v34 = vpack.c.bf16 %v2634_v21, %v2633_v20  ;;  %v2639_v47 = vadd.f32 %v4603_v53, %v4653_v30 }
 0x27a   : > { %3471 = vst [vmem:[%s4353_s7 + $0x30] sm:$0xff] %v3419_v26   ;;  %v3429_v46 = vpack.c.bf16 %v2636_v29, %v2635_v27  ;;  %v2640_v48 = vadd.f32 %v4603_v53, %v4655_v32  ;;  %v2642_v57 = vadd.f32 %v4603_v53, %v4664_v43  ;;  %v2646_v63 = vadd.f32 %v4603_v53, %v4684_v28 }
 0x27b   : > { %v2511_v11 = vadd.f32 %v2510_v2, %v2480_v33  ;;  %v2579_v17 = vadd.f32 %v2578_v6, %v2548_v49  ;;  %v4672_v49 = vld [vmem:[#allocation2 + $0xc0] sm:$0xff]  ;;  %3472 = vst [vmem:[%s4353_s7 + $0x38] sm:$0xff] %v3424_v34   ;;  %v2648_v4 = vadd.f32 %v4603_v53, %v4694_v41  ;;  %v2649_v7 = vadd.f32 %v4603_v53, %v4702_v0 }
 0x27c   : > { %3473 = vst [vmem:[%s4353_s7 + $0x40] sm:$0xff] %v3429_v46   ;;  %v3439_v44 = vpack.c.bf16 %v2640_v48, %v2639_v47  ;;  %v2556_v14 = vmul.f32 %v4635_v15, %v4635_v15 }
 0x27d   : > { %v2512_v25 = vadd.f32 %v2511_v11, %v2481_v36  ;;  %v2580_v33 = vadd.f32 %v2579_v17, %v2549_v50  ;;  %v2638_v36 = vadd.f32 %v4603_v53, %v4646_v24  ;;  %v4674_v50 = vld [vmem:[#allocation2 + $0xc8] sm:$0xff]  ;;  %v2555_v11 = vmul.f32 %v4628_v10, %v4628_v10 }
 0x27e   : > { %v2644_v59 = vadd.f32 %v4603_v53, %v4674_v50  ;;  %3475 = vst [vmem:[%s4353_s7 + $0x50] sm:$0xff] %v3439_v44  }
 0x27f   : > { %v2513_v45 = vadd.f32 %v2512_v25, %v4582_v37  ;;  %v2581_v52 = vadd.f32 %v2580_v33, %v4590_v51  ;;  %v3434_v54 = vpack.c.bf16 %v2638_v36, %v2637_v35  ;;  %v2641_v37 = vadd.f32 %v4603_v53, %v4662_v39 }
 0x280   : > { %v2643_v51 = vadd.f32 %v4603_v53, %v4672_v49  ;;  %v2559_v25 = vmul.f32 %v4646_v24, %v4646_v24 }
 0x281   : > { %v2514_v31 = vadd.f32 %v2513_v45, %v4584_v38  ;;  %v2582_v61 = vadd.f32 %v2581_v52, %v4594_v19  ;;  %3474 = vst [vmem:[%s4353_s7 + $0x48] sm:$0xff] %v3434_v54   ;;  %v3444_v62 = vpack.c.bf16 %v2642_v57, %v2641_v37  ;;  %v2645_v38 = vadd.f32 %v4603_v53, %v4682_v58 }
 0x282   : > { %v3449_v3 = vpack.c.bf16 %v2644_v59, %v2643_v51  ;;  %v2647_v19 = vadd.f32 %v4603_v53, %v4692_v60 }
 0x283   : > { %v2515_v2 = vadd.f32 %v2514_v31, %v4586_v40  ;;  %v2583_v5 = vadd.f32 %v2582_v61, %v4598_v22  ;;  %3476 = vst [vmem:[%s4353_s7 + $0x58] sm:$0xff] %v3444_v62   ;;  %v3454_v6 = vpack.c.bf16 %v2646_v63, %v2645_v38  ;;  %v2650_v40 = vadd.f32 %v4603_v53, %v4704_v1 }
 0x284   : > { %3477 = vst [vmem:[%s4353_s7 + $0x60] sm:$0xff] %v3449_v3   ;;  %v3459_v9 = vpack.c.bf16 %v2648_v4, %v2647_v19  ;;  %v2557_v53 = vmul.f32 %v4637_v16, %v4637_v16 }
 0x285   : > { %v2516_v8 = vadd.f32 %v2515_v2, %v4588_v42  ;;  %v2584_v12 = vadd.f32 %v2583_v5, %v4607_v55  ;;  %3478 = vst [vmem:[%s4353_s7 + $0x68] sm:$0xff] %v3454_v6   ;;  %v3464_v22 = vpack.c.bf16 %v2650_v40, %v2649_v7  ;;  %v2558_v55 = vmul.f32 %v4644_v23, %v4644_v23 }
 0x286   : > { %3479 = vst [vmem:[%s4353_s7 + $0x70] sm:$0xff] %v3459_v9  }
 0x287   : > { %v2517_v13 = vadd.f32 %v2516_v8, %v4628_v10  ;;  %v2585_v17 = vadd.f32 %v2584_v12, %v4611_v56  ;;  %3480 = vst [vmem:[%s4353_s7 + $0x78] sm:$0xff] %v3464_v22  }
 0x289   : > { %v2518_v42 = vadd.f32 %v2517_v13, %v4635_v15  ;;  %v2586_v18 = vadd.f32 %v2585_v17, %v2555_v11  ;;  %v2560_v15 = vmul.f32 %v4653_v30, %v4653_v30  ;;  %v2854_v17 = vld [vmem:[%s4353_s7 + $0x10] sm:$0xff] (%p4081_p5)  }
 0x28a   : > { %2855 = vst [vmem:[%s2830_s15 + $0x20] sm:$0xff] (%p4081_p5), %v2854_v17  }
 0x28b   : > { %v2519_v20 = vadd.f32 %v2518_v42, %v4637_v16  ;;  %v2587_v21 = vadd.f32 %v2586_v18, %v2556_v14  ;;  %v2561_v16 = vmul.f32 %v4655_v32, %v4655_v32  ;;  %v2850_v14 = vld [vmem:[%s4353_s7 + $0x8] sm:$0xff] (%p4081_p5)   ;;  %v2858_v42 = vld [vmem:[%s4353_s7 + $0x18] sm:$0xff] (%p4081_p5)  }
 0x28c   : > { %v2866_v18 = vld [vmem:[%s4353_s7 + $0x28] sm:$0xff] (%p4081_p5)   ;;  %2851 = vst [vmem:[%s2830_s15 + $0x10] sm:$0xff] (%p4081_p5), %v2850_v14   ;;  %2859 = vst [vmem:[%s2830_s15 + $0x30] sm:$0xff] (%p4081_p5), %v2858_v42  }
 0x28d   : > { %v2520_v10 = vadd.f32 %v2519_v20, %v4644_v23  ;;  %v2588_v26 = vadd.f32 %v2587_v21, %v2557_v53  ;;  %v2562_v23 = vmul.f32 %v4662_v39, %v4662_v39  ;;  %v2862_v53 = vld [vmem:[%s4353_s7 + $0x20] sm:$0xff] (%p4081_p5)   ;;  %v2870_v20 = vld [vmem:[%s4353_s7 + $0x30] sm:$0xff] (%p4081_p5)   ;;  %2867 = vst [vmem:[%s2830_s15 + $0x50] sm:$0xff] (%p4081_p5), %v2866_v18  }
 0x28e   : > { %v2878_v21 = vld [vmem:[%s4353_s7 + $0x40] sm:$0xff] (%p4081_p5)   ;;  %2863 = vst [vmem:[%s2830_s15 + $0x40] sm:$0xff] (%p4081_p5), %v2862_v53   ;;  %2871 = vst [vmem:[%s2830_s15 + $0x60] sm:$0xff] (%p4081_p5), %v2870_v20  }
 0x28f   : > { %v2521_v56 = vadd.f32 %v2520_v10, %v4646_v24  ;;  %v2589_v27 = vadd.f32 %v2588_v26, %v2558_v55  ;;  %v2563_v24 = vmul.f32 %v4664_v43, %v4664_v43  ;;  %v2874_v55 = vld [vmem:[%s4353_s7 + $0x38] sm:$0xff] (%p4081_p5)   ;;  %v2882_v10 = vld [vmem:[%s4353_s7 + $0x48] sm:$0xff] (%p4081_p5)   ;;  %2879 = vst [vmem:[%s2830_s15 + $0x80] sm:$0xff] (%p4081_p5), %v2878_v21  }
 0x290   : > { %v2890_v26 = vld [vmem:[%s4353_s7 + $0x58] sm:$0xff] (%p4081_p5)   ;;  %2875 = vst [vmem:[%s2830_s15 + $0x70] sm:$0xff] (%p4081_p5), %v2874_v55   ;;  %2883 = vst [vmem:[%s2830_s15 + $0x90] sm:$0xff] (%p4081_p5), %v2882_v10  }
 0x291   : > { %v2522_v29 = vadd.f32 %v2521_v56, %v4653_v30  ;;  %v2590_v33 = vadd.f32 %v2589_v27, %v2559_v25  ;;  %v2564_v30 = vmul.f32 %v4672_v49, %v4672_v49  ;;  %v2886_v25 = vld [vmem:[%s4353_s7 + $0x50] sm:$0xff] (%p4081_p5)   ;;  %2891 = vst [vmem:[%s2830_s15 + $0xb0] sm:$0xff] (%p4081_p5), %v2890_v26   ;;  %v2894_v56 = vld [vmem:[%s4353_s7 + $0x60] sm:$0xff] (%p4081_p5)  }
 0x292   : > { %2887 = vst [vmem:[%s2830_s15 + $0xa0] sm:$0xff] (%p4081_p5), %v2886_v25   ;;  %v2902_v27 = vld [vmem:[%s4353_s7 + $0x70] sm:$0xff] (%p4081_p5)   ;;  %2895 = vst [vmem:[%s2830_s15 + $0xc0] sm:$0xff] (%p4081_p5), %v2894_v56  }
 0x293   : > { %v2523_v34 = vadd.f32 %v2522_v29, %v4655_v32  ;;  %v2591_v35 = vadd.f32 %v2590_v33, %v2560_v15  ;;  %v2565_v32 = vmul.f32 %v4674_v50, %v4674_v50  ;;  %v2898_v15 = vld [vmem:[%s4353_s7 + $0x68] sm:$0xff] (%p4081_p5)   ;;  %2903 = vst [vmem:[%s2830_s15 + $0xe0] sm:$0xff] (%p4081_p5), %v2902_v27   ;;  %v2906_v29 = vld [vmem:[%s4353_s7 + $0x78] sm:$0xff] (%p4081_p5)  }
 0x294   : > { %2899 = vst [vmem:[%s2830_s15 + $0xd0] sm:$0xff] (%p4081_p5), %v2898_v15   ;;  %2907 = vst [vmem:[%s2830_s15 + $0xf0] sm:$0xff] (%p4081_p5), %v2906_v29  }
 0x295   : > { %v2524_v36 = vadd.f32 %v2523_v34, %v4662_v39  ;;  %v2592_v45 = vadd.f32 %v2591_v35, %v2561_v16  ;;  %v2566_v39 = vmul.f32 %v4682_v58, %v4682_v58 }
 0x297   : > { %v2525_v46 = vadd.f32 %v2524_v36, %v4664_v43  ;;  %v2593_v47 = vadd.f32 %v2592_v45, %v2562_v23  ;;  %v2567_v43 = vmul.f32 %v4684_v28, %v4684_v28 }
 0x299   : > { %v2526_v48 = vadd.f32 %v2525_v46, %v4672_v49  ;;  %v2594_v52 = vadd.f32 %v2593_v47, %v2563_v24  ;;  %v2568_v49 = vmul.f32 %v4692_v60, %v4692_v60 }
 0x29b   : > { %v2527_v54 = vadd.f32 %v2526_v48, %v4674_v50  ;;  %v2595_v37 = vadd.f32 %v2594_v52, %v2564_v30  ;;  %v2569_v50 = vmul.f32 %v4694_v41, %v4694_v41 }
 0x29d   : > { %v2528_v57 = vadd.f32 %v2527_v54, %v4682_v58  ;;  %v2596_v31 = vadd.f32 %v2595_v37, %v2565_v32  ;;  %v2570_v58 = vmul.f32 %v4702_v0, %v4702_v0 }
 0x29f   : > { %v2529_v44 = vadd.f32 %v2528_v57, %v4684_v28  ;;  %v2597_v51 = vadd.f32 %v2596_v31, %v2566_v39  ;;  %v2571_v28 = vmul.f32 %v4704_v1, %v4704_v1 }
 0x2a1   : > { %v2530_v59 = vadd.f32 %v2529_v44, %v4692_v60  ;;  %v2598_v61 = vadd.f32 %v2597_v51, %v2567_v43 }
 0x2a3   : > { %v2531_v62 = vadd.f32 %v2530_v59, %v4694_v41  ;;  %v2599_v38 = vadd.f32 %v2598_v61, %v2568_v49 }
 0x2a5   : > { %v2532_v63 = vadd.f32 %v2531_v62, %v4702_v0  ;;  %v2600_v2 = vadd.f32 %v2599_v38, %v2569_v50 }
 0x2a7   : > { %v2533_v3 = vadd.f32 %v2532_v63, %v4704_v1  ;;  %v2601_v19 = vadd.f32 %v2600_v2, %v2570_v58  ;;  %v2846_v1 = vld [vmem:[%s4353_s7] sm:$0xff] (%p4081_p5)  }
 0x2a8   : > { %2847 = vst [vmem:[%s2830_s15] sm:$0xff] (%p4081_p5), %v2846_v1  }
 0x2a9   : > { %v2534_v60 = vrot.slane %v2533_v3, 4  ;;  %v2602_v4 = vadd.f32 %v2601_v19, %v2571_v28 }
 0x2ab   : > { %v2535_v5 = vadd.f32 %v2534_v60, %v2533_v3  ;;  %v2603_v6 = vrot.slane %v2602_v4, 4 }
 0x2ad   : > { %v2536_v7 = vrot.slane %v2535_v5, 2  ;;  %v2604_v41 = vadd.f32 %v2603_v6, %v2602_v4 }
 0x2af   : > { %v2537_v40 = vadd.f32 %v2536_v7, %v2535_v5  ;;  %v2605_v8 = vrot.slane %v2604_v41, 2 }
 0x2b1   : > { %v2538_v9 = vrot.slane %v2537_v40, 1  ;;  %v2606_v11 = vadd.f32 %v2605_v8, %v2604_v41 }
 0x2b2   : > { %2825 = sbr.rel (!%p4081_p5) target bundleno = 697 (0x2b9), region = 40 }
 0x2b3   : > { %v2539_v12 = vadd.f32 %v2538_v9, %v2537_v40  ;;  %v2607_v0 = vrot.slane %v2606_v11, 1 }
 0x2b5   : > { %v2608_v22 = vadd.f32 %v2607_v0, %v2606_v11 }
 0x2b7   : > { %v2610_v13 = vsel %vm2609_vm3, %v2539_v12, %v2608_v22 }
 0x2b8   : > { %2611 = vst [vmem:[%s4113_s27] sm:$0x3] %v2610_v13 }
 0x2b9 PF: > { %s15_s21 = sadd.s32 1, %s4008_s21   ;;  %s4829_s15 = smov %s3988_s16 }
 0x2ba   : > { %p12_p12 = scmp.ge.s32.totalorder %s15_s21, 6   ;;  %s4830_s16 = smov %s4092_s30 }
 0x2bb   : > { %s4831_s17 = smov %s4000_s19  ;;  %s4832_s18 = smov %s4004_s20 }
 0x2bc   : > { %s4833_s19 = smov %s4836_s22  ;;  %s4834_s20 = smov %s4840_s23 }
 0x2bd   :  { %14 = sbr.rel (!%p12_p12) target bundleno = 4 (0x4), region = 126 }

</bundles_post_ra>
